<compile_context>
chip_gen: v7x
topology: tpu7x:2x2x1
jax: 0.10.0
libtpu: 0.0.40
codegen_flags: <defaults>
</compile_context>

<pallas_src>
import jax
import jax.numpy as jnp
from jax import lax
from jax.experimental import pallas as pl
from jax.experimental.pallas import tpu as pltpu

SLOPE = 0.2


def _leaky_relu(x, slope=SLOPE):
    return jnp.where(x >= 0, x, slope * x)


def _make_kernel(H, W, TH, Cin, Cout):
    """Fused conv->lrelu->conv->lrelu kernel for one TH-row output block."""
    H1 = TH + 2      # conv1 rows incl. the 1-row recompute halo for conv2
    W1 = W + 2       # conv1 cols incl. conv2's column halo

    def kernel(x_ref, w1_ref, b1_ref, w2t_ref, b2t_ref, out_ref):
        # x_ref   : (1, H_pad+4, W+4, Cin)  NHWC, rows/cols zero-padded by 2
        #                                   (resident across the row-block axis)
        # w1_ref  : (9*Cin, Cout)   conv1 weights, (kh, kw, cin)-major rows
        # b1_ref  : (1, Cout)
        # w2t_ref : (Cout, 9*Cout)  conv2 weights, transposed (lane-dense output)
        # b2t_ref : (Cout, 1)
        # out_ref : (1, Cout, TH*W) channel-major, lane-dense output slab
        cdt = w1_ref.dtype
        r0 = pl.multiple_of(pl.program_id(1) * TH, TH)

        # Row slab covering image rows [r0-2, r0+TH+2); all halos already live in
        # the wrapper pad.  Cast to the MXU compute dtype before the im2col.
        xs = x_ref[0, pl.ds(r0, TH + 4), :, :].astype(cdt)       # (TH+4, W+4, Cin)

        # ---- conv1 (over W+2 columns): one big-K MXU matmul over all 9 taps ----
        taps1 = [xs[dy:dy + H1, dx:dx + W1, :]
                 for dy in range(3) for dx in range(3)]          # each (H1, W1, Cin)
        p1 = jnp.concatenate(taps1, axis=2).reshape(H1 * W1, 9 * Cin)
        y1 = jnp.dot(p1, w1_ref[...], preferred_element_type=jnp.float32)
        a1 = _leaky_relu(y1 + b1_ref[...]).astype(cdt).reshape(H1, W1, Cout)

        # Halo rows/cols of a1 outside the image must be exact zeros so conv2
        # sees true spatial zero-padding.  One (H1, W1, 1) mask, broadcast over C.
        rix = lax.broadcasted_iota(jnp.int32, (H1, W1, 1), 0) + (r0 - 1)
        cix = lax.broadcasted_iota(jnp.int32, (H1, W1, 1), 1)
        keep = (rix >= 0) & (rix < H) & (cix >= 1) & (cix <= W)
        a1 = jnp.where(keep, a1, 0.0).astype(cdt)

        # ---- conv2: taps sliced straight out of a1 (no concat / pad needed);
        # transposed matmul -> (Cout, TH*W) so the store is an unmasked vst.
        taps2 = [a1[dy:dy + TH, dx:dx + W, :]
                 for dy in range(3) for dx in range(3)]          # each (TH, W, Cout)
        p2 = jnp.concatenate(taps2, axis=2).reshape(TH * W, 9 * Cout)
        y2t = lax.dot_general(w2t_ref[...], p2,
                              (((1,), (1,)), ((), ())),
                              preferred_element_type=jnp.float32)  # (Cout, TH*W)
        a2t = _leaky_relu(y2t + b2t_ref[...])

        out_ref[...] = a2t.reshape(1, Cout, TH * W).astype(out_ref.dtype)

    return kernel


def unet_conv_block(x_nchw, w1_oihw, b1, w2_oihw, b2, *, row_block=32,
                    compute_dtype=jnp.float32):
    """x_nchw: (N, Cin, H, W) -> (N, Cout, H, W).

    compute_dtype=jnp.bfloat16 is the production setting for v6e/v7x MXU peak
    (fp32 kept in the test so the 1e-4 check against the fp32 reference holds).
    """
    N, Cin, H, W = x_nchw.shape
    Cout = w1_oihw.shape[0]

    # Row block: multiple of 8 (sublane), or the whole image if it is small.
    row_block = max(8, (int(row_block) // 8) * 8)
    TH = H if H <= row_block else row_block
    n_blocks = -(-H // TH)                         # cdiv
    # The lane-dense (Cout, TH*W) output block must tile the flattened H*W axis.
    if n_blocks > 1 and (TH * W) % 128 != 0:
        TH, n_blocks = H, 1
    H_pad = n_blocks * TH

    # NCHW -> NHWC; the 2-row/2-col conv halo pad and the row-block tail pad fold
    # into this single XLA layout copy (no in-kernel column concat needed).
    x_nhwc = jnp.transpose(x_nchw, (0, 2, 3, 1))
    x_rp = jnp.pad(x_nhwc, ((0, 0), (2, 2 + H_pad - H), (2, 2), (0, 0)))

    # conv1: OIHW -> (kh*kw*cin, cout), tap-major rows (matches kernel patch order).
    w1 = jnp.transpose(w1_oihw, (2, 3, 1, 0)).reshape(9 * Cin, Cout).astype(compute_dtype)
    b1r = b1.reshape(1, Cout).astype(jnp.float32)
    # conv2: transposed to (cout, kh*kw*cin) so the kernel's matmul result comes
    # out channel-major (lane-dense store; output is already NCHW-ordered).
    w2t = jnp.transpose(w2_oihw, (0, 2, 3, 1)).reshape(Cout, 9 * Cout).astype(compute_dtype)
    b2t = b2.reshape(Cout, 1).astype(jnp.float32)

    # VMEM budget: v5e default scoped limit is only 16 MiB; v7x physical is 64 MiB.
    try:
        vmem_cap = int(pltpu.get_tpu_info().vmem_capacity_bytes)
    except Exception:
        vmem_cap = 0
    if vmem_cap <= 0:
        vmem_cap = 64 * 1024 * 1024
    vmem_limit = max(32 * 1024 * 1024,
                     int(min(100 * 1024 * 1024, 0.75 * vmem_cap)))

    kernel = _make_kernel(H, W, TH, Cin, Cout)

    out_flat = pl.pallas_call(
        kernel,
        out_shape=jax.ShapeDtypeStruct((N, Cout, H_pad * W), x_nchw.dtype),
        grid_spec=pltpu.PrefetchScalarGridSpec(
            num_scalar_prefetch=0,
            grid=(N, H_pad // TH),
            in_specs=[
                # TODO(synk): for v7x production sizes swap this resident image
                # for memory_space=pl.ANY + manual (TH+4)-row slab DMAs so VMEM
                # scales with TH rather than H.
                pl.BlockSpec((1, H_pad + 4, W + 4, Cin), lambda n, r: (n, 0, 0, 0)),
                pl.BlockSpec((9 * Cin, Cout), lambda n, r: (0, 0)),
                pl.BlockSpec((1, Cout), lambda n, r: (0, 0)),
                pl.BlockSpec((Cout, 9 * Cout), lambda n, r: (0, 0)),
                pl.BlockSpec((Cout, 1), lambda n, r: (0, 0)),
            ],
            out_specs=pl.BlockSpec((1, Cout, TH * W), lambda n, r: (n, 0, r)),
        ),
        compiler_params=pltpu.CompilerParams(
            dimension_semantics=("parallel", "parallel"),
            vmem_limit_bytes=vmem_limit),
    )(x_rp, w1, b1r, w2t, b2t)

    # Already channel-major (NCHW): just un-flatten H*W and drop any pad rows.
    return out_flat.reshape(N, Cout, H_pad, W)[:, :, :H, :]


def reference_forward(x_nchw, w1, b1, w2, b2):
    """Pure-JAX NCHW reference mirroring the PyTorch module."""
    def conv(x, w, b):
        y = lax.conv_general_dilated(
            x, w, window_strides=(1, 1), padding=((1, 1), (1, 1)),
            dimension_numbers=("NCHW", "OIHW", "NCHW"))
        return y + b[None, :, None, None]
    y = _leaky_relu(conv(x_nchw, w1, b1))
    y = _leaky_relu(conv(y, w2, b2))
    return y


if __name__ == "__main__":
    N, Cin, Cout, H, W = 2, 4, 8, 16, 16

    key = jax.random.PRNGKey(0)
    kx, kw1, kb1, kw2, kb2 = jax.random.split(key, 5)

    x = jax.random.normal(kx, (N, Cin, H, W), dtype=jnp.float32)
    fan1 = Cin * 9
    fan2 = Cout * 9
    w1 = jax.random.uniform(kw1, (Cout, Cin, 3, 3), jnp.float32,
                            -1.0 / jnp.sqrt(fan1), 1.0 / jnp.sqrt(fan1))
    b1 = jax.random.uniform(kb1, (Cout,), jnp.float32,
                            -1.0 / jnp.sqrt(fan1), 1.0 / jnp.sqrt(fan1))
    w2 = jax.random.uniform(kw2, (Cout, Cout, 3, 3), jnp.float32,
                            -1.0 / jnp.sqrt(fan2), 1.0 / jnp.sqrt(fan2))
    b2 = jax.random.uniform(kb2, (Cout,), jnp.float32,
                            -1.0 / jnp.sqrt(fan2), 1.0 / jnp.sqrt(fan2))

    # row_block=8 exercises the multi-row-block path (two row blocks per image,
    # grid=(2,2)) under the fp32 1e-4 check; the production default is 32.
    out = jax.block_until_ready(unet_conv_block(x, w1, b1, w2, b2, row_block=8))
    ref = jax.block_until_ready(reference_forward(x, w1, b1, w2, b2))

    assert out.shape == (N, Cout, H, W), out.shape
    assert jnp.allclose(out, ref, atol=1e-4, rtol=1e-4), \
        float(jnp.max(jnp.abs(out - ref)))
    print("KERNEL_OK")
</pallas_src>

<mosaic_0001>
module attributes {stable_mosaic.version = 11 : i64} {
  func.func @kernel(%arg0: i32, %arg1: i32, %arg2: memref<1x20x20x4xf32, #tpu.memory_space<vmem>>, %arg3: memref<36x8xf32, #tpu.memory_space<vmem>>, %arg4: memref<1x8xf32, #tpu.memory_space<vmem>>, %arg5: memref<8x72xf32, #tpu.memory_space<vmem>>, %arg6: memref<8x1xf32, #tpu.memory_space<vmem>>, %arg7: memref<1x8x128xf32, #tpu.memory_space<vmem>>) attributes {dimension_semantics = [#tpu.dimension_semantics<parallel>, #tpu.dimension_semantics<parallel>], iteration_bounds = array<i64: 2, 2>, scalar_prefetch = 0 : i64, scratch_operands = 0 : i64, tpu.core_type = #tpu.core_type<tc>, window_params = [{transform_indices = @transform_0, window_bounds = array<i64: 1, 20, 20, 4>}, {pipeline_mode = #tpu.pipeline_mode<synchronous>, transform_indices = @transform_1, window_bounds = array<i64: 36, 8>}, {pipeline_mode = #tpu.pipeline_mode<synchronous>, transform_indices = @transform_2, window_bounds = array<i64: 1, 8>}, {pipeline_mode = #tpu.pipeline_mode<synchronous>, transform_indices = @transform_3, window_bounds = array<i64: 8, 72>}, {pipeline_mode = #tpu.pipeline_mode<synchronous>, transform_indices = @transform_4, window_bounds = array<i64: 8, 1>}, {transform_indices = @transform_5, window_bounds = array<i64: 1, 8, 128>}]} {
    %c8_i32 = arith.constant 8 : i32
    %0 = arith.muli %arg1, %c8_i32 : i32
    %1 = tpu.assume_multiple %0, 8 : i32
    %c0 = arith.constant 0 : index
    %2 = arith.index_cast %1 : i32 to index
    %c0_0 = arith.constant 0 : index
    %c0_1 = arith.constant 0 : index
    %3 = vector.load %arg2[%c0, %2, %c0_0, %c0_1] : memref<1x20x20x4xf32, #tpu.memory_space<vmem>>, vector<1x12x20x4xf32>
    %4 = vector.shape_cast %3 : vector<1x12x20x4xf32> to vector<12x20x4xf32>
    %5 = vector.extract_strided_slice %4 {offsets = [0, 0, 0], sizes = [10, 18, 4], strides = [1, 1, 1]} : vector<12x20x4xf32> to vector<10x18x4xf32>
    %6 = vector.extract_strided_slice %4 {offsets = [0, 1, 0], sizes = [10, 18, 4], strides = [1, 1, 1]} : vector<12x20x4xf32> to vector<10x18x4xf32>
    %7 = vector.extract_strided_slice %4 {offsets = [0, 2, 0], sizes = [10, 18, 4], strides = [1, 1, 1]} : vector<12x20x4xf32> to vector<10x18x4xf32>
    %8 = vector.extract_strided_slice %4 {offsets = [1, 0, 0], sizes = [10, 18, 4], strides = [1, 1, 1]} : vector<12x20x4xf32> to vector<10x18x4xf32>
    %9 = vector.extract_strided_slice %4 {offsets = [1, 1, 0], sizes = [10, 18, 4], strides = [1, 1, 1]} : vector<12x20x4xf32> to vector<10x18x4xf32>
    %10 = vector.extract_strided_slice %4 {offsets = [1, 2, 0], sizes = [10, 18, 4], strides = [1, 1, 1]} : vector<12x20x4xf32> to vector<10x18x4xf32>
    %11 = vector.extract_strided_slice %4 {offsets = [2, 0, 0], sizes = [10, 18, 4], strides = [1, 1, 1]} : vector<12x20x4xf32> to vector<10x18x4xf32>
    %12 = vector.extract_strided_slice %4 {offsets = [2, 1, 0], sizes = [10, 18, 4], strides = [1, 1, 1]} : vector<12x20x4xf32> to vector<10x18x4xf32>
    %13 = vector.extract_strided_slice %4 {offsets = [2, 2, 0], sizes = [10, 18, 4], strides = [1, 1, 1]} : vector<12x20x4xf32> to vector<10x18x4xf32>
    %14 = tpu.concatenate %5, %6, %7, %8, %9, %10, %11, %12, %13 in 2 : vector<10x18x4xf32>, vector<10x18x4xf32>, vector<10x18x4xf32>, vector<10x18x4xf32>, vector<10x18x4xf32>, vector<10x18x4xf32>, vector<10x18x4xf32>, vector<10x18x4xf32>, vector<10x18x4xf32> -> vector<10x18x36xf32>
    %15 = vector.shape_cast %14 : vector<10x18x36xf32> to vector<180x36xf32>
    %c0_2 = arith.constant 0 : index
    %c0_3 = arith.constant 0 : index
    %16 = vector.load %arg3[%c0_2, %c0_3] : memref<36x8xf32, #tpu.memory_space<vmem>>, vector<36x8xf32>
    %cst = arith.constant dense<0.000000e+00> : vector<180x8xf32>
    %17 = tpu.matmul %15, %16, %cst {dimension_numbers = #tpu.dot_dimension_numbers<[1], [0], [0], [1], [0, 0, 1, 1], [], []>} : vector<180x36xf32>, vector<36x8xf32>, vector<180x8xf32> -> vector<180x8xf32>
    %c0_4 = arith.constant 0 : index
    %c0_5 = arith.constant 0 : index
    %18 = vector.load %arg4[%c0_4, %c0_5] : memref<1x8xf32, #tpu.memory_space<vmem>>, vector<1x8xf32>
    %19 = vector.broadcast %18 : vector<1x8xf32> to vector<180x8xf32>
    %20 = arith.addf %17, %19 : vector<180x8xf32>
    %cst_6 = arith.constant 0.000000e+00 : f32
    %21 = vector.broadcast %cst_6 : f32 to vector<180x8xf32>
    %22 = arith.cmpf oge, %20, %21 : vector<180x8xf32>
    %cst_7 = arith.constant 2.000000e-01 : f32
    %23 = vector.broadcast %cst_7 : f32 to vector<180x8xf32>
    %24 = arith.mulf %23, %20 : vector<180x8xf32>
    %25 = arith.select %22, %20, %24 : vector<180x8xi1>, vector<180x8xf32>
    %26 = vector.shape_cast %25 : vector<180x8xf32> to vector<10x18x8xf32>
    %27 = tpu.iota {dimensions = array<i32: 0>} : vector<10x18x1xi32>
    %c1_i32 = arith.constant 1 : i32
    %28 = arith.subi %1, %c1_i32 : i32
    %29 = vector.broadcast %28 : i32 to vector<10x18x1xi32>
    %30 = arith.addi %27, %29 : vector<10x18x1xi32>
    %31 = tpu.iota {dimensions = array<i32: 1>} : vector<10x18x1xi32>
    %c0_i32 = arith.constant 0 : i32
    %32 = vector.broadcast %c0_i32 : i32 to vector<10x18x1xi32>
    %33 = arith.cmpi sge, %30, %32 : vector<10x18x1xi32>
    %c16_i32 = arith.constant 16 : i32
    %34 = vector.broadcast %c16_i32 : i32 to vector<10x18x1xi32>
    %35 = arith.cmpi slt, %30, %34 : vector<10x18x1xi32>
    %36 = arith.andi %33, %35 : vector<10x18x1xi1>
    %c1_i32_8 = arith.constant 1 : i32
    %37 = vector.broadcast %c1_i32_8 : i32 to vector<10x18x1xi32>
    %38 = arith.cmpi sge, %31, %37 : vector<10x18x1xi32>
    %39 = arith.andi %36, %38 : vector<10x18x1xi1>
    %c16_i32_9 = arith.constant 16 : i32
    %40 = vector.broadcast %c16_i32_9 : i32 to vector<10x18x1xi32>
    %41 = arith.cmpi sle, %31, %40 : vector<10x18x1xi32>
    %42 = arith.andi %39, %41 : vector<10x18x1xi1>
    %cst_10 = arith.constant 0.000000e+00 : f32
    %43 = vector.shape_cast %42 : vector<10x18x1xi1> to vector<10x18x1xi1>
    %44 = vector.broadcast %43 : vector<10x18x1xi1> to vector<10x18x8xi1>
    %45 = vector.broadcast %cst_10 : f32 to vector<10x18x8xf32>
    %46 = arith.select %44, %26, %45 : vector<10x18x8xi1>, vector<10x18x8xf32>
    %47 = vector.extract_strided_slice %46 {offsets = [0, 0, 0], sizes = [8, 16, 8], strides = [1, 1, 1]} : vector<10x18x8xf32> to vector<8x16x8xf32>
    %48 = vector.extract_strided_slice %46 {offsets = [0, 1, 0], sizes = [8, 16, 8], strides = [1, 1, 1]} : vector<10x18x8xf32> to vector<8x16x8xf32>
    %49 = vector.extract_strided_slice %46 {offsets = [0, 2, 0], sizes = [8, 16, 8], strides = [1, 1, 1]} : vector<10x18x8xf32> to vector<8x16x8xf32>
    %50 = vector.extract_strided_slice %46 {offsets = [1, 0, 0], sizes = [8, 16, 8], strides = [1, 1, 1]} : vector<10x18x8xf32> to vector<8x16x8xf32>
    %51 = vector.extract_strided_slice %46 {offsets = [1, 1, 0], sizes = [8, 16, 8], strides = [1, 1, 1]} : vector<10x18x8xf32> to vector<8x16x8xf32>
    %52 = vector.extract_strided_slice %46 {offsets = [1, 2, 0], sizes = [8, 16, 8], strides = [1, 1, 1]} : vector<10x18x8xf32> to vector<8x16x8xf32>
    %53 = vector.extract_strided_slice %46 {offsets = [2, 0, 0], sizes = [8, 16, 8], strides = [1, 1, 1]} : vector<10x18x8xf32> to vector<8x16x8xf32>
    %54 = vector.extract_strided_slice %46 {offsets = [2, 1, 0], sizes = [8, 16, 8], strides = [1, 1, 1]} : vector<10x18x8xf32> to vector<8x16x8xf32>
    %55 = vector.extract_strided_slice %46 {offsets = [2, 2, 0], sizes = [8, 16, 8], strides = [1, 1, 1]} : vector<10x18x8xf32> to vector<8x16x8xf32>
    %56 = tpu.concatenate %47, %48, %49, %50, %51, %52, %53, %54, %55 in 2 : vector<8x16x8xf32>, vector<8x16x8xf32>, vector<8x16x8xf32>, vector<8x16x8xf32>, vector<8x16x8xf32>, vector<8x16x8xf32>, vector<8x16x8xf32>, vector<8x16x8xf32>, vector<8x16x8xf32> -> vector<8x16x72xf32>
    %57 = vector.shape_cast %56 : vector<8x16x72xf32> to vector<128x72xf32>
    %c0_11 = arith.constant 0 : index
    %c0_12 = arith.constant 0 : index
    %58 = vector.load %arg5[%c0_11, %c0_12] : memref<8x72xf32, #tpu.memory_space<vmem>>, vector<8x72xf32>
    %cst_13 = arith.constant dense<0.000000e+00> : vector<8x128xf32>
    %59 = tpu.matmul %58, %57, %cst_13 {dimension_numbers = #tpu.dot_dimension_numbers<[1], [1], [0], [0], [0, 0, 1, 0], [], []>} : vector<8x72xf32>, vector<128x72xf32>, vector<8x128xf32> -> vector<8x128xf32>
    %c0_14 = arith.constant 0 : index
    %c0_15 = arith.constant 0 : index
    %60 = vector.load %arg6[%c0_14, %c0_15] : memref<8x1xf32, #tpu.memory_space<vmem>>, vector<8x1xf32>
    %61 = vector.broadcast %60 : vector<8x1xf32> to vector<8x128xf32>
    %62 = arith.addf %59, %61 : vector<8x128xf32>
    %cst_16 = arith.constant 0.000000e+00 : f32
    %63 = vector.broadcast %cst_16 : f32 to vector<8x128xf32>
    %64 = arith.cmpf oge, %62, %63 : vector<8x128xf32>
    %cst_17 = arith.constant 2.000000e-01 : f32
    %65 = vector.broadcast %cst_17 : f32 to vector<8x128xf32>
    %66 = arith.mulf %65, %62 : vector<8x128xf32>
    %67 = arith.select %64, %62, %66 : vector<8x128xi1>, vector<8x128xf32>
    %68 = vector.shape_cast %67 : vector<8x128xf32> to vector<1x8x128xf32>
    %c0_18 = arith.constant 0 : index
    %c0_19 = arith.constant 0 : index
    %c0_20 = arith.constant 0 : index
    %69 = vector.load %arg7[%c0_18, %c0_19, %c0_20] : memref<1x8x128xf32, #tpu.memory_space<vmem>>, vector<1x8x128xf32>
    tpu.vector_store %arg7[%c0_18, %c0_19, %c0_20], %68 {strides = array<i32>} : memref<1x8x128xf32, #tpu.memory_space<vmem>>, vector<1x8x128xf32>,
    return
  }
  func.func @transform_0(%arg0: i32, %arg1: i32) -> (i32, i32, i32, i32) {
    %c0_i32 = arith.constant 0 : i32
    %c0_i32_0 = arith.constant 0 : i32
    %c0_i32_1 = arith.constant 0 : i32
    %c0_i32_2 = arith.constant 0 : i32
    return %arg0, %c0_i32, %c0_i32_0, %c0_i32_1 : i32, i32, i32, i32
  }
  func.func @transform_1(%arg0: i32, %arg1: i32) -> (i32, i32) {
    %c0_i32 = arith.constant 0 : i32
    %c0_i32_0 = arith.constant 0 : i32
    %c0_i32_1 = arith.constant 0 : i32
    return %c0_i32, %c0_i32_0 : i32, i32
  }
  func.func @transform_2(%arg0: i32, %arg1: i32) -> (i32, i32) {
    %c0_i32 = arith.constant 0 : i32
    %c0_i32_0 = arith.constant 0 : i32
    %c0_i32_1 = arith.constant 0 : i32
    return %c0_i32, %c0_i32_0 : i32, i32
  }
  func.func @transform_3(%arg0: i32, %arg1: i32) -> (i32, i32) {
    %c0_i32 = arith.constant 0 : i32
    %c0_i32_0 = arith.constant 0 : i32
    %c0_i32_1 = arith.constant 0 : i32
    return %c0_i32, %c0_i32_0 : i32, i32
  }
  func.func @transform_4(%arg0: i32, %arg1: i32) -> (i32, i32) {
    %c0_i32 = arith.constant 0 : i32
    %c0_i32_0 = arith.constant 0 : i32
    %c0_i32_1 = arith.constant 0 : i32
    return %c0_i32, %c0_i32_0 : i32, i32
  }
  func.func @transform_5(%arg0: i32, %arg1: i32) -> (i32, i32, i32) {
    %c0_i32 = arith.constant 0 : i32
    %c0_i32_0 = arith.constant 0 : i32
    return %arg0, %c0_i32, %arg1 : i32, i32, i32
  }
}

</mosaic_0001>

<bundles_post_ra>
// kernel: tpu_custom_call.1
= control target key start
LH: loop header
LB: loop body
LE: loop exit
PB: predicated region body
PF: predicated region fallthrough
CT: control target
= control target key end

     0   :  { %10 = vsyncpa [#allocation3], 0  ;;  %s7733_s0 = inlined_call_operand.vmem [shape: f32[2,20,20,4], index: 0, kind: input, shape index: {}]   ;;  %s7734_s1 = inlined_call_operand.vmem [shape: f32[36,8], index: 1, kind: input, shape index: {}]   ;;  %s7735_s2 = inlined_call_operand.vmem [shape: f32[1,8], index: 2, kind: input, shape index: {}]   ;;  %s7736_s3 = inlined_call_operand.vmem [shape: f32[8,72], index: 3, kind: input, shape index: {}]   ;;  %s7737_s4 = inlined_call_operand.vmem [shape: f32[8,1], index: 4, kind: input, shape index: {}]   ;;  %s7738_s5 = inlined_call_operand.hbm [shape: f32[2,8,256], index: 5, kind: output, shape index: {}]  }
   0x1   :  { %12 = vsyncpa [#allocation3 + $0x1], 0  ;;  %s5290_s18 = smov 0   ;;  %s5292_s19 = smov 0  }
   0x2   :  { %s5294_s20 = smov 0   ;;  %s5296_s21 = smov 0  }
   0x3   :  { %s5298_s22 = smov 0   ;;  %s5300_s23 = smov 0  }
   0x4   :  { %s5302_s24 = smov 0   ;;  %s5304_s25 = smov 0  }
   0x5 LB: > { %s4451_s26 = sadd.s32 4294967295, %s5240_s25   ;;  %s4452_s27 = sadd.s32 4294967294, %s5240_s25   ;;  %s5240_s25 = sphi %s5304_s25, %s18_s25   ;;  %s5236_s24 = sphi %s5302_s24, %s7903_s24   ;;  %s5232_s23 = sphi %s5300_s23, %s7902_s23   ;;  %s5228_s22 = sphi %s5298_s22, %s7901_s22   ;;  %s5224_s21 = sphi %s5296_s21, %s7900_s21   ;;  %s5220_s20 = sphi %s5294_s20, %s7899_s20   ;;  %s5216_s19 = sphi %s5292_s19, %s7898_s19   ;;  %s5212_s18 = sphi %s5290_s18, %s7897_s18  }
   0x6   : > { %s27_s28 = sadd.s32 1, %s5232_s23  ;;  %s30_s29 = sadd.s32 1, %s5236_s24 }
   0x7   : > { %p28_p0 = scmp.ge.s32.totalorder %s27_s28, 2  ;;  %p159_p1 = scmp.ne.s32.totalorder %s5220_s20, %s5216_s19 }
   0x8   : > { %p160_p2 = scmp.eq.s32.totalorder %s4451_s26, 3  ;;  %p165_p5 = scmp.ne.s32.totalorder %s5216_s19, %s5212_s18 }
   0x9   : > { %s7905_s28 = smov (%p28_p0, %s27_s28), 0  ;;  %s7907_s29 = smov (!%p28_p0, %s30_s29), %s5236_s24 }
   0xa   : > { %s145_s30 = ssub.s32 %s5232_s23, %s7905_s28  ;;  %p5341_p3 = por %p160_p2, %p159_p1 }
   0xb   : > { %p32_p4 = scmp.ge.s32.totalorder %s7907_s29, 2  ;;  %p166_p6 = scmp.eq.s32.totalorder %s4452_s27, 3 }
   0xc   : > { %p4455_p7 = scmp.ge.s32.totalorder %s5240_s25, 1  ;;  %p204_p9 = scmp.lt.s32.totalorder %s5240_s25, 5 }
   0xd   : > { %s7909_s29 = smov (%p32_p4, %s7907_s29), 0  ;;  %p5350_p8 = por %p166_p6, %p165_p5 }
   0xe   : > { %s144_s8 = ssub.s32 %s5236_s24, %s7909_s29  ;;  %s149_s9 = sadd.s32 1, %s5220_s20 }
   0xf   : > { %s146_s10 = sor.u32 %s145_s30, %s144_s8  ;;  %p205_p10 = pnand %p4455_p7, %p204_p9 }
  0x10   : > { %p147_p11 = scmp.eq.s32.totalorder %s146_s10, 0 }
  0x11   : > { %208 = sbr.rel (%p205_p10) target bundleno = 1225 (0x4c9), region = 40 }
  0x12   : > { %s5359_s11 = scalar_select %p147_p11, %s5220_s20, %s149_s9  }
  0x18   : > { %p232_p12 = scmp.lt.s32.totalorder %s5228_s22, 1  ;;  %s4459_s13 = smul.u32 192, %s5224_s21  ;;  %vm306_vm0 = vcmask 1046528   ;;  %vm447_vm1 = vcmask 1045504   ;;  %vm2283_vm2 = vcmask 1043456   ;;  %vm5251_vm3 = vmmov 0  }
  0x19   : > { %s5242_s27 = smov 4   ;;  %s5243_s30 = smov 12   ;;  %vm1154_vm4 = vcmask 31744   ;;  %vm1185_vm5 = vcmask 64512   ;;  %vm7755_vm6 = vcmask 97280   ;;  %vm1247_vm7 = vcmask 130048  }
  0x1a   : > { %s233_s12 = scalar_select %p232_p12, %s5228_s22, 1  ;;  %vm1278_vm8 = vcmask 162816   ;;  %vm7758_vm9 = vcmask 195584   ;;  %vm7754_vm10 = vcmask 228352   ;;  %vm7753_vm11 = vcmask 261120  }
  0x1b   : > { %s5244_s8 = smov 8   ;;  %s5245_s9 = smov 20   ;;  %vm2236_vm12 = vcmask 293888  }
  0x1c   : > { %s4705_s14 = smul.u32 480, %s233_s12  ;;  %s5246_s15 = smov 16  }
  0x1d   : > { %s5248_s16 = smov 24   ;;  %s5257_s10 = smov 64  }
  0x1e   : > { %s236_s17 = scalar_lea.vmem %s7733_s0, %s4705_s14  ;;  %s4458_s14 = sshll.u32 %s5224_s21, 3 }
  0x1f   : > { %s5367_s26 = scalar_lea.vmem %s236_s17, %s4459_s13  ;;  %s5249_s13 = smov 28  }
  0x20   : > { %v5370_v0 = vld [vmem:[%s5367_s26 + $0x10] sm:$0xf]  ;;  %v5373_v1 = vld [vmem:[%s5367_s26] sm:$0xff]  ;;  %v5376_v2 = vld [vmem:[%s5367_s26 + $0x8] sm:$0xff]  ;;  %s4485_s17 = sadd.s32 4294967295, %s4458_s14 }
  0x21   : > { %v310_v3 = vrot.slane %v5370_v0, 1  ;;  %v307_v4 = vrot.slane %v5373_v1, 1  ;;  %v308_v5 = vrot.slane %v5376_v2, 1  ;;  %v5382_v6 = vld [vmem:[%s5367_s26 + $0x28] sm:$0xf]  ;;  %v5385_v7 = vld [vmem:[%s5367_s26 + $0x18] sm:$0xff] }
  0x22   : > { %v5388_v8 = vld [vmem:[%s5367_s26 + $0x20] sm:$0xff]  ;;  %v5393_v10 = vrot.slane %v5382_v6, 1  ;;  %v312_v11 = vrot.slane %v5385_v7, 1  ;;  %v5400_v14 = vld [vmem:[%s5367_s26 + $0x38] sm:$0xff]  ;;  %v5406_v16 = vld [vmem:[%s5367_s26 + $0x30] sm:$0xff] }
  0x23   : > { %361 = vrot.lane.b32.xlu1 %v310_v3, %s5242_s27  ;;  %v309_v9 = vsel %vm306_vm0, %v307_v4, %v308_v5  ;;  %v313_v12 = vrot.slane %v5388_v8, 1  ;;  %v311_v13 = vsel %vm306_vm0, %v308_v5, %v310_v3  ;;  %v5403_v15 = vld [vmem:[%s5367_s26 + $0x40] sm:$0xf]  ;;  %v318_v18 = vrot.slane %v5400_v14, 1  ;;  %v5424_v22 = vld [vmem:[%s5367_s26 + $0x48] sm:$0xff]  ;;  %v5427_v23 = vld [vmem:[%s5367_s26 + $0x50] sm:$0xff] }
  0x24   : > { %357 = vrot.lane.b32.xlu0 %v309_v9, %s5242_s27  ;;  %v5416_v19 = vrot.slane %v5403_v15, 1  ;;  %v317_v21 = vrot.slane %v5406_v16, 1  ;;  %v322_v25 = vrot.slane %v5424_v22, 1  ;;  %v323_v26 = vrot.slane %v5427_v23, 1  ;;  %v5443_v28 = vld [vmem:[%s5367_s26 + $0x58] sm:$0xf] }
  0x25   : > { %v5412_v17 = vsel %vm306_vm0, %v312_v11, %v313_v12  ;;  %v5420_v20 = vsel %vm306_vm0, %v313_v12, %v5393_v10  ;;  %v5453_v30 = vrot.slane %v5443_v28, 1  ;;  %v5456_v31 = vld [vmem:[%s5367_s26 + $0x68] sm:$0xff]  ;;  %v5459_v32 = vld [vmem:[%s5367_s26 + $0x70] sm:$0xf]  ;;  %v5462_v33 = vld [vmem:[%s5367_s26 + $0x60] sm:$0xff] }
  0x26   : > { %v5435_v24 = vsel %vm306_vm0, %v318_v18, %v5416_v19  ;;  %v5440_v27 = vsel %vm306_vm0, %v317_v21, %v318_v18  ;;  %v5450_v29 = vsel %vm306_vm0, %v322_v25, %v323_v26  ;;  %v328_v34 = vrot.slane %v5456_v31, 1  ;;  %v5478_v38 = vld [vmem:[%s5367_s26 + $0x78] sm:$0xff]  ;;  %v5481_v39 = vld [vmem:[%s5367_s26 + $0x80] sm:$0xff]  ;;  %v5497_v44 = vld [vmem:[%s5367_s26 + $0x88] sm:$0xf] }
  0x27   : > { %367 = vrot.lane.b32.xlu1 %v5393_v10, %s5242_s27  ;;  %v5470_v35 = vrot.slane %v5459_v32, 1  ;;  %v5474_v36 = vsel %vm306_vm0, %v323_v26, %v5453_v30  ;;  %v327_v37 = vrot.slane %v5462_v33, 1  ;;  %v332_v41 = vrot.slane %v5478_v38, 1  ;;  %v5510_v47 = vld [vmem:[%s5367_s26 + $0x98] sm:$0xff]  ;;  %v5513_v48 = vld [vmem:[%s5367_s26 + $0xa0] sm:$0xf] }
  0x28   : > { %359 = vrot.lane.b32.xlu0 %v311_v13, %s5242_s27  ;;  %v333_v42 = vrot.slane %v5481_v39, 1  ;;  %v5507_v46 = vrot.slane %v5497_v44, 1  ;;  %v5516_v49 = vld [vmem:[%s5367_s26 + $0x90] sm:$0xff]  ;;  %v338_v50 = vrot.slane %v5510_v47, 1  ;;  %v5524_v51 = vrot.slane %v5513_v48, 1  ;;  %v5532_v54 = vld [vmem:[%s5367_s26 + $0xa8] sm:$0xff] }
  0x29   : > { %v5489_v40 = vsel %vm306_vm0, %v328_v34, %v5470_v35  ;;  %v5494_v43 = vsel %vm306_vm0, %v327_v37, %v328_v34  ;;  %v337_v53 = vrot.slane %v5516_v49, 1  ;;  %v5535_v55 = vld [vmem:[%s5367_s26 + $0xb0] sm:$0xff]  ;;  %v342_v57 = vrot.slane %v5532_v54, 1  ;;  %v5551_v60 = vld [vmem:[%s5367_s26 + $0xb8] sm:$0xf]  ;;  %v5564_v63 = vld [vmem:[%s5367_s26 + $0xc8] sm:$0xff] }
  0x2a   : > { %v5504_v45 = vsel %vm306_vm0, %v332_v41, %v333_v42  ;;  %v5528_v52 = vsel %vm306_vm0, %v333_v42, %v5507_v46  ;;  %v5543_v56 = vsel %vm306_vm0, %v338_v50, %v5524_v51  ;;  %v343_v58 = vrot.slane %v5535_v55, 1  ;;  %v266_v3 = vld [vmem:[%s5367_s26 + $0xd0] sm:$0xf]  ;;  %v5568_v4 = vld [vmem:[%s5367_s26 + $0xc0] sm:$0xff]  ;;  %v267_v13 = vld [vmem:[%s5367_s26 + $0xd8] sm:$0xff] }
  0x2b   : > { %363 = vrot.lane.b32.xlu1 %v5412_v17, %s5242_s27  ;;  %v5548_v59 = vsel %vm306_vm0, %v337_v53, %v338_v50  ;;  %v5561_v62 = vrot.slane %v5551_v60, 1  ;;  %v348_v5 = vrot.slane %v5564_v63, 1  ;;  %v5575_v9 = vrot.slane %v266_v3, 1  ;;  %v268_v18 = vld [vmem:[%s5367_s26 + $0xe0] sm:$0xff]  ;;  %v269_v37 = vld [vmem:[%s5367_s26 + $0xe8] sm:$0xf] }
  0x2c   : > { %365 = vrot.lane.b32.xlu0 %v5420_v20, %s5242_s27  ;;  %v5558_v61 = vsel %vm306_vm0, %v342_v57, %v343_v58  ;;  %v347_v12 = vrot.slane %v5568_v4, 1  ;;  %v352_v25 = vrot.slane %v267_v13, 1  ;;  %v353_v26 = vrot.slane %v268_v18, 1  ;;  %v1842_v18 = vld [vmem:[%s7734_s1] sm:$0xff] }
  0x2d   : > { %7761 = vst [vmem:[#allocation5_spill] sm:$0xff] %v5575_v9  ;;  %v5579_v11 = vsel %vm306_vm0, %v343_v58, %v5561_v62  ;;  %v5590_v21 = vsel %vm306_vm0, %v348_v5, %v5575_v9  ;;  %v5603_v42 = vrot.slane %v269_v37, 1  ;;  %v448_v53 = vrot.slane %v5373_v1, 2 }
  0x2e   : > { %v5593_v34 = vsel %vm306_vm0, %v347_v12, %v348_v5  ;;  %v5601_v41 = vsel %vm306_vm0, %v352_v25, %v353_v26  ;;  %v449_v57 = vrot.slane %v5376_v2, 2  ;;  %v453_v58 = vrot.slane %v5385_v7, 2  ;;  %v1843_v25 = vld [vmem:[%s7734_s1 + $0x8] sm:$0xff] }
  0x2f   : > { %371 = vrot.lane.b32.xlu1 %v5435_v24, %s5242_s27  ;;  %7762 = vst [vmem:[#allocation6_spill] sm:$0xff] %v5601_v41  ;;  %7763 = vst [vmem:[#allocation7_spill] sm:$0xff] %v5603_v42  ;;  %v5611_v50 = vsel %vm306_vm0, %v353_v26, %v5603_v42  ;;  %v454_v3 = vrot.slane %v5388_v8, 2  ;;  %v451_v13 = vrot.slane %v5370_v0, 2  ;;  %v4668_v26 = vpack.c.bf16 %v1843_v25, %v1842_v18 }
  0x30   : > { %369 = vrot.lane.b32.xlu0 %v5440_v27, %s5242_s27  ;;  %7764 = vst [vmem:[#allocation8_spill] sm:$0xff] %v5611_v50  ;;  %v450_v5 = vsel %vm447_vm1, %v448_v53, %v449_v57  ;;  %v7739_v53 = vmov 0.0|0.0  }
  0x31   : > { %v455_v12 = vsel %vm447_vm1, %v453_v58, %v454_v3  ;;  %v452_v37 = vsel %vm447_vm1, %v449_v57, %v451_v13  ;;  %4667 = vmatprep.subr.bf16.mxu0 %v7739_v53  ;;  %4673 = vmatprep.subr.bf16.mxu1 %v7739_v53  ;;  %v1844_v58 = vld [vmem:[%s7734_s1 + $0x10] sm:$0xff]  ;;  %v458_v57 = vrot.slane %v5406_v16, 2 }
  0x32   : > { %4669 = vmatpush3.bf16.msra.mxu0 %v4668_v26  ;;  %v456_v26 = vrot.slane %v5382_v6, 2 }
  0x33   : > { %375 = vrot.lane.b32.xlu1 %v5450_v29, %s5242_s27  ;;  %4670 = vmatprep.subr.bf16.mxu0 %v7739_v53  ;;  %v7741_v53 = vmov 0.0  }
  0x34   : > { %373 = vrot.lane.b32.xlu0 %v5416_v19, %s5242_s27  ;;  %4563 = vmatprep.mubr.msk.f32.mxu0 %vm5251_vm3, %v7741_v53 }
  0x35   : > { %4664 = vmatprep.mubr.msk.f32.mxu1 %vm5251_vm3, %v7741_v53 }
  0x37   : > { %379 = vrot.lane.b32.xlu1 %v5453_v30, %s5242_s27 }
  0x38   : > { %377 = vrot.lane.b32.xlu0 %v5474_v36, %s5242_s27 }
  0x3b   : > { %383 = vrot.lane.b32.xlu1 %v5489_v40, %s5242_s27 }
  0x3c   : > { %381 = vrot.lane.b32.xlu0 %v5494_v43, %s5242_s27 }
  0x3f   : > { %387 = vrot.lane.b32.xlu1 %v5504_v45, %s5242_s27 }
  0x40   : > { %385 = vrot.lane.b32.xlu0 %v5470_v35, %s5242_s27 }
  0x43   : > { %391 = vrot.lane.b32.xlu1 %v5507_v46, %s5242_s27 }
  0x44   : > { %389 = vrot.lane.b32.xlu0 %v5528_v52, %s5242_s27 }
  0x47   : > { %395 = vrot.lane.b32.xlu1 %v5543_v56, %s5242_s27 }
  0x48   : > { %393 = vrot.lane.b32.xlu0 %v5548_v59, %s5242_s27 }
  0x4b   : > { %399 = vrot.lane.b32.xlu1 %v5558_v61, %s5242_s27 }
  0x4c   : > { %397 = vrot.lane.b32.xlu0 %v5524_v51, %s5242_s27 }
  0x4f   : > { %403 = vrot.lane.b32.xlu1 %v5561_v62, %s5242_s27 }
  0x50   : > { %401 = vrot.lane.b32.xlu0 %v5579_v11, %s5242_s27 }
  0x53   : > { %407 = vrot.lane.b32.xlu1 %v5590_v21, %s5242_s27 }
  0x54   : > { %405 = vrot.lane.b32.xlu0 %v5593_v34, %s5242_s27 }
  0x57   : > { %411 = vrot.lane.b32.xlu1 %v5601_v41, %s5242_s27 }
  0x58   : > { %409 = vrot.lane.b32.xlu0 %v5575_v9, %s5242_s27 }
  0x5b   : > { %415 = vrot.lane.b32.xlu1 %v5603_v42, %s5242_s27 }
  0x5c   : > { %413 = vrot.lane.b32.xlu0 %v5611_v50, %s5242_s27  ;;  %s5252_s27 = smov 32  }
  0x5f   : > { %591 = vrot.lane.b32.xlu1 %v5385_v7, %s5243_s30 }
  0x60   : > { %498 = vrot.lane.b32.xlu0 %v450_v5, %s5244_s8  ;;  %v459_v5 = vrot.slane %v5400_v14, 2 }
  0x62   : > { %v460_v25 = vsel %vm447_vm1, %v458_v57, %v459_v5 }
  0x63   : > { %781 = vrot.lane.b32.xlu1 %v455_v12, %s5245_s9 }
  0x64   : > { %686 = vrot.lane.b32.xlu0 %v5412_v17, %s5246_s15  ;;  %v1845_v17 = vld [vmem:[%s7734_s1 + $0x18] sm:$0xff] }
  0x65   : > { %v4671_v18 = vpack.c.bf16 %v1845_v17, %v1844_v58  ;;  %v457_v58 = vsel %vm447_vm1, %v454_v3, %v456_v26  ;;  %v5673_v17 = vrot.slane %v5403_v15, 2 }
  0x67   : > { %874 = vrot.lane.b32.xlu1 %v5406_v16, %s5248_s16  ;;  %4672 = vmatpush3.bf16.msra.mxu0 %v4671_v18  ;;  %v462_v57 = vsel %vm447_vm1, %v459_v5, %v5673_v17 }
  0x68   : > { %500 = vrot.lane.b32.xlu0 %v452_v37, %s5244_s8  ;;  %4561 = vmatprep.subr.mxu0 %v7741_v53  ;;  %v1846_v37 = vld [vmem:[%s7734_s1 + $0x20] sm:$0xf] }
  0x6b   : > { %969 = vrot.lane.b32.xlu1 %v5440_v27, %s5249_s13  ;;  %4562 = vmatpush3.msk.msra.mxu0 %vm2283_vm2, %v1846_v37 }
  0x6c   : > { %593 = vrot.lane.b32.xlu0 %v5388_v8, %s5243_s30 }
  0x6f   : > { %1064 = vrot.lane.b32.xlu1 %v460_v25, %s5252_s27 }
  0x70   : > { %688 = vrot.lane.b32.xlu0 %v5420_v20, %s5246_s15  ;;  %v463_v20 = vrot.slane %v5424_v22, 2 }
  0x73   : > { %876 = vrot.lane.b32.xlu1 %v5400_v14, %s5248_s16 }
  0x74   : > { %783 = vrot.lane.b32.xlu0 %v457_v58, %s5245_s9 }
  0x77   : > { %504 = vrot.lane.b32.xlu1 %v455_v12, %s5244_s8 }
  0x78   : > { %971 = vrot.lane.b32.xlu0 %v5435_v24, %s5249_s13 }
  0x7b   : > { %597 = vrot.lane.b32.xlu1 %v5406_v16, %s5243_s30 }
  0x7c   : > { %1066 = vrot.lane.b32.xlu0 %v462_v57, %s5252_s27 }
  0x7f   : > { %692 = vrot.lane.b32.xlu1 %v5440_v27, %s5246_s15  ;;  %v464_v27 = vrot.slane %v5427_v23, 2 }
  0x80   : > { %502 = vrot.lane.b32.xlu0 %v451_v13, %s5244_s8 }
  0x81   : > { %v5708_v3 = vsel %vm447_vm1, %v463_v20, %v464_v27  ;;  %v5741_v20 = vrot.slane %v5443_v28, 2 }
  0x83   : > { %787 = vrot.lane.b32.xlu1 %v460_v25, %s5245_s9  ;;  %v5752_v50 = vsel %vm447_vm1, %v464_v27, %v5741_v20 }
  0x84   : > { %595 = vrot.lane.b32.xlu0 %v5382_v6, %s5243_s30 }
  0x87   : > { %690 = vrot.lane.b32.xlu1 %v5393_v10, %s5246_s15 }
  0x88   : > { %506 = vrot.lane.b32.xlu0 %v457_v58, %s5244_s8 }
  0x8b   : > { %599 = vrot.lane.b32.xlu1 %v5400_v14, %s5243_s30 }
  0x8c   : > { %880 = vrot.lane.b32.xlu0 %v5424_v22, %s5248_s16 }
  0x8f   : > { %975 = vrot.lane.b32.xlu1 %v5450_v29, %s5249_s13 }
  0x90   : > { %785 = vrot.lane.b32.xlu0 %v456_v26, %s5245_s9 }
  0x93   : > { %878 = vrot.lane.b32.xlu1 %v5403_v15, %s5248_s16 }
  0x94   : > { %694 = vrot.lane.b32.xlu0 %v5435_v24, %s5246_s15 }
  0x95   : > { %v5705_v10 = vpop.permute.xlu1 %361 }
  0x96   : > { %v5710_v12 = vpop.permute.xlu0 %357 }
  0x97   : > { %789 = vrot.lane.b32.xlu1 %v462_v57, %s5245_s9 }
  0x98   : > { %1070 = vrot.lane.b32.xlu0 %v5708_v3, %s5252_s27 }
  0x99   : > { %v5715_v13 = vpop.permute.xlu1 %367 }
  0x9a   : > { %v5717_v5 = vpop.permute.xlu0 %359 }
  0x9b   : > { %510 = vrot.lane.b32.xlu1 %v460_v25, %s5244_s8 }
  0x9c   : > { %973 = vrot.lane.b32.xlu0 %v5416_v19, %s5249_s13 }
  0x9d   : > { %v5722_v24 = vpop.permute.xlu1 %363 }
  0x9e   : > { %v5724_v18 = vpop.permute.xlu0 %365 }
  0x9f   : > { %1068 = vrot.lane.b32.xlu1 %v5673_v17, %s5252_s27 }
  0xa0   : > { %882 = vrot.lane.b32.xlu0 %v5427_v23, %s5248_s16 }
  0xa1   : > { %v5730_v37 = vpop.permute.xlu1 %371 }
  0xa2   : > { %v5732_v58 = vpop.permute.xlu0 %369 }
  0xa3   : > { %977 = vrot.lane.b32.xlu1 %v5474_v36, %s5249_s13 }
  0xa4   : > { %603 = vrot.lane.b32.xlu0 %v5424_v22, %s5243_s30 }
  0xa5   : > { %v5738_v25 = vpop.permute.xlu1 %375 }
  0xa6   : > { %v5743_v53 = vpop.permute.xlu0 %373 }
  0xa7   : > { %698 = vrot.lane.b32.xlu1 %v5450_v29, %s5246_s15 }
  0xa8   : > { %508 = vrot.lane.b32.xlu0 %v456_v26, %s5244_s8 }
  0xa9   : > { %v5748_v42 = vpop.permute.xlu1 %379 }
  0xaa   : > { %7765 = vst [vmem:[#allocation9_spill] sm:$0xff] %v5748_v42  ;;  %v5754_v9 = vpop.permute.xlu0 %377  ;;  %v1436_v42 = vlaneseq }
  0xab   : > { %601 = vrot.lane.b32.xlu1 %v5403_v15, %s5243_s30 }
  0xac   : > { %1072 = vrot.lane.b32.xlu0 %v5752_v50, %s5252_s27 }
  0xad   : > { %v5760_v22 = vpop.permute.xlu1 %383 }
  0xae   : > { %7766 = vst [vmem:[#allocation10_spill] sm:$0xff] %v5760_v22  ;;  %v5762_v41 = vpop.permute.xlu0 %381 }
  0xaf   : > { %7767 = vst [vmem:[#allocation11_spill] sm:$0xff] %v5762_v41  ;;  %512 = vrot.lane.b32.xlu1 %v462_v57, %s5244_s8  ;;  %v468_v57 = vrot.slane %v5462_v33, 2  ;;  %v473_v41 = vrot.slane %v5478_v38, 2 }
  0xb0   : > { %793 = vrot.lane.b32.xlu0 %v5708_v3, %s5245_s9 }
  0xb1   : > { %v5767_v29 = vpop.permute.xlu1 %387 }
  0xb2   : > { %7768 = vst [vmem:[#allocation12_spill] sm:$0xff] %v5767_v29  ;;  %v5769_v26 = vpop.permute.xlu0 %385 }
  0xb3   : > { %7769 = vst [vmem:[#allocation13_spill] sm:$0xff] %v5769_v26  ;;  %886 = vrot.lane.b32.xlu1 %v5462_v33, %s5248_s16  ;;  %v469_v26 = vrot.slane %v5456_v31, 2 }
  0xb4   : > { %696 = vrot.lane.b32.xlu0 %v5416_v19, %s5246_s15 }
  0xb5   : > { %v5775_v15 = vpop.permute.xlu1 %391  ;;  %v5794_v19 = vsel %vm447_vm1, %v468_v57, %v469_v26 }
  0xb6   : > { %7770 = vst [vmem:[#allocation14_spill] sm:$0xff] %v5775_v15  ;;  %v5777_v27 = vpop.permute.xlu0 %389 }
  0xb7   : > { %7771 = vst [vmem:[#allocation15_spill] sm:$0xff] %v5777_v27  ;;  %791 = vrot.lane.b32.xlu1 %v5673_v17, %s5245_s9 }
  0xb8   : > { %605 = vrot.lane.b32.xlu0 %v5427_v23, %s5243_s30 }
  0xb9   : > { %v5785_v29 = vpop.permute.xlu1 %395 }
  0xba   : > { %7772 = vst [vmem:[#allocation16_spill] sm:$0xff] %v5785_v29  ;;  %v5787_v22 = vpop.permute.xlu0 %393 }
  0xbb   : > { %7773 = vst [vmem:[#allocation17_spill] sm:$0xff] %v5787_v22  ;;  %700 = vrot.lane.b32.xlu1 %v5474_v36, %s5246_s15 }
  0xbc   : > { %981 = vrot.lane.b32.xlu0 %v5494_v43, %s5249_s13 }
  0xbd   : > { %v5796_v15 = vpop.permute.xlu1 %399 }
  0xbe   : > { %7774 = vst [vmem:[#allocation18_spill] sm:$0xff] %v5796_v15  ;;  %v5798_v23 = vpop.permute.xlu0 %397 }
  0xbf   : > { %7775 = vst [vmem:[#allocation19_spill] sm:$0xff] %v5798_v23  ;;  %1076 = vrot.lane.b32.xlu1 %v5794_v19, %s5252_s27 }
  0xc0   : > { %884 = vrot.lane.b32.xlu0 %v5443_v28, %s5248_s16 }
  0xc1   : > { %v5804_v29 = vpop.permute.xlu1 %403 }
  0xc2   : > { %7776 = vst [vmem:[#allocation20_spill] sm:$0xff] %v5804_v29  ;;  %v5806_v22 = vpop.permute.xlu0 %401  ;;  %v5821_v29 = vrot.slane %v5459_v32, 2 }
  0xc3   : > { %7777 = vst [vmem:[#allocation21_spill] sm:$0xff] %v5806_v22  ;;  %979 = vrot.lane.b32.xlu1 %v5453_v30, %s5249_s13 }
  0xc4   : > { %795 = vrot.lane.b32.xlu0 %v5752_v50, %s5245_s9 }
  0xc5   : > { %v5812_v36 = vpop.permute.xlu1 %407 }
  0xc6   : > { %7778 = vst [vmem:[#allocation22_spill] sm:$0xff] %v5812_v36  ;;  %v5814_v57 = vpop.permute.xlu0 %405  ;;  %v5833_v36 = vsel %vm447_vm1, %v469_v26, %v5821_v29  ;;  %v1155_v26 = vsel %vm1154_vm4, %v5373_v1, %v5710_v12 }
  0xc7   : > { %7779 = vst [vmem:[#allocation23_spill] sm:$0xff] %v5814_v57  ;;  %1074 = vrot.lane.b32.xlu1 %v5741_v20, %s5252_s27 }
  0xc8   : > { %888 = vrot.lane.b32.xlu0 %v5456_v31, %s5248_s16 }
  0xc9   : > { %v5823_v22 = vpop.permute.xlu1 %411 }
  0xca   : > { %7780 = vst [vmem:[#allocation24_spill] sm:$0xff] %v5823_v22  ;;  %v5825_v15 = vpop.permute.xlu0 %409 }
  0xcb   : > { %7781 = vst [vmem:[#allocation25_spill] sm:$0xff] %v5825_v15  ;;  %514 = vrot.lane.b32.xlu1 %v5673_v17, %s5244_s8 }
  0xcc   : > { %983 = vrot.lane.b32.xlu0 %v5489_v40, %s5249_s13 }
  0xcd   : > { %v5835_v57 = vpop.permute.xlu1 %415 }
  0xce   : > { %7782 = vst [vmem:[#allocation26_spill] sm:$0xff] %v5835_v57  ;;  %v5837_v23 = vpop.permute.xlu0 %413 }
  0xcf   : > { %7783 = vst [vmem:[#allocation27_spill] sm:$0xff] %v5837_v23  ;;  %1078 = vrot.lane.b32.xlu1 %v5833_v36, %s5252_s27 }
  0xd0   : > { %516 = vrot.lane.b32.xlu0 %v5708_v3, %s5244_s8  ;;  %v5253_v3 = vmov 1983009808  }
  0xd1   : > { %v592_v15 = vpop.permute.xlu1 %591  ;;  %v1434_v27 = vunpack.c.l.s4 %v5253_v3 }
  0xd2   : > { %v499_v17 = vpop.permute.xlu0 %498 }
  0xd3   : > { %609 = vrot.lane.b32.xlu1 %v5462_v33, %s5243_s30  ;;  %v1186_v23 = vsel %vm1185_vm5, %v1155_v26, %v499_v17  ;;  %v1435_v17 = vunpack.c.0.s8 %v1434_v27  ;;  %v5859_v26 = vshrl.u32 %v1436_v42, 7 }
  0xd4   : > { %607 = vrot.lane.b32.xlu0 %v5443_v28, %s5243_s30  ;;  %v1217_v28 = vsel %vm7755_vm6, %v1186_v23, %v592_v15 }
  0xd5   : > { %v782_v57 = vpop.permute.xlu1 %781  ;;  %7784 = vst [vmem:[#allocation28_spill] sm:$0xff] %v5859_v26 }
  0xd6   : > { %v687_v22 = vpop.permute.xlu0 %686 }
  0xd7   : > { %704 = vrot.lane.b32.xlu1 %v5494_v43, %s5246_s15  ;;  %v1248_v1 = vsel %vm1247_vm7, %v1217_v28, %v687_v22  ;;  %v5867_v22 = vsub.s32 %v1435_v17, %v5859_v26 }
  0xd8   : > { %702 = vrot.lane.b32.xlu0 %v5453_v30, %s5246_s15  ;;  %v1279_v43 = vsel %vm1278_vm8, %v1248_v1, %v782_v57 }
  0xd9   : > { %v875_v33 = vpop.permute.xlu1 %874 }
  0xda   : > { %v501_v12 = vpop.permute.xlu0 %500  ;;  %v1310_v27 = vsel %vm7758_vm9, %v1279_v43, %v875_v33 }
  0xdb   : > { %799 = vrot.lane.b32.xlu1 %v5794_v19, %s5245_s9 }
  0xdc   : > { %797 = vrot.lane.b32.xlu0 %v5741_v20, %s5245_s9 }
  0xdd   : > { %v970_v30 = vpop.permute.xlu1 %969 }
  0xde   : > { %v594_v15 = vpop.permute.xlu0 %593  ;;  %v1341_v42 = vsel %vm7754_vm10, %v1310_v27, %v970_v30 }
  0xdf   : > { %890 = vrot.lane.b32.xlu1 %v5459_v32, %s5248_s16 }
  0xe0   : > { %518 = vrot.lane.b32.xlu0 %v5752_v50, %s5244_s8  ;;  %v1156_v50 = vsel %vm1154_vm4, %v5376_v2, %v5717_v5  ;;  %v474_v2 = vrot.slane %v5481_v39, 2 }
  0xe1   : > { %v1065_v23 = vpop.permute.xlu1 %1064  ;;  %v1187_v27 = vsel %vm1185_vm5, %v1156_v50, %v501_v12 }
  0xe2   : > { %v1372_v57 = vsel %vm7753_vm11, %v1341_v42, %v1065_v23  ;;  %v689_v3 = vpop.permute.xlu0 %688  ;;  %v5901_v50 = vsel %vm447_vm1, %v473_v41, %v474_v2 }
  0xe3   : > { %v1432_v28 = vcombine.high %v1372_v57, %v1372_v57  ;;  %v1439_v1 = vrot.slane %v1372_v57, %v5867_v22  ;;  %611 = vrot.lane.b32.xlu1 %v5456_v31, %s5243_s30  ;;  %v1218_v31 = vsel %vm7755_vm6, %v1187_v27, %v594_v15 }
  0xe4   : > { %892 = vrot.lane.b32.xlu0 %v5478_v38, %s5248_s16 }
  0xe5   : > { %v1446_v33 = vrot.slane %v1432_v28, %v5867_v22  ;;  %v1447_v17 = vcombine.high %v1439_v1, %v1439_v1  ;;  %v877_v43 = vpop.permute.xlu1 %876  ;;  %v1249_v28 = vsel %vm1247_vm7, %v1218_v31, %v689_v3 }
  0xe6   : > { %v784_v30 = vpop.permute.xlu0 %783 }
  0xe7   : > { %v1448_v42 = vcombine.high %v1446_v33, %v1446_v33  ;;  %v1854_v23 = vcombine.low %v1439_v1, %v1447_v17  ;;  %987 = vrot.lane.b32.xlu1 %v5504_v45, %s5249_s13  ;;  %v1280_v5 = vsel %vm1278_vm8, %v1249_v28, %v784_v30 }
  0xe8   : > { %985 = vrot.lane.b32.xlu0 %v5470_v35, %s5249_s13  ;;  %v1311_v15 = vsel %vm7758_vm9, %v1280_v5, %v877_v43  ;;  %v7785_v43 = vmov 0.0  }
  0xe9   : > { %v1855_v57 = vcombine.low %v1446_v33, %v1448_v42  ;;  %v505_v26 = vpop.permute.xlu1 %504  ;;  %v1862_v1 = vrot.slane %v1854_v23, %v5867_v22 }
  0xea   : > { %v972_v12 = vpop.permute.xlu0 %971 }
  0xeb   : > { %v1869_v17 = vrot.slane %v1855_v57, %v5867_v22  ;;  %1080 = vrot.lane.b32.xlu1 %v5821_v29, %s5252_s27  ;;  %v1342_v30 = vsel %vm7754_vm10, %v1311_v15, %v972_v12 }
  0xec   : > { %706 = vrot.lane.b32.xlu0 %v5489_v40, %s5246_s15 }
  0xed   : > { %v598_v3 = vpop.permute.xlu1 %597  ;;  %v1870_v33 = vcombine.low %v1862_v1, %v1869_v17 }
  0xee   : > { %v1067_v27 = vpop.permute.xlu0 %1066 }
  0xef   : > { %v1373_v42 = vsel %vm7753_vm11, %v1342_v30, %v1067_v27  ;;  %801 = vrot.lane.b32.xlu1 %v5833_v36, %s5245_s9  ;;  %4564 = vmatmul.mubr.msk.f32.vlgmr.msra.gmra.mrb[0].mxu0 %vm2236_vm12, %v1870_v33 }
  0xf0   : > { %v1449_v23 = vcombine.high %v1373_v42, %v1373_v42  ;;  %v1456_v40 = vrot.slane %v1373_v42, %v5867_v22  ;;  %1082 = vrot.lane.b32.xlu0 %v5901_v50, %s5252_s27  ;;  %4566 = vmatprep.mubr.msk.f32.mxu0 %vm5251_vm3, %v7785_v43 }
  0xf1   : > { %v693_v41 = vpop.permute.xlu1 %692 }
  0xf2   : > { %v1463_v31 = vrot.slane %v1449_v23, %v5867_v22  ;;  %v1464_v57 = vcombine.high %v1456_v40, %v1456_v40  ;;  %v503_v28 = vpop.permute.xlu0 %502 }
  0xf3   : > { %522 = vrot.lane.b32.xlu1 %v5794_v19, %s5244_s8 }
  0xf4   : > { %v1465_v5 = vcombine.high %v1463_v31, %v1463_v31  ;;  %v1871_v12 = vcombine.low %v1456_v40, %v1464_v57  ;;  %520 = vrot.lane.b32.xlu0 %v5741_v20, %s5244_s8  ;;  %v5934_v20 = vrot.slane %v5497_v44, 2  ;;  %v1158_v57 = vsel %vm1154_vm4, %v5385_v7, %v5722_v24 }
  0xf5   : > { %v788_v1 = vpop.permute.xlu1 %787 }
  0xf6   : > { %v1872_v17 = vcombine.low %v1463_v31, %v1465_v5  ;;  %v596_v15 = vpop.permute.xlu0 %595  ;;  %v1879_v33 = vrot.slane %v1871_v12, %v5867_v22 }
  0xf7   : > { %613 = vrot.lane.b32.xlu1 %v5459_v32, %s5243_s30 }
  0xf8   : > { %v1886_v30 = vrot.slane %v1872_v17, %v5867_v22  ;;  %894 = vrot.lane.b32.xlu0 %v5481_v39, %s5248_s16 }
  0xf9   : > { %v691_v27 = vpop.permute.xlu1 %690 }
  0xfa   : > { %v5924_v19 = vpop.permute.xlu0 %506  ;;  %v1887_v42 = vcombine.low %v1879_v33, %v1886_v30 }
  0xfb   : > { %989 = vrot.lane.b32.xlu1 %v5528_v52, %s5249_s13 }
  0xfc   : > { %615 = vrot.lane.b32.xlu0 %v5478_v38, %s5243_s30  ;;  %4567 = vmatmul.mubr.msk.f32.gmra.mrb[2].mxu0 %vm2236_vm12, %v1887_v42  ;;  %v5944_v38 = vsel %vm447_vm1, %v474_v2, %v5934_v20 }
  0xfd   : > { %v5931_v32 = vpop.permute.xlu1 %599  ;;  %4569 = vmatprep.mubr.msk.f32.mxu0 %vm5251_vm3, %v7785_v43 }
  0xfe   : > { %v881_v23 = vpop.permute.xlu0 %880 }
  0xff   : > { %710 = vrot.lane.b32.xlu1 %v5504_v45, %s5246_s15  ;;  %v1189_v45 = vsel %vm1185_vm5, %v1158_v57, %v505_v26 }
 0x100   : > { %708 = vrot.lane.b32.xlu0 %v5470_v35, %s5246_s15  ;;  %v1220_v35 = vsel %vm7755_vm6, %v1189_v45, %v598_v3  ;;  %v1157_v3 = vsel %vm1154_vm4, %v5370_v0, %v5705_v10 }
 0x101   : > { %v976_v40 = vpop.permute.xlu1 %975  ;;  %v1251_v2 = vsel %vm1247_vm7, %v1220_v35, %v693_v41  ;;  %v479_v35 = vrot.slane %v5510_v47, 2 }
 0x102   : > { %v786_v31 = vpop.permute.xlu0 %785  ;;  %v1282_v17 = vsel %vm1278_vm8, %v1251_v2, %v788_v1 }
 0x103   : > { %803 = vrot.lane.b32.xlu1 %v5821_v29, %s5245_s9  ;;  %v1313_v7 = vsel %vm7758_vm9, %v1282_v17, %v881_v23 }
 0x104   : > { %1084 = vrot.lane.b32.xlu0 %v5944_v38, %s5252_s27  ;;  %v1344_v33 = vsel %vm7754_vm10, %v1313_v7, %v976_v40 }
 0x105   : > { %v879_v5 = vpop.permute.xlu1 %878 }
 0x106   : > { %v695_v12 = vpop.permute.xlu0 %694 }
 0x107   : > { %524 = vrot.lane.b32.xlu1 %v5833_v36, %s5244_s8  ;;  %v1188_v36 = vsel %vm1185_vm5, %v1157_v3, %v503_v28 }
 0x108   : > { %805 = vrot.lane.b32.xlu0 %v5901_v50, %s5245_s9  ;;  %v1219_v42 = vsel %vm7755_vm6, %v1188_v36, %v596_v15  ;;  %v478_v15 = vrot.slane %v5516_v49, 2 }
 0x109   : > { %v790_v24 = vpop.permute.xlu1 %789  ;;  %v1250_v40 = vsel %vm1247_vm7, %v1219_v42, %v691_v27 }
 0x10a   : > { %v1071_v26 = vpop.permute.xlu0 %1070  ;;  %v1281_v10 = vsel %vm1278_vm8, %v1250_v40, %v786_v31 }
 0x10b   : > { %v1375_v41 = vsel %vm7753_vm11, %v1344_v33, %v1071_v26  ;;  %898 = vrot.lane.b32.xlu1 %v5516_v49, %s5248_s16  ;;  %v1312_v28 = vsel %vm7758_vm9, %v1281_v10, %v879_v5 }
 0x10c   : > { %v1473_v1 = vcombine.high %v1375_v41, %v1375_v41  ;;  %v1480_v30 = vrot.slane %v1375_v41, %v5867_v22  ;;  %896 = vrot.lane.b32.xlu0 %v5497_v44, %s5248_s16 }
 0x10d   : > { %v5974_v23 = vpop.permute.xlu1 %510 }
 0x10e   : > { %v974_v0 = vpop.permute.xlu0 %973  ;;  %v1487_v57 = vrot.slane %v1473_v1, %v5867_v22  ;;  %v1488_v45 = vcombine.high %v1480_v30, %v1480_v30 }
 0x10f   : > { %991 = vrot.lane.b32.xlu1 %v5507_v46, %s5249_s13  ;;  %v1343_v27 = vsel %vm7754_vm10, %v1312_v28, %v974_v0 }
 0x110   : > { %617 = vrot.lane.b32.xlu0 %v5481_v39, %s5243_s30  ;;  %v1889_v7 = vcombine.low %v1488_v45, %v1487_v57  ;;  %v5994_v39 = vsel %vm447_vm1, %v478_v15, %v479_v35 }
 0x111   : > { %v1069_v2 = vpop.permute.xlu1 %1068 }
 0x112   : > { %v1374_v31 = vsel %vm7753_vm11, %v1343_v27, %v1069_v2  ;;  %v883_v17 = vpop.permute.xlu0 %882  ;;  %v1903_v41 = vrot.slane %v1889_v7, %v5867_v22 }
 0x113   : > { %v1472_v33 = vrot.slane %v1374_v31, %v5867_v22  ;;  %712 = vrot.lane.b32.xlu1 %v5528_v52, %s5246_s15  ;;  %v1159_v52 = vsel %vm1154_vm4, %v5388_v8, %v5724_v18 }
 0x114   : > { %993 = vrot.lane.b32.xlu0 %v5548_v59, %s5249_s13  ;;  %v1190_v1 = vsel %vm1185_vm5, %v1159_v52, %v5924_v19 }
 0x115   : > { %v1888_v5 = vcombine.low %v1472_v33, %v1480_v30  ;;  %v978_v26 = vpop.permute.xlu1 %977  ;;  %v1221_v40 = vsel %vm7755_vm6, %v1190_v1, %v5931_v32  ;;  %v6020_v32 = vrot.slane %v5513_v48, 2  ;;  %v1161_v1 = vsel %vm1154_vm4, %v5406_v16, %v5732_v58 }
 0x116   : > { %v604_v3 = vpop.permute.xlu0 %603  ;;  %v1252_v10 = vsel %vm1247_vm7, %v1221_v40, %v695_v12 }
 0x117   : > { %v1896_v36 = vrot.slane %v1888_v5, %v5867_v22  ;;  %1088 = vrot.lane.b32.xlu1 %v5994_v39, %s5252_s27  ;;  %v1283_v8 = vsel %vm1278_vm8, %v1252_v10, %v790_v24  ;;  %v1489_v24 = vcombine.high %v1487_v57, %v1487_v57  ;;  %v6033_v31 = vsel %vm447_vm1, %v479_v35, %v6020_v32 }
 0x118   : > { %1086 = vrot.lane.b32.xlu0 %v5934_v20, %s5252_s27  ;;  %v1314_v18 = vsel %vm7758_vm9, %v1283_v8, %v883_v17 }
 0x119   : > { %v699_v30 = vpop.permute.xlu1 %698  ;;  %v1904_v42 = vcombine.low %v1896_v36, %v1903_v41  ;;  %v1345_v12 = vsel %vm7754_vm10, %v1314_v18, %v978_v26 }
 0x11a   : > { %v509_v0 = vpop.permute.xlu0 %508 }
 0x11b   : > { %900 = vrot.lane.b32.xlu1 %v5510_v47, %s5248_s16  ;;  %4570 = vmatmul.mubr.msk.f32.gmra.mrb[4].mxu0 %vm2236_vm12, %v1904_v42 }
 0x11c   : > { %807 = vrot.lane.b32.xlu0 %v5944_v38, %s5245_s9  ;;  %4572 = vmatprep.mubr.msk.f32.mxu0 %vm5251_vm3, %v7785_v43 }
 0x11d   : > { %v602_v19 = vpop.permute.xlu1 %601 }
 0x11e   : > { %v1073_v45 = vpop.permute.xlu0 %1072 }
 0x11f   : > { %v1376_v28 = vsel %vm7753_vm11, %v1345_v12, %v1073_v45  ;;  %528 = vrot.lane.b32.xlu1 %v5901_v50, %s5244_s8 }
 0x120   : > { %v1490_v15 = vcombine.high %v1376_v28, %v1376_v28  ;;  %v1497_v27 = vrot.slane %v1376_v28, %v5867_v22  ;;  %995 = vrot.lane.b32.xlu0 %v5543_v56, %s5249_s13 }
 0x121   : > { %v6029_v2 = vpop.permute.xlu1 %512 }
 0x122   : > { %v6036_v17 = vrot.slane %v1490_v15, %v5867_v22  ;;  %v1505_v7 = vcombine.high %v1497_v27, %v1497_v27  ;;  %v1905_v33 = vcombine.low %v1489_v24, %v1497_v27  ;;  %v794_v5 = vpop.permute.xlu0 %793  ;;  %v484_v27 = vrot.slane %v5535_v55, 2 }
 0x123   : > { %621 = vrot.lane.b32.xlu1 %v5516_v49, %s5243_s30 }
 0x124   : > { %v1906_v50 = vcombine.low %v1505_v7, %v6036_v17  ;;  %1090 = vrot.lane.b32.xlu0 %v6033_v31, %s5252_s27  ;;  %v1913_v26 = vrot.slane %v1905_v33, %v5867_v22 }
 0x125   : > { %v887_v57 = vpop.permute.xlu1 %886 }
 0x126   : > { %v1920_v35 = vrot.slane %v1906_v50, %v5867_v22  ;;  %v697_v41 = vpop.permute.xlu0 %696 }
 0x127   : > { %716 = vrot.lane.b32.xlu1 %v5548_v59, %s5246_s15  ;;  %v1192_v59 = vsel %vm1185_vm5, %v1161_v1, %v5974_v23 }
 0x128   : > { %526 = vrot.lane.b32.xlu0 %v5821_v29, %s5244_s8  ;;  %v1921_v36 = vcombine.low %v1913_v26, %v1920_v35  ;;  %v1223_v29 = vsel %vm7755_vm6, %v1192_v59, %v604_v3 }
 0x129   : > { %v792_v52 = vpop.permute.xlu1 %791  ;;  %v1254_v40 = vsel %vm1247_vm7, %v1223_v29, %v699_v30  ;;  %v1160_v30 = vsel %vm1154_vm4, %v5382_v6, %v5715_v13 }
 0x12a   : > { %4573 = vmatmul.mubr.msk.f32.gmra.mrb[6].mxu0 %vm2236_vm12, %v1921_v36  ;;  %v606_v49 = vpop.permute.xlu0 %605  ;;  %v1285_v16 = vsel %vm1278_vm8, %v1254_v40, %v794_v5  ;;  %v1162_v5 = vsel %vm1154_vm4, %v5400_v14, %v5730_v37 }
 0x12b   : > { %811 = vrot.lane.b32.xlu1 %v5994_v39, %s5245_s9  ;;  %4575 = vmatprep.mubr.msk.f32.mxu0 %vm5251_vm3, %v7785_v43  ;;  %v1316_v58 = vsel %vm7758_vm9, %v1285_v16, %v887_v57  ;;  %v1506_v57 = vcombine.high %v6036_v17, %v6036_v17  ;;  %v1193_v35 = vsel %vm1185_vm5, %v1162_v5, %v6029_v2 }
 0x12c   : > { %619 = vrot.lane.b32.xlu0 %v5497_v44, %s5243_s30 }
 0x12d   : > { %v701_v42 = vpop.permute.xlu1 %700 }
 0x12e   : > { %v982_v10 = vpop.permute.xlu0 %981 }
 0x12f   : > { %714 = vrot.lane.b32.xlu1 %v5507_v46, %s5246_s15  ;;  %v1347_v23 = vsel %vm7754_vm10, %v1316_v58, %v982_v10  ;;  %v1191_v46 = vsel %vm1185_vm5, %v1160_v30, %v509_v0 }
 0x130   : > { %530 = vrot.lane.b32.xlu0 %v5944_v38, %s5244_s8  ;;  %v1222_v38 = vsel %vm7755_vm6, %v1191_v46, %v602_v19  ;;  %v483_v19 = vrot.slane %v5532_v54, 2 }
 0x131   : > { %v1077_v8 = vpop.permute.xlu1 %1076  ;;  %v1253_v45 = vsel %vm1247_vm7, %v1222_v38, %v697_v41  ;;  %v1224_v41 = vsel %vm7755_vm6, %v1193_v35, %v606_v49 }
 0x132   : > { %v1378_v44 = vsel %vm7753_vm11, %v1347_v23, %v1077_v8  ;;  %v885_v3 = vpop.permute.xlu0 %884  ;;  %v1284_v24 = vsel %vm1278_vm8, %v1253_v45, %v792_v52  ;;  %v6107_v52 = vsel %vm447_vm1, %v483_v19, %v484_v27  ;;  %v1255_v17 = vsel %vm1247_vm7, %v1224_v41, %v701_v42 }
 0x133   : > { %v1521_v18 = vrot.slane %v1378_v44, %v5867_v22  ;;  %623 = vrot.lane.b32.xlu1 %v5510_v47, %s5243_s30  ;;  %v1315_v6 = vsel %vm7758_vm9, %v1284_v24, %v885_v3  ;;  %v1514_v47 = vcombine.high %v1378_v44, %v1378_v44  ;;  %v6140_v24 = vrot.slane %v5551_v60, 2 }
 0x134   : > { %904 = vrot.lane.b32.xlu0 %v5532_v54, %s5248_s16 }
 0x135   : > { %v980_v12 = vpop.permute.xlu1 %979  ;;  %v1529_v15 = vcombine.high %v1521_v18, %v1521_v18  ;;  %v1528_v36 = vrot.slane %v1514_v47, %v5867_v22 }
 0x136   : > { %v796_v28 = vpop.permute.xlu0 %795  ;;  %v1346_v13 = vsel %vm7754_vm10, %v1315_v6, %v980_v12 }
 0x137   : > { %999 = vrot.lane.b32.xlu1 %v5558_v61, %s5249_s13  ;;  %v1923_v50 = vcombine.low %v1521_v18, %v1529_v15  ;;  %v1286_v29 = vsel %vm1278_vm8, %v1255_v17, %v796_v28  ;;  %v1530_v49 = vcombine.high %v1528_v36, %v1528_v36 }
 0x138   : > { %809 = vrot.lane.b32.xlu0 %v5934_v20, %s5245_s9 }
 0x139   : > { %v1075_v0 = vpop.permute.xlu1 %1074  ;;  %v1937_v59 = vrot.slane %v1923_v50, %v5867_v22  ;;  %v1939_v8 = vcombine.low %v1528_v36, %v1530_v49 }
 0x13a   : > { %v1377_v7 = vsel %vm7753_vm11, %v1346_v13, %v1075_v0  ;;  %v889_v33 = vpop.permute.xlu0 %888  ;;  %v5115_v0 = vld [vmem:[%s5367_s26 + $0x40] sm:$0xf] }
 0x13b   : > { %v1513_v26 = vrot.slane %v1377_v7, %v5867_v22  ;;  %902 = vrot.lane.b32.xlu1 %v5513_v48, %s5248_s16  ;;  %v1163_v19 = vsel %vm1154_vm4, %v5115_v0, %v5743_v53  ;;  %v5116_v7 = vld [vmem:[%s5367_s26 + $0x48] sm:$0xff] }
 0x13c   : > { %718 = vrot.lane.b32.xlu0 %v5543_v56, %s5246_s15  ;;  %v1317_v56 = vsel %vm7758_vm9, %v1286_v29, %v889_v33  ;;  %v1164_v33 = vsel %vm1154_vm4, %v5116_v7, %v5738_v25 }
 0x13d   : > { %v1922_v14 = vcombine.low %v1506_v57, %v1513_v26  ;;  %v515_v37 = vpop.permute.xlu1 %514 }
 0x13e   : > { %v984_v1 = vpop.permute.xlu0 %983 }
 0x13f   : > { %v1930_v2 = vrot.slane %v1922_v14, %v5867_v22  ;;  %813 = vrot.lane.b32.xlu1 %v6033_v31, %s5245_s9  ;;  %v1348_v40 = vsel %vm7754_vm10, %v1317_v56, %v984_v1  ;;  %v488_v14 = vrot.slane %v5568_v4, 2  ;;  %v489_v1 = vrot.slane %v5564_v63, 2 }
 0x140   : > { %1094 = vrot.lane.b32.xlu0 %v6107_v52, %s5252_s27 }
 0x141   : > { %v1079_v10 = vpop.permute.xlu1 %1078  ;;  %v1938_v42 = vcombine.low %v1930_v2, %v1937_v59  ;;  %v6202_v63 = vsel %vm447_vm1, %v488_v14, %v489_v1 }
 0x142   : > { %v1379_v16 = vsel %vm7753_vm11, %v1348_v40, %v1079_v10  ;;  %v517_v58 = vpop.permute.xlu0 %516 }
 0x143   : > { %v1538_v23 = vrot.slane %v1379_v16, %v5867_v22  ;;  %534 = vrot.lane.b32.xlu1 %v5994_v39, %s5244_s8  ;;  %4576 = vmatmul.mubr.msk.f32.gmra.mrb[8].mxu0 %vm2236_vm12, %v1938_v42  ;;  %v1947_v39 = vrot.slane %v1939_v8, %v5867_v22  ;;  %v1195_v50 = vsel %vm1185_vm5, %v1164_v33, %v517_v58  ;;  %v5117_v8 = vld [vmem:[%s5367_s26 + $0xb8] sm:$0xf] }
 0x144   : > { %997 = vrot.lane.b32.xlu0 %v5524_v51, %s5249_s13  ;;  %4578 = vmatprep.mubr.msk.f32.mxu0 %vm5251_vm3, %v7785_v43 }
 0x145   : > { %v1546_v44 = vcombine.high %v1538_v23, %v1538_v23  ;;  %v610_v3 = vpop.permute.xlu1 %609 }
 0x146   : > { %v608_v30 = vpop.permute.xlu0 %607  ;;  %v1226_v26 = vsel %vm7755_vm6, %v1195_v50, %v610_v3 }
 0x147   : > { %v1940_v18 = vcombine.low %v1538_v23, %v1546_v44  ;;  %1092 = vrot.lane.b32.xlu1 %v6020_v32, %s5252_s27 }
 0x148   : > { %906 = vrot.lane.b32.xlu0 %v5535_v55, %s5248_s16 }
 0x149   : > { %v1954_v46 = vrot.slane %v1940_v18, %v5867_v22  ;;  %v705_v38 = vpop.permute.xlu1 %704 }
 0x14a   : > { %v703_v12 = vpop.permute.xlu0 %702  ;;  %v1257_v36 = vsel %vm1247_vm7, %v1226_v26, %v705_v38 }
 0x14b   : > { %1001 = vrot.lane.b32.xlu1 %v5579_v11, %s5249_s13  ;;  %v1955_v45 = vcombine.low %v1947_v39, %v1954_v46  ;;  %v5118_v46 = vld [vmem:[%s5367_s26 + $0x50] sm:$0xff] }
 0x14c   : > { %627 = vrot.lane.b32.xlu0 %v5532_v54, %s5243_s30  ;;  %v6150_v54 = vsel %vm447_vm1, %v484_v27, %v6140_v24  ;;  %v1165_v38 = vsel %vm1154_vm4, %v5118_v46, %v5754_v9 }
 0x14d   : > { %v800_v28 = vpop.permute.xlu1 %799  ;;  %4579 = vmatmul.mubr.msk.f32.gmra.mrb[10].mxu0 %vm2236_vm12, %v1955_v45  ;;  %v6229_v45 = vld [vmem:[%s5367_s26 + $0xc8] sm:$0xff] }
 0x14e   : > { %v798_v15 = vpop.permute.xlu0 %797  ;;  %4581 = vmatprep.mubr.msk.f32.mxu0 %vm5251_vm3, %v7785_v43 }
 0x14f   : > { %722 = vrot.lane.b32.xlu1 %v5558_v61, %s5246_s15 }
 0x150   : > { %532 = vrot.lane.b32.xlu0 %v5934_v20, %s5244_s8  ;;  %v1531_v20 = vcombine.high %v1379_v16, %v1379_v16 }
 0x151   : > { %v891_v6 = vpop.permute.xlu1 %890 }
 0x152   : > { %v6152_v47 = vpop.permute.xlu0 %518 }
 0x153   : > { %625 = vrot.lane.b32.xlu1 %v5513_v48, %s5243_s30  ;;  %v1194_v48 = vsel %vm1185_vm5, %v1163_v19, %v515_v37  ;;  %v1288_v37 = vsel %vm1278_vm8, %v1257_v36, %v800_v28  ;;  %v6234_v28 = vld [vmem:[%s5367_s26 + $0xd0] sm:$0xf] }
 0x154   : > { %1096 = vrot.lane.b32.xlu0 %v6150_v54, %s5252_s27  ;;  %v1225_v5 = vsel %vm7755_vm6, %v1194_v48, %v608_v30 }
 0x155   : > { %v6158_v60 = vpop.permute.xlu1 %611  ;;  %v1256_v53 = vsel %vm1247_vm7, %v1225_v5, %v703_v12 }
 0x156   : > { %v893_v61 = vpop.permute.xlu0 %892  ;;  %v1287_v35 = vsel %vm1278_vm8, %v1256_v53, %v798_v15  ;;  %v6237_v15 = vrot.slane %v6234_v28, 2 }
 0x157   : > { %536 = vrot.lane.b32.xlu1 %v6033_v31, %s5244_s8  ;;  %v1545_v31 = vrot.slane %v1531_v20, %v5867_v22  ;;  %v1318_v25 = vsel %vm7758_vm9, %v1287_v35, %v891_v6  ;;  %v1319_v59 = vsel %vm7758_vm9, %v1288_v37, %v893_v61  ;;  %v1196_v6 = vsel %vm1185_vm5, %v1165_v38, %v6152_v47  ;;  %v5121_v35 = vld [vmem:[%s5367_s26 + $0xc0] sm:$0xff] }
 0x158   : > { %817 = vrot.lane.b32.xlu0 %v6107_v52, %s5245_s9  ;;  %v1227_v20 = vsel %vm7755_vm6, %v1196_v6, %v6158_v60  ;;  %v6252_v47 = vsel %vm447_vm1, %v489_v1, %v6237_v15  ;;  %v7786_v1 = vld [vmem:[#allocation11_spill] sm:$0xff] }
 0x159   : > { %v988_v13 = vpop.permute.xlu1 %987 }
 0x15a   : > { %v986_v27 = vpop.permute.xlu0 %985  ;;  %v1350_v56 = vsel %vm7754_vm10, %v1319_v59, %v988_v13 }
 0x15b   : > { %910 = vrot.lane.b32.xlu1 %v5568_v4, %s5248_s16  ;;  %v1349_v17 = vsel %vm7754_vm10, %v1318_v25, %v986_v27 }
 0x15c   : > { %720 = vrot.lane.b32.xlu0 %v5524_v51, %s5246_s15  ;;  %v1547_v51 = vcombine.high %v1545_v31, %v1545_v31 }
 0x15d   : > { %v1081_v57 = vpop.permute.xlu1 %1080 }
 0x15e   : > { %v707_v41 = vpop.permute.xlu0 %706  ;;  %v1380_v29 = vsel %vm7753_vm11, %v1349_v17, %v1081_v57  ;;  %v1956_v40 = vcombine.low %v1545_v31, %v1547_v51  ;;  %v5122_v17 = vld [vmem:[%s5367_s26 + $0x60] sm:$0xff] }
 0x15f   : > { %815 = vrot.lane.b32.xlu1 %v6020_v32, %s5245_s9  ;;  %v1554_v10 = vrot.slane %v1380_v29, %v5867_v22  ;;  %v1258_v9 = vsel %vm1247_vm7, %v1227_v20, %v707_v41  ;;  %v1167_v59 = vsel %vm1154_vm4, %v5122_v17, %v7786_v1  ;;  %v5123_v29 = vld [vmem:[%s5367_s26 + $0x58] sm:$0xf] }
 0x160   : > { %629 = vrot.lane.b32.xlu0 %v5535_v55, %s5243_s30 }
 0x161   : > { %v802_v2 = vpop.permute.xlu1 %801 }
 0x162   : > { %v1083_v49 = vpop.permute.xlu0 %1082  ;;  %v1289_v0 = vsel %vm1278_vm8, %v1258_v9, %v802_v2  ;;  %v7787_v2 = vld [vmem:[#allocation9_spill] sm:$0xff]  ;;  %v6311_v9 = vld [vmem:[%s5367_s26 + $0xd8] sm:$0xff] }
 0x163   : > { %v1381_v4 = vsel %vm7753_vm11, %v1350_v56, %v1083_v49  ;;  %724 = vrot.lane.b32.xlu1 %v5579_v11, %s5246_s15  ;;  %v1964_v11 = vrot.slane %v1956_v40, %v5867_v22 }
 0x164   : > { %v1562_v55 = vrot.slane %v1381_v4, %v5867_v22  ;;  %1005 = vrot.lane.b32.xlu0 %v5593_v34, %s5249_s13  ;;  %v1555_v12 = vcombine.high %v1381_v4, %v1381_v4 }
 0x165   : > { %v6204_v42 = vpop.permute.xlu1 %522 }
 0x166   : > { %v1957_v16 = vcombine.low %v1554_v10, %v1562_v55  ;;  %v6206_v58 = vpop.permute.xlu0 %520  ;;  %v1569_v19 = vrot.slane %v1555_v12, %v5867_v22  ;;  %v1570_v27 = vcombine.high %v1562_v55, %v1562_v55 }
 0x167   : > { %1100 = vrot.lane.b32.xlu1 %v6202_v63, %s5252_s27 }
 0x168   : > { %v1971_v23 = vrot.slane %v1957_v16, %v5867_v22  ;;  %908 = vrot.lane.b32.xlu0 %v5117_v8, %s5248_s16  ;;  %v1973_v31 = vcombine.low %v1570_v27, %v1569_v19  ;;  %v1571_v5 = vcombine.high %v1569_v19, %v1569_v19 }
 0x169   : > { %v6214_v44 = vpop.permute.xlu1 %613 }
 0x16a   : > { %v895_v3 = vpop.permute.xlu0 %894  ;;  %v1972_v30 = vcombine.low %v1964_v11, %v1971_v23  ;;  %v1981_v41 = vrot.slane %v1973_v31, %v5867_v22 }
 0x16b   : > { %1003 = vrot.lane.b32.xlu1 %v5561_v62, %s5249_s13  ;;  %v1320_v60 = vsel %vm7758_vm9, %v1289_v0, %v895_v3 }
 0x16c   : > { %819 = vrot.lane.b32.xlu0 %v6150_v54, %s5245_s9  ;;  %4582 = vmatmul.mubr.msk.f32.gmra.mrb[12].mxu0 %vm2236_vm12, %v1972_v30 }
 0x16d   : > { %v990_v18 = vpop.permute.xlu1 %989  ;;  %4584 = vmatprep.mubr.msk.f32.mxu0 %vm5251_vm3, %v7785_v43 }
 0x16e   : > { %v616_v39 = vpop.permute.xlu0 %615  ;;  %v1351_v7 = vsel %vm7754_vm10, %v1320_v60, %v990_v18  ;;  %v5125_v60 = vld [vmem:[%s5367_s26 + $0x68] sm:$0xff] }
 0x16f   : > { %1098 = vrot.lane.b32.xlu1 %v6140_v24, %s5252_s27 }
 0x170   : > { %912 = vrot.lane.b32.xlu0 %v6229_v45, %s5248_s16 }
 0x171   : > { %v711_v61 = vpop.permute.xlu1 %710 }
 0x172   : > { %v709_v13 = vpop.permute.xlu0 %708 }
 0x173   : > { %538 = vrot.lane.b32.xlu1 %v6020_v32, %s5244_s8 }
 0x174   : > { %1007 = vrot.lane.b32.xlu0 %v5590_v21, %s5249_s13 }
 0x175   : > { %v804_v48 = vpop.permute.xlu1 %803 }
 0x176   : > { %v1085_v33 = vpop.permute.xlu0 %1084 }
 0x177   : > { %v1382_v32 = vsel %vm7753_vm11, %v1351_v7, %v1085_v33  ;;  %1102 = vrot.lane.b32.xlu1 %v6252_v47, %s5252_s27 }
 0x178   : > { %v1579_v50 = vrot.slane %v1382_v32, %v5867_v22  ;;  %540 = vrot.lane.b32.xlu0 %v6107_v52, %s5244_s8  ;;  %v1572_v56 = vcombine.high %v1382_v32, %v1382_v32 }
 0x179   : > { %v525_v53 = vpop.permute.xlu1 %524 }
 0x17a   : > { %v1974_v57 = vcombine.low %v1571_v5, %v1579_v50  ;;  %v806_v26 = vpop.permute.xlu0 %805 }
 0x17b   : > { %633 = vrot.lane.b32.xlu1 %v5121_v35, %s5243_s30 }
 0x17c   : > { %v1988_v36 = vrot.slane %v1974_v57, %v5867_v22  ;;  %631 = vrot.lane.b32.xlu0 %v5117_v8, %s5243_s30  ;;  %v1587_v8 = vcombine.high %v1579_v50, %v1579_v50  ;;  %v7789_v50 = vld [vmem:[#allocation6_spill] sm:$0xff] }
 0x17d   : > { %v899_v25 = vpop.permute.xlu1 %898 }
 0x17e   : > { %v897_v14 = vpop.permute.xlu0 %896  ;;  %v1989_v51 = vcombine.low %v1981_v41, %v1988_v36  ;;  %v7790_v41 = vld [vmem:[#allocation5_spill] sm:$0xff] }
 0x17f   : > { %728 = vrot.lane.b32.xlu1 %v5593_v34, %s5246_s15  ;;  %v1166_v34 = vsel %vm1154_vm4, %v5123_v29, %v7787_v2 }
 0x180   : > { %726 = vrot.lane.b32.xlu0 %v5561_v62, %s5246_s15  ;;  %4585 = vmatmul.mubr.msk.f32.gmra.mrb[14].mxu0 %vm2236_vm12, %v1989_v51  ;;  %v1198_v62 = vsel %vm1185_vm5, %v1167_v59, %v6204_v42  ;;  %v1197_v49 = vsel %vm1185_vm5, %v1166_v34, %v6206_v58  ;;  %v1586_v58 = vrot.slane %v1572_v56, %v5867_v22  ;;  %v6330_v51 = vld [vmem:[%s5367_s26 + $0xe0] sm:$0xff] }
 0x181   : > { %v992_v52 = vpop.permute.xlu1 %991  ;;  %4587 = vmatprep.mubr.msk.f32.mxu0 %vm5251_vm3, %v7785_v43  ;;  %v1229_v4 = vsel %vm7755_vm6, %v1198_v62, %v616_v39  ;;  %v1228_v10 = vsel %vm7755_vm6, %v1197_v49, %v6214_v44 }
 0x182   : > { %v618_v37 = vpop.permute.xlu0 %617  ;;  %v1260_v55 = vsel %vm1247_vm7, %v1229_v4, %v711_v61  ;;  %v1259_v11 = vsel %vm1247_vm7, %v1228_v10, %v709_v13  ;;  %v1588_v20 = vcombine.high %v1586_v58, %v1586_v58 }
 0x183   : > { %823 = vrot.lane.b32.xlu1 %v6202_v63, %s5245_s9  ;;  %v1291_v42 = vsel %vm1278_vm8, %v1260_v55, %v806_v26  ;;  %v1290_v23 = vsel %vm1278_vm8, %v1259_v11, %v804_v48  ;;  %v7788_v48 = vld [vmem:[#allocation10_spill] sm:$0xff] }
 0x184   : > { %821 = vrot.lane.b32.xlu0 %v6140_v24, %s5245_s9  ;;  %v1322_v3 = vsel %vm7758_vm9, %v1291_v42, %v899_v25  ;;  %v1321_v44 = vsel %vm7758_vm9, %v1290_v23, %v897_v14  ;;  %v1168_v7 = vsel %vm1154_vm4, %v5125_v60, %v7788_v48 }
 0x185   : > { %v713_v40 = vpop.permute.xlu1 %712  ;;  %v1352_v39 = vsel %vm7754_vm10, %v1321_v44, %v992_v52  ;;  %v1199_v32 = vsel %vm1185_vm5, %v1168_v7, %v525_v53  ;;  %v493_v53 = vrot.slane %v6311_v9, 2  ;;  %v494_v52 = vrot.slane %v6330_v51, 2 }
 0x186   : > { %v994_v16 = vpop.permute.xlu0 %993  ;;  %v1230_v26 = vsel %vm7755_vm6, %v1199_v32, %v618_v37 }
 0x187   : > { %914 = vrot.lane.b32.xlu1 %v6234_v28, %s5248_s16  ;;  %v1353_v30 = vsel %vm7754_vm10, %v1322_v3, %v994_v16  ;;  %v1261_v36 = vsel %vm1247_vm7, %v1230_v26, %v713_v40  ;;  %v6345_v62 = vsel %vm447_vm1, %v493_v53, %v494_v52  ;;  %v5129_v26 = vld [vmem:[%s5367_s26 + $0x70] sm:$0xf] }
 0x188   : > { %542 = vrot.lane.b32.xlu0 %v6150_v54, %s5244_s8  ;;  %v1990_v54 = vcombine.low %v1587_v8, %v1586_v58 }
 0x189   : > { %v1089_v18 = vpop.permute.xlu1 %1088 }
 0x18a   : > { %v1384_v46 = vsel %vm7753_vm11, %v1353_v30, %v1089_v18  ;;  %v1087_v38 = vpop.permute.xlu0 %1086  ;;  %v1998_v57 = vrot.slane %v1990_v54, %v5867_v22 }
 0x18b   : > { %v1596_v12 = vcombine.high %v1384_v46, %v1384_v46  ;;  %v1603_v6 = vrot.slane %v1384_v46, %v5867_v22  ;;  %v1383_v61 = vsel %vm7753_vm11, %v1352_v39, %v1087_v38  ;;  %635 = vrot.lane.b32.xlu1 %v6229_v45, %s5243_s30  ;;  %v6378_v38 = vld [vmem:[%s5367_s26 + $0xe8] sm:$0xf] }
 0x18c   : > { %v1595_v13 = vrot.slane %v1383_v61, %v5867_v22  ;;  %916 = vrot.lane.b32.xlu0 %v6311_v9, %s5248_s16 }
 0x18d   : > { %v1610_v0 = vrot.slane %v1596_v12, %v5867_v22  ;;  %v1611_v19 = vcombine.high %v1603_v6, %v1603_v6  ;;  %v901_v27 = vpop.permute.xlu1 %900  ;;  %v6381_v12 = vrot.slane %v6378_v38, 2 }
 0x18e   : > { %v1991_v33 = vcombine.low %v1588_v20, %v1595_v13  ;;  %v808_v45 = vpop.permute.xlu0 %807  ;;  %v5128_v13 = vld [vmem:[%s5367_s26 + $0x78] sm:$0xff] }
 0x18f   : > { %v1612_v31 = vcombine.high %v1610_v0, %v1610_v0  ;;  %v2007_v5 = vcombine.low %v1603_v6, %v1611_v19  ;;  %1011 = vrot.lane.b32.xlu1 %v7789_v50, %s5249_s13  ;;  %v1292_v17 = vsel %vm1278_vm8, %v1261_v36, %v808_v45  ;;  %v6391_v54 = vsel %vm447_vm1, %v494_v52, %v6381_v12  ;;  %v6409_v45 = vld [vmem:[%s5367_s26 + $0xf0] sm:$0xff] }
 0x190   : > { %v2005_v35 = vrot.slane %v1991_v33, %v5867_v22  ;;  %1009 = vrot.lane.b32.xlu0 %v7790_v41, %s5249_s13  ;;  %v1323_v2 = vsel %vm7758_vm9, %v1292_v17, %v901_v27  ;;  %v681_v52 = vrot.slane %v6409_v45, 1 }
 0x191   : > { %v2008_v25 = vcombine.low %v1610_v0, %v1612_v31  ;;  %v529_v14 = vpop.permute.xlu1 %528  ;;  %v2015_v37 = vrot.slane %v2007_v5, %v5867_v22 }
 0x192   : > { %v996_v1 = vpop.permute.xlu0 %995  ;;  %v2006_v59 = vcombine.low %v1998_v57, %v2005_v35  ;;  %v6414_v57 = vld [vmem:[%s5367_s26 + $0xf8] sm:$0xff]  ;;  %v7793_v35 = vld [vmem:[#allocation13_spill] sm:$0xff] }
 0x193   : > { %v2022_v29 = vrot.slane %v2008_v25, %v5867_v22  ;;  %1104 = vrot.lane.b32.xlu1 %v6237_v15, %s5252_s27  ;;  %v1354_v49 = vsel %vm7754_vm10, %v1323_v2, %v996_v1  ;;  %v682_v1 = vrot.slane %v6414_v57, 1 }
 0x194   : > { %730 = vrot.lane.b32.xlu0 %v5590_v21, %s5246_s15  ;;  %4588 = vmatmul.mubr.msk.f32.gmra.mrb[16].mxu0 %vm2236_vm12, %v2006_v59 }
 0x195   : > { %v622_v34 = vpop.permute.xlu1 %621  ;;  %4590 = vmatprep.mubr.msk.f32.mxu0 %vm5251_vm3, %v7785_v43  ;;  %v2023_v56 = vcombine.low %v2015_v37, %v2022_v29 }
 0x196   : > { %v1091_v4 = vpop.permute.xlu0 %1090 }
 0x197   : > { %v1385_v40 = vsel %vm7753_vm11, %v1354_v49, %v1091_v4  ;;  %825 = vrot.lane.b32.xlu1 %v6252_v47, %s5245_s9  ;;  %v776_v4 = vrot.slane %v6409_v45, 2 }
 0x198   : > { %v1613_v21 = vcombine.high %v1385_v40, %v1385_v40  ;;  %v1620_v10 = vrot.slane %v1385_v40, %v5867_v22  ;;  %1106 = vrot.lane.b32.xlu0 %v6345_v62, %s5252_s27  ;;  %4591 = vmatmul.mubr.msk.f32.gmra.mrb[18].mxu0 %vm2236_vm12, %v2023_v56  ;;  %v7794_v56 = vld [vmem:[#allocation7_spill] sm:$0xff]  ;;  %v777_v40 = vrot.slane %v6414_v57, 2 }
 0x199   : > { %v717_v55 = vpop.permute.xlu1 %716  ;;  %4593 = vmatprep.mubr.msk.f32.mxu0 %vm5251_vm3, %v7785_v43 }
 0x19a   : > { %v1627_v16 = vrot.slane %v1613_v21, %v5867_v22  ;;  %v1628_v11 = vcombine.high %v1620_v10, %v1620_v10  ;;  %v527_v42 = vpop.permute.xlu0 %526 }
 0x19b   : > { %546 = vrot.lane.b32.xlu1 %v6202_v63, %s5244_s8 }
 0x19c   : > { %v1629_v23 = vcombine.high %v1627_v16, %v1627_v16  ;;  %v2024_v58 = vcombine.low %v1620_v10, %v1628_v11  ;;  %544 = vrot.lane.b32.xlu0 %v6140_v24, %s5244_s8  ;;  %v7791_v24 = vld [vmem:[#allocation8_spill] sm:$0xff] }
 0x19d   : > { %v812_v8 = vpop.permute.xlu1 %811 }
 0x19e   : > { %v2025_v3 = vcombine.low %v1627_v16, %v1629_v23  ;;  %v620_v44 = vpop.permute.xlu0 %619  ;;  %v2032_v30 = vrot.slane %v2024_v58, %v5867_v22 }
 0x19f   : > { %637 = vrot.lane.b32.xlu1 %v6234_v28, %s5243_s30 }
 0x1a0   : > { %v2039_v18 = vrot.slane %v2025_v3, %v5867_v22  ;;  %918 = vrot.lane.b32.xlu0 %v6330_v51, %s5248_s16 }
 0x1a1   : > { %v715_v63 = vpop.permute.xlu1 %714 }
 0x1a2   : > { %v6368_v39 = vpop.permute.xlu0 %530  ;;  %v2040_v46 = vcombine.low %v2032_v30, %v2039_v18 }
 0x1a3   : > { %1013 = vrot.lane.b32.xlu1 %v7791_v24, %s5249_s13 }
 0x1a4   : > { %639 = vrot.lane.b32.xlu0 %v6311_v9, %s5243_s30  ;;  %4594 = vmatmul.mubr.msk.f32.gmra.mrb[20].mxu0 %vm2236_vm12, %v2040_v46  ;;  %v7792_v9 = vld [vmem:[#allocation12_spill] sm:$0xff]  ;;  %v7795_v46 = vld [vmem:[#allocation15_spill] sm:$0xff] }
 0x1a5   : > { %v6375_v28 = vpop.permute.xlu1 %623  ;;  %4596 = vmatprep.mubr.msk.f32.mxu0 %vm5251_vm3, %v7785_v43  ;;  %v1170_v0 = vsel %vm1154_vm4, %v5128_v13, %v7792_v9 }
 0x1a6   : > { %v905_v6 = vpop.permute.xlu0 %904  ;;  %v1201_v19 = vsel %vm1185_vm5, %v1170_v0, %v529_v14 }
 0x1a7   : > { %734 = vrot.lane.b32.xlu1 %v7789_v50, %s5246_s15  ;;  %v1232_v60 = vsel %vm7755_vm6, %v1201_v19, %v622_v34 }
 0x1a8   : > { %732 = vrot.lane.b32.xlu0 %v7790_v41, %s5246_s15  ;;  %v1263_v7 = vsel %vm1247_vm7, %v1232_v60, %v717_v55  ;;  %v1169_v41 = vsel %vm1154_vm4, %v5129_v26, %v7793_v35  ;;  %v683_v55 = vsel %vm306_vm0, %v681_v52, %v682_v1 }
 0x1a9   : > { %v1000_v61 = vpop.permute.xlu1 %999  ;;  %v1294_v33 = vsel %vm1278_vm8, %v1263_v7, %v812_v8  ;;  %v1200_v36 = vsel %vm1185_vm5, %v1169_v41, %v527_v42 }
 0x1aa   : > { %v810_v20 = vpop.permute.xlu0 %809  ;;  %v1325_v32 = vsel %vm7758_vm9, %v1294_v33, %v905_v6  ;;  %v1231_v53 = vsel %vm7755_vm6, %v1200_v36, %v620_v44  ;;  %v6452_v44 = vld [vmem:[%s5367_s26 + $0x100] sm:$0xf] }
 0x1ab   : > { %827 = vrot.lane.b32.xlu1 %v6237_v15, %s5245_s9  ;;  %v1356_v5 = vsel %vm7754_vm10, %v1325_v32, %v1000_v61  ;;  %v1262_v59 = vsel %vm1247_vm7, %v1231_v53, %v715_v63  ;;  %v5130_v63 = vld [vmem:[%s5367_s26 + $0x80] sm:$0xff]  ;;  %v6465_v13 = vrot.slane %v6452_v44, 1  ;;  %v6488_v33 = vrot.slane %v6452_v44, 2 }
 0x1ac   : > { %1108 = vrot.lane.b32.xlu0 %v6391_v54, %s5252_s27  ;;  %v1293_v29 = vsel %vm1278_vm8, %v1262_v59, %v810_v20 }
 0x1ad   : > { %v903_v27 = vpop.permute.xlu1 %902 }
 0x1ae   : > { %v719_v48 = vpop.permute.xlu0 %718  ;;  %v1324_v49 = vsel %vm7758_vm9, %v1293_v29, %v903_v27 }
 0x1af   : > { %548 = vrot.lane.b32.xlu1 %v6252_v47, %s5244_s8 }
 0x1b0   : > { %829 = vrot.lane.b32.xlu0 %v6345_v62, %s5245_s9 }
 0x1b1   : > { %v814_v31 = vpop.permute.xlu1 %813 }
 0x1b2   : > { %v1095_v50 = vpop.permute.xlu0 %1094 }
 0x1b3   : > { %v1387_v47 = vsel %vm7753_vm11, %v1356_v5, %v1095_v50  ;;  %922 = vrot.lane.b32.xlu1 %v6409_v45, %s5248_s16 }
 0x1b4   : > { %v1637_v25 = vcombine.high %v1387_v47, %v1387_v47  ;;  %v1644_v14 = vrot.slane %v1387_v47, %v5867_v22  ;;  %920 = vrot.lane.b32.xlu0 %v6378_v38, %s5248_s16  ;;  %v6501_v47 = vsel %vm447_vm1, %v777_v40, %v6488_v33 }
 0x1b5   : > { %v6428_v17 = vpop.permute.xlu1 %534 }
 0x1b6   : > { %v998_v37 = vpop.permute.xlu0 %997  ;;  %v1651_v2 = vrot.slane %v1637_v25, %v5867_v22  ;;  %v1652_v34 = vcombine.high %v1644_v14, %v1644_v14 }
 0x1b7   : > { %1015 = vrot.lane.b32.xlu1 %v7794_v56, %s5249_s13  ;;  %v1355_v21 = vsel %vm7754_vm10, %v1324_v49, %v998_v37 }
 0x1b8   : > { %641 = vrot.lane.b32.xlu0 %v6330_v51, %s5243_s30  ;;  %v2042_v42 = vcombine.low %v1652_v34, %v1651_v2  ;;  %v778_v51 = vsel %vm447_vm1, %v776_v4, %v777_v40  ;;  %v1653_v35 = vcombine.high %v1651_v2, %v1651_v2  ;;  %v5131_v4 = vld [vmem:[%s5367_s26 + $0x90] sm:$0xff] }
 0x1b9   : > { %v1093_v10 = vpop.permute.xlu1 %1092  ;;  %v7796_v40 = vld [vmem:[#allocation17_spill] sm:$0xff] }
 0x1ba   : > { %v1386_v16 = vsel %vm7753_vm11, %v1355_v21, %v1093_v10  ;;  %v907_v11 = vpop.permute.xlu0 %906  ;;  %v2056_v30 = vrot.slane %v2042_v42, %v5867_v22  ;;  %v1173_v21 = vsel %vm1154_vm4, %v5131_v4, %v7796_v40  ;;  %v273_v42 = vld [vmem:[%s5367_s26 + $0x108] sm:$0xff] }
 0x1bb   : > { %v1636_v23 = vrot.slane %v1386_v16, %v5867_v22  ;;  %736 = vrot.lane.b32.xlu1 %v7791_v24, %s5246_s15  ;;  %v1171_v24 = vsel %vm1154_vm4, %v5130_v63, %v7795_v46  ;;  %v1204_v10 = vsel %vm1185_vm5, %v1173_v21, %v6428_v17 }
 0x1bc   : > { %1017 = vrot.lane.b32.xlu0 %v683_v55, %s5249_s13  ;;  %v1202_v6 = vsel %vm1185_vm5, %v1171_v24, %v6368_v39 }
 0x1bd   : > { %v2041_v58 = vcombine.low %v1636_v23, %v1644_v14  ;;  %v1002_v8 = vpop.permute.xlu1 %1001  ;;  %v1233_v9 = vsel %vm7755_vm6, %v1202_v6, %v6375_v28  ;;  %v6541_v23 = vld [vmem:[%s5367_s26 + $0x110] sm:$0xff] }
 0x1be   : > { %v6449_v3 = vpop.permute.xlu0 %627  ;;  %v1264_v27 = vsel %vm1247_vm7, %v1233_v9, %v719_v48  ;;  %v6485_v48 = vsel %vm306_vm0, %v682_v1, %v6465_v13 }
 0x1bf   : > { %v2049_v18 = vrot.slane %v2041_v58, %v5867_v22  ;;  %1112 = vrot.lane.b32.xlu1 %v778_v51, %s5252_s27  ;;  %v1295_v39 = vsel %vm1278_vm8, %v1264_v27, %v814_v31 }
 0x1c0   : > { %1110 = vrot.lane.b32.xlu0 %v6381_v12, %s5252_s27  ;;  %v1326_v28 = vsel %vm7758_vm9, %v1295_v39, %v907_v11 }
 0x1c1   : > { %v723_v61 = vpop.permute.xlu1 %722  ;;  %v2057_v20 = vcombine.low %v2049_v18, %v2056_v30  ;;  %v1357_v32 = vsel %vm7754_vm10, %v1326_v28, %v1002_v8  ;;  %v965_v30 = vrot.slane %v6541_v23, 1 }
 0x1c2   : > { %v2353_v0 = vpop.f32.mrb[0].mxu0  ;;  %v6469_v19 = vpop.permute.xlu0 %532 }
 0x1c3   : > { %924 = vrot.lane.b32.xlu1 %v6414_v57, %s5248_s16  ;;  %v4565_v60 = vpop.f32.mrb[1].mxu0  ;;  %4597 = vmatmul.mubr.msk.f32.gmra.mrb[22].mxu0 %vm2236_vm12, %v2057_v20  ;;  %v7797_v20 = vld [vmem:[#allocation14_spill] sm:$0xff] }
 0x1c4   : > { %831 = vrot.lane.b32.xlu0 %v6391_v54, %s5245_s9  ;;  %4599 = vmatprep.mubr.msk.f32.mxu0 %vm5251_vm3, %v7785_v43 }
 0x1c5   : > { %v6481_v7 = vpop.permute.xlu1 %625 }
 0x1c6   : > { %v1097_v31 = vpop.permute.xlu0 %1096 }
 0x1c7   : > { %v1388_v5 = vsel %vm7753_vm11, %v1357_v32, %v1097_v31  ;;  %552 = vrot.lane.b32.xlu1 %v6345_v62, %s5244_s8 }
 0x1c8   : > { %v1654_v50 = vcombine.high %v1388_v5, %v1388_v5  ;;  %v1661_v26 = vrot.slane %v1388_v5, %v5867_v22  ;;  %1019 = vrot.lane.b32.xlu0 %v6485_v48, %s5249_s13 }
 0x1c9   : > { %v6497_v41 = vpop.permute.xlu1 %536 }
 0x1ca   : > { %v6504_v36 = vrot.slane %v1654_v50, %v5867_v22  ;;  %v1669_v25 = vcombine.high %v1661_v26, %v1661_v26  ;;  %v818_v14 = vpop.permute.xlu0 %817  ;;  %v2058_v53 = vcombine.low %v1653_v35, %v1661_v26 }
 0x1cb   : > { %645 = vrot.lane.b32.xlu1 %v6409_v45, %s5243_s30 }
 0x1cc   : > { %v2059_v62 = vcombine.low %v1669_v25, %v6504_v36  ;;  %1114 = vrot.lane.b32.xlu0 %v6501_v47, %s5252_s27  ;;  %v2066_v1 = vrot.slane %v2058_v53, %v5867_v22  ;;  %v1060_v53 = vrot.slane %v6541_v23, 2 }
 0x1cd   : > { %v911_v52 = vpop.permute.xlu1 %910 }
 0x1ce   : > { %v2073_v59 = vrot.slane %v2059_v62, %v5867_v22  ;;  %v721_v37 = vpop.permute.xlu0 %720 }
 0x1cf   : > { %740 = vrot.lane.b32.xlu1 %v683_v55, %s5246_s15  ;;  %v2358_v29 = vpop.f32.mrb[2].mxu0  ;;  %v1235_v55 = vsel %vm7755_vm6, %v1204_v10, %v6449_v3  ;;  %v964_v3 = vrot.slane %v273_v42, 1 }
 0x1d0   : > { %v4568_v2 = vpop.f32.mrb[3].mxu0  ;;  %550 = vrot.lane.b32.xlu0 %v6237_v15, %s5244_s8  ;;  %v2074_v45 = vcombine.low %v2066_v1, %v2073_v59  ;;  %v6530_v15 = vld [vmem:[%s7735_s2] ss:$0 sm:$0xff]  ;;  %v1266_v17 = vsel %vm1247_vm7, %v1235_v55, %v723_v61  ;;  %v5132_v61 = vld [vmem:[%s5367_s26 + $0x88] sm:$0xf]  ;;  %v5133_v59 = vld [vmem:[%s5367_s26 + $0x98] sm:$0xff] }
 0x1d1   : > { %v816_v34 = vpop.permute.xlu1 %815  ;;  %v2359_v16 = vadd.f32 %v6530_v15, %v2358_v29  ;;  %v2354_v58 = vadd.f32 %v6530_v15, %v2353_v0  ;;  %v1297_v8 = vsel %vm1278_vm8, %v1266_v17, %v818_v14  ;;  %v966_v27 = vsel %vm306_vm0, %v964_v3, %v965_v30 }
 0x1d2   : > { %4600 = vmatmul.mubr.msk.f32.gmra.mrb[24].mxu0 %vm2236_vm12, %v2074_v45  ;;  %v6517_v49 = vpop.permute.xlu0 %629  ;;  %v1670_v45 = vcombine.high %v6504_v36, %v6504_v36 }
 0x1d3   : > { %835 = vrot.lane.b32.xlu1 %v778_v51, %s5245_s9  ;;  %4602 = vmatprep.mubr.msk.f32.mxu0 %vm5251_vm3, %v7785_v43  ;;  %v2491_v18 = vmul.f32 0.2, %v2359_v16  ;;  %vm2468_vm13 = vcmp.ge.f32.partialorder %v2359_v16, 0.0  ;;  %v2490_v9 = vmul.f32 0.2, %v2354_v58  ;;  %vm2467_vm14 = vcmp.ge.f32.partialorder %v2354_v58, 0.0 }
 0x1d4   : > { %643 = vrot.lane.b32.xlu0 %v6378_v38, %s5243_s30  ;;  %v1328_v38 = vsel %vm7758_vm9, %v1297_v8, %v911_v52 }
 0x1d5   : > { %v6537_v11 = vpop.permute.xlu1 %724  ;;  %v2514_v39 = vsel %vm2468_vm13, %v2359_v16, %v2491_v18 }
 0x1d6   : > { %v1006_v51 = vpop.permute.xlu0 %1005 }
 0x1d7   : > { %738 = vrot.lane.b32.xlu1 %v7794_v56, %s5246_s15  ;;  %v1359_v63 = vsel %vm7754_vm10, %v1328_v38, %v1006_v51  ;;  %v1172_v56 = vsel %vm1154_vm4, %v5132_v61, %v7797_v20 }
 0x1d8   : > { %554 = vrot.lane.b32.xlu0 %v6391_v54, %s5244_s8  ;;  %v1203_v54 = vsel %vm1185_vm5, %v1172_v56, %v6469_v19  ;;  %v2576_v19 = vcombine.high %v2514_v39, %v2514_v39 }
 0x1d9   : > { %v1101_v46 = vpop.permute.xlu1 %1100  ;;  %v1234_v60 = vsel %vm7755_vm6, %v1203_v54, %v6481_v7  ;;  %v1059_v7 = vrot.slane %v273_v42, 2 }
 0x1da   : > { %v1390_v24 = vsel %vm7753_vm11, %v1359_v63, %v1101_v46  ;;  %v909_v6 = vpop.permute.xlu0 %908  ;;  %v1265_v32 = vsel %vm1247_vm7, %v1234_v60, %v721_v37  ;;  %v7798_v37 = vld [vmem:[#allocation16_spill] sm:$0xff]  ;;  %v2590_v40 = vrot.slane %v2576_v19, %v5867_v22 }
 0x1db   : > { %v1685_v0 = vrot.slane %v1390_v24, %v5867_v22  ;;  %647 = vrot.lane.b32.xlu1 %v6414_v57, %s5243_s30  ;;  %v2513_v57 = vsel %vm2467_vm14, %v2354_v58, %v2490_v9  ;;  %v1296_v5 = vsel %vm1278_vm8, %v1265_v32, %v816_v34  ;;  %v1678_v35 = vcombine.high %v1390_v24, %v1390_v24 }
 0x1dc   : > { %928 = vrot.lane.b32.xlu0 %v273_v42, %s5248_s16  ;;  %v1327_v26 = vsel %vm7758_vm9, %v1296_v5, %v909_v6  ;;  %v2559_v62 = vcombine.high %v2513_v57, %v2513_v57  ;;  %v1174_v29 = vsel %vm1154_vm4, %v5133_v59, %v7798_v37  ;;  %v1061_v16 = vsel %vm447_vm1, %v1059_v7, %v1060_v53  ;;  %v6600_v42 = vld [vmem:[%s5367_s26 + $0x118] sm:$0xf]  ;;  %v7799_v5 = vld [vmem:[#allocation28_spill] sm:$0xff] }
 0x1dd   : > { %v1004_v28 = vpop.permute.xlu1 %1003  ;;  %v1693_v50 = vcombine.high %v1685_v0, %v1685_v0  ;;  %v1205_v4 = vsel %vm1185_vm5, %v1174_v29, %v6497_v41  ;;  %v1692_v10 = vrot.slane %v1678_v35, %v5867_v22  ;;  %v2566_v38 = vrot.slane %v2513_v57, %v5867_v22 }
 0x1de   : > { %v820_v31 = vpop.permute.xlu0 %819  ;;  %v1358_v25 = vsel %vm7754_vm10, %v1327_v26, %v1004_v28  ;;  %v1236_v21 = vsel %vm7755_vm6, %v1205_v4, %v6517_v49  ;;  %v2573_v41 = vrot.slane %v2559_v62, %v5867_v22  ;;  %v2583_v49 = vrot.slane %v2514_v39, %v5867_v22 }
 0x1df   : > { %1023 = vrot.lane.b32.xlu1 %v966_v27, %s5249_s13  ;;  %v2076_v2 = vcombine.low %v1685_v0, %v1693_v50  ;;  %v2592_v3 = vcombine.high %v2590_v40, %v2590_v40  ;;  %v1694_v63 = vcombine.high %v1692_v10, %v1692_v10  ;;  %v6626_v0 = vstv %s4485_s17 }
 0x1e0   : > { %833 = vrot.lane.b32.xlu0 %v6381_v12, %s5245_s9  ;;  %v2591_v56 = vcombine.high %v2583_v49, %v2583_v49  ;;  %v2574_v54 = vcombine.high %v2566_v38, %v2566_v38  ;;  %v1062_v39 = vrot.slane %v6600_v42, 2  ;;  %v6641_v50 = vadd.s32 16, %v7799_v5 }
 0x1e1   : > { %v1099_v14 = vpop.permute.xlu1 %1098  ;;  %v2090_v51 = vrot.slane %v2076_v2, %v5867_v22  ;;  %v3130_v27 = vcombine.low %v2590_v40, %v2592_v3  ;;  %v2092_v28 = vcombine.low %v1692_v10, %v1694_v63  ;;  %vm2956_vm15 = vcmp.ge.s32.totalorder %v6626_v0, 0 }
 0x1e2   : > { %v1389_v52 = vsel %vm7753_vm11, %v1358_v25, %v1099_v14  ;;  %v913_v1 = vpop.permute.xlu0 %912  ;;  %v3129_v35 = vcombine.low %v2583_v49, %v2591_v56  ;;  %v3112_v14 = vcombine.low %v2566_v38, %v2574_v54  ;;  %vm2966_vm2 = vcmp.lt.s32.totalorder %v6626_v0, 16 }
 0x1e3   : > { %v1677_v34 = vrot.slane %v1389_v52, %v5867_v22  ;;  %926 = vrot.lane.b32.xlu1 %v6452_v44, %s5248_s16  ;;  %v3144_v62 = vrot.slane %v3130_v27, %v5867_v22  ;;  %v1063_v52 = vsel %vm447_vm1, %v1060_v53, %v1062_v39  ;;  %vm3021_vm14 = vcmp.le.s32.totalorder %v6641_v50, 16 }
 0x1e4   : > { %742 = vrot.lane.b32.xlu0 %v6485_v48, %s5246_s15  ;;  %v1267_v48 = vsel %vm1247_vm7, %v1236_v21, %v6537_v11  ;;  %v967_v11 = vrot.slane %v6600_v42, 1  ;;  %v3120_v21 = vrot.slane %v3112_v14, %v5867_v22 }
 0x1e5   : > { %v2075_v55 = vcombine.low %v1670_v45, %v1677_v34  ;;  %v6593_v36 = vpop.permute.xlu1 %538  ;;  %v1298_v58 = vsel %vm1278_vm8, %v1267_v48, %v820_v31  ;;  %v3137_v34 = vrot.slane %v3129_v35, %v5867_v22  ;;  %v5134_v35 = vld [vmem:[%s5367_s26 + $0xa0] sm:$0xf] }
 0x1e6   : > { %v1008_v17 = vpop.permute.xlu0 %1007  ;;  %v1329_v18 = vsel %vm7758_vm9, %v1298_v58, %v913_v1  ;;  %v968_v60 = vsel %vm306_vm0, %v965_v30, %v967_v11  ;;  %v2100_v1 = vrot.slane %v2092_v28, %v5867_v22 }
 0x1e7   : > { %v2083_v8 = vrot.slane %v2075_v55, %v5867_v22  ;;  %837 = vrot.lane.b32.xlu1 %v6501_v47, %s5245_s9  ;;  %v1360_v46 = vsel %vm7754_vm10, %v1329_v18, %v1008_v17  ;;  %v2575_v47 = vcombine.high %v2573_v41, %v2573_v41  ;;  %v3145_v10 = vcombine.low %v3137_v34, %v3144_v62 }
 0x1e8   : > { %1118 = vrot.lane.b32.xlu0 %v1061_v16, %s5252_s27 }
 0x1e9   : > { %v1103_v24 = vpop.permute.xlu1 %1102  ;;  %v2091_v6 = vcombine.low %v2083_v8, %v2090_v51  ;;  %v3113_v26 = vcombine.low %v2573_v41, %v2575_v47 }
 0x1ea   : > { %v6617_v61 = vsel %vm7753_vm11, %v1360_v46, %v1103_v24  ;;  %v6619_v20 = vpop.permute.xlu0 %540  ;;  %vm6673_vm11 = vmand %vm2956_vm15, %vm2966_vm2  ;;  %vm7805_vm2 = vcmask 261120  }
 0x1eb   : > { %v1702_v9 = vrot.slane %v6617_v61, %v5867_v22  ;;  %930 = vrot.lane.b32.xlu1 %v6541_v23, %s5248_s16  ;;  %4603 = vmatmul.mubr.msk.f32.gmra.mrb[26].mxu0 %vm2236_vm12, %v2091_v6  ;;  %v3127_v45 = vrot.slane %v3113_v26, %v5867_v22  ;;  %vm3024_vm10 = vmand %vm6673_vm11, %vm3021_vm14  ;;  %v6700_v49 = vsel %vm6673_vm11, %v3145_v10, 0.0 }
 0x1ec   : > { %1021 = vrot.lane.b32.xlu0 %v6465_v13, %s5249_s13  ;;  %4605 = vmatprep.mubr.msk.f32.mxu0 %vm5251_vm3, %v7785_v43  ;;  %v3607_v63 = vrot.slane %v6700_v49, 1 }
 0x1ed   : > { %v1710_v32 = vcombine.high %v1702_v9, %v1702_v9  ;;  %v6638_v31 = vpop.permute.xlu1 %633  ;;  %v3128_v41 = vcombine.low %v3120_v21, %v3127_v45 }
 0x1ee   : > { %v2363_v57 = vpop.f32.mrb[4].mxu0  ;;  %v6644_v19 = vpop.permute.xlu0 %631 }
 0x1ef   : > { %v2093_v30 = vcombine.low %v1702_v9, %v1710_v32  ;;  %v2364_v7 = vadd.f32 %v6530_v15, %v2363_v57  ;;  %1025 = vrot.lane.b32.xlu1 %v968_v60, %s5249_s13  ;;  %v4571_v25 = vpop.f32.mrb[5].mxu0  ;;  %v1695_v60 = vcombine.high %v6617_v61, %v6617_v61 }
 0x1f0   : > { %1116 = vrot.lane.b32.xlu0 %v6488_v33, %s5252_s27 }
 0x1f1   : > { %v2107_v59 = vrot.slane %v2093_v30, %v5867_v22  ;;  %vm2469_vm13 = vcmp.ge.f32.partialorder %v2364_v7, 0.0  ;;  %v2492_v37 = vmul.f32 0.2, %v2364_v7  ;;  %v6659_v29 = vpop.permute.xlu1 %728  ;;  %v7802_v30 = vld [vmem:[#allocation19_spill] sm:$0xff]  ;;  %v1709_v45 = vrot.slane %v1695_v60, %v5867_v22 }
 0x1f2   : > { %v6662_v2 = vpop.permute.xlu0 %726 }
 0x1f3   : > { %v2515_v4 = vsel %vm2469_vm13, %v2364_v7, %v2492_v37  ;;  %556 = vrot.lane.b32.xlu1 %v6381_v12, %s5244_s8  ;;  %v2108_v23 = vcombine.low %v2100_v1, %v2107_v59  ;;  %vm2986_vm13 = vcmp.ge.s32.totalorder %v7799_v5, 1  ;;  %v1175_v7 = vsel %vm1154_vm4, %v5134_v35, %v7802_v30  ;;  %v5135_v1 = vld [vmem:[%s5367_s26 + $0xa8] sm:$0xff]  ;;  %v7803_v59 = vld [vmem:[#allocation18_spill] sm:$0xff] }
 0x1f4   : > { %v2600_v53 = vrot.slane %v2515_v4, %v5867_v22  ;;  %1120 = vrot.lane.b32.xlu0 %v1063_v52, %s5252_s27  ;;  %vm2989_vm15 = vmand %vm6673_vm11, %vm2986_vm13  ;;  %v2593_v8 = vcombine.high %v2515_v4, %v2515_v4  ;;  %v1206_v62 = vsel %vm1185_vm5, %v1175_v7, %v6593_v36  ;;  %v1176_v37 = vsel %vm1154_vm4, %v5135_v1, %v7803_v59  ;;  %v5136_v7 = vld [vmem:[%s5367_s26 + $0xb0] sm:$0xff] }
 0x1f5   : > { %v6684_v12 = vpop.permute.xlu1 %823  ;;  %4606 = vmatmul.mubr.msk.f32.gmra.mrb[28].mxu0 %vm2236_vm12, %v2108_v23  ;;  %v1237_v34 = vsel %vm7755_vm6, %v1206_v62, %v6644_v19  ;;  %v1207_v36 = vsel %vm1185_vm5, %v1176_v37, %v6619_v20  ;;  %vm7804_vm11 = vcmask 228352  }
 0x1f6   : > { %v3152_v55 = vrot.slane %v2600_v53, %v5867_v22  ;;  %v822_v16 = vpop.permute.xlu0 %821  ;;  %4608 = vmatprep.mubr.msk.f32.mxu0 %vm5251_vm3, %v7785_v43  ;;  %v2607_v9 = vrot.slane %v2593_v8, %v5867_v22  ;;  %v2608_v54 = vcombine.high %v2600_v53, %v2600_v53  ;;  %v1268_v4 = vsel %vm1247_vm7, %v1237_v34, %v6662_v2 }
 0x1f7   : > { %744 = vrot.lane.b32.xlu1 %v6465_v13, %s5246_s15  ;;  %v6706_v13 = vsel %vm2989_vm15, %v3128_v41, 0.0  ;;  %v1238_v40 = vsel %vm7755_vm6, %v1207_v36, %v6638_v31  ;;  %v1299_v21 = vsel %vm1278_vm8, %v1268_v4, %v822_v16  ;;  %vm7806_vm15 = vmmov %vm7804_vm11 }
 0x1f8   : > { %v3554_v48 = vsel %vm3024_vm10, %v3152_v55, 0.0  ;;  %649 = vrot.lane.b32.xlu0 %v6452_v44, %s5243_s30  ;;  %v3695_v44 = vrot.slane %v6700_v49, 2  ;;  %v3694_v47 = vrot.slane %v6706_v13, 2  ;;  %v3153_v52 = vcombine.low %v2608_v54, %v2607_v9  ;;  %s5254_s30 = smov 40  }
 0x1f9   : > { %v915_v17 = vpop.permute.xlu1 %914  ;;  %v3697_v51 = vrot.slane %v3554_v48, 2  ;;  %v3609_v38 = vrot.slane %v3554_v48, 1  ;;  %v1269_v19 = vsel %vm1247_vm7, %v1238_v40, %v6659_v29  ;;  %v1711_v48 = vcombine.high %v1709_v45, %v1709_v45 }
 0x1fa   : > { %v6702_v58 = vpop.permute.xlu0 %542  ;;  %v3696_v32 = vsel %vm447_vm1, %v3694_v47, %v3695_v44  ;;  %v3161_v55 = vrot.slane %v3153_v52, %v5867_v22  ;;  %v1330_v41 = vsel %vm7758_vm9, %v1299_v21, %v915_v17  ;;  %v1300_v2 = vsel %vm1278_vm8, %v1269_v19, %v6684_v12 }
 0x1fb   : > { %932 = vrot.lane.b32.xlu1 %v6600_v42, %s5248_s16  ;;  %v3698_v56 = vsel %vm447_vm1, %v3695_v44, %v3697_v51  ;;  %v3610_v27 = vsel %vm306_vm0, %v3607_v63, %v3609_v38  ;;  %v2609_v42 = vcombine.high %v2607_v9, %v2607_v9 }
 0x1fc   : > { %839 = vrot.lane.b32.xlu0 %v6488_v33, %s5245_s9  ;;  %v3606_v33 = vrot.slane %v6706_v13, 1  ;;  %v4799_v26 = vpack.i.bf16 %v3698_v56, %v3696_v32  ;;  %v2943_v32 = vadd.s32 1, %v6626_v0  ;;  %s5255_s9 = smov 48  }
 0x1fd   : > { %v6711_v3 = vpop.permute.xlu1 %635  ;;  %v2368_v18 = vpop.f32.mrb[6].mxu0 }
 0x1fe   : > { %v2369_v46 = vadd.f32 %v6530_v15, %v2368_v18  ;;  %v4574_v24 = vpop.f32.mrb[7].mxu0  ;;  %v917_v6 = vpop.permute.xlu0 %916  ;;  %v2109_v18 = vcombine.low %v1709_v45, %v1711_v48 }
 0x1ff   : > { %1122 = vrot.lane.b32.xlu1 %v1062_v39, %s5252_s27  ;;  %v3608_v39 = vsel %vm306_vm0, %v3606_v33, %v3607_v63  ;;  %v1331_v31 = vsel %vm7758_vm9, %v1300_v2, %v917_v6 }
 0x200   : > { %vm2470_vm10 = vcmp.ge.f32.partialorder %v2369_v46, 0.0  ;;  %v2493_v28 = vmul.f32 0.2, %v2369_v46  ;;  %1027 = vrot.lane.b32.xlu0 %v967_v11, %s5249_s13  ;;  %v4794_v61 = vpack.i.bf16 %v3610_v27, %v3608_v39  ;;  %v2117_v6 = vrot.slane %v2109_v18, %v5867_v22  ;;  %s5256_s13 = smov 56  }
 0x201   : > { %v1012_v57 = vpop.permute.xlu1 %1011 }
 0x202   : > { %v2516_v25 = vsel %vm2470_vm10, %v2369_v46, %v2493_v28  ;;  %v1010_v14 = vpop.permute.xlu0 %1009  ;;  %v1362_v44 = vsel %vm7806_vm15, %v1331_v31, %v1012_v57  ;;  %vm7807_vm10 = vmmov %vm7805_vm2  ;;  %vm2967_vm15 = vcmp.lt.s32.totalorder %v2943_v32, 16 }
 0x203   : > { %v2617_v11 = vrot.slane %v2516_v25, %v5867_v22  ;;  %4800 = vrot.lane.b32.xlu1 %v4799_v26, %s5246_s15  ;;  %v1361_v51 = vsel %vm7804_vm11, %v1330_v41, %v1010_v14  ;;  %v2610_v27 = vcombine.high %v2516_v25, %v2516_v25  ;;  %v7808_v14 = vld [vmem:[#allocation21_spill] sm:$0xff] }
 0x204   : > { %4795 = vrot.lane.b32.xlu0 %v4794_v61, %s5244_s8  ;;  %v1177_v25 = vsel %vm1154_vm4, %v5136_v7, %v7808_v14 }
 0x205   : > { %v3154_v23 = vcombine.low %v2609_v42, %v2617_v11  ;;  %v1105_v53 = vpop.permute.xlu1 %1104  ;;  %v2624_v26 = vrot.slane %v2610_v27, %v5867_v22  ;;  %v2625_v39 = vcombine.high %v2617_v11, %v2617_v11  ;;  %v1208_v61 = vsel %vm1185_vm5, %v1177_v25, %v6702_v58 }
 0x206   : > { %v731_v10 = vpop.permute.xlu0 %730  ;;  %v1392_v16 = vsel %vm7805_vm2, %v1361_v51, %v1105_v53  ;;  %v1239_v1 = vsel %vm7755_vm6, %v1208_v61, %v6711_v3  ;;  %vm2957_vm2 = vcmp.ge.s32.totalorder %v2943_v32, 0  ;;  %vm7811_vm6 = vcmask 228352  }
 0x207   : > { %v3168_v20 = vrot.slane %v3154_v23, %v5867_v22  ;;  %v1718_v63 = vrot.slane %v1392_v16, %v5867_v22  ;;  %v3170_v59 = vcombine.low %v2625_v39, %v2624_v26  ;;  %v1270_v37 = vsel %vm1247_vm7, %v1239_v1, %v731_v10 }
 0x208   : > { %v2626_v36 = vcombine.high %v2624_v26, %v2624_v26 }
 0x209   : > { %v6759_v8 = vcombine.low %v3161_v55, %v3168_v20  ;;  %v826_v38 = vpop.permute.xlu1 %825  ;;  %v3178_v48 = vrot.slane %v3170_v59, %v5867_v22 }
 0x20a   : > { %v1107_v29 = vpop.permute.xlu0 %1106  ;;  %v1301_v34 = vsel %vm1278_vm8, %v1270_v37, %v826_v38 }
 0x20b   : > { %v1393_v17 = vsel %vm7807_vm10, %v1362_v44, %v1107_v29  ;;  %vm6799_vm10 = vmand %vm2957_vm2, %vm2967_vm15 }
 0x20c   : > { %v1726_v46 = vrot.slane %v1393_v17, %v5867_v22  ;;  %v1719_v62 = vcombine.high %v1393_v17, %v1393_v17  ;;  %vm3027_vm2 = vmand %vm6799_vm10, %vm3021_vm14 }
 0x20d   : > { %v6767_v12 = vpop.permute.xlu1 %546 }
 0x20e   : > { %v2110_v24 = vcombine.low %v1718_v63, %v1726_v46  ;;  %v6769_v47 = vpop.permute.xlu0 %544  ;;  %v1733_v23 = vrot.slane %v1719_v62, %v5867_v22  ;;  %v1734_v53 = vcombine.high %v1726_v46, %v1726_v46 }
 0x210   : > { %v2124_v56 = vrot.slane %v2110_v24, %v5867_v22  ;;  %v2126_v38 = vcombine.low %v1734_v53, %v1733_v23  ;;  %v1735_v44 = vcombine.high %v1733_v23, %v1733_v23 }
 0x211   : > { %v6773_v9 = vpop.permute.xlu1 %637 }
 0x212   : > { %v919_v54 = vpop.permute.xlu0 %918  ;;  %v2125_v33 = vcombine.low %v2117_v6, %v2124_v56 }
 0x213   : > { %v1332_v40 = vsel %vm7758_vm9, %v1301_v34, %v919_v54 }
 0x214   : > { %4609 = vmatmul.mubr.msk.f32.gmra.mrb[30].mxu0 %vm2236_vm12, %v2125_v33 }
 0x215   : > { %v1014_v60 = vpop.permute.xlu1 %1013  ;;  %4611 = vmatprep.mubr.msk.f32.mxu0 %vm5251_vm3, %v7785_v43 }
 0x216   : > { %v2373_v28 = vpop.f32.mrb[8].mxu0  ;;  %v6779_v57 = vpop.permute.xlu0 %639  ;;  %v1363_v10 = vsel %vm7811_vm6, %v1332_v40, %v1014_v60  ;;  %vm2992_vm6 = vmand %vm6799_vm10, %vm2986_vm13 }
 0x217   : > { %v2374_v35 = vadd.f32 %v6530_v15, %v2373_v28  ;;  %v4577_v30 = vpop.f32.mrb[9].mxu0  ;;  %v6830_v54 = vsel %vm2992_vm6, %v6759_v8, 0.0  ;;  %v2134_v28 = vrot.slane %v2126_v38, %v5867_v22  ;;  %vm7817_vm6 = vcmask 228352  }
 0x218   : > { %v3611_v7 = vrot.slane %v6830_v54, 1  ;;  %v3699_v34 = vrot.slane %v6830_v54, 2 }
 0x219   : > { %vm2471_vm11 = vcmp.ge.f32.partialorder %v2374_v35, 0.0  ;;  %v2494_v52 = vmul.f32 0.2, %v2374_v35  ;;  %v6788_v42 = vpop.permute.xlu1 %734 }
 0x21a   : > { %v6792_v11 = vpop.permute.xlu0 %732 }
 0x21b   : > { %v2517_v45 = vsel %vm2471_vm11, %v2374_v35, %v2494_v52  ;;  %vm7812_vm11 = vcmask 261120  }
 0x21c   : > { %v2627_v58 = vcombine.high %v2517_v45, %v2517_v45  ;;  %v2634_v4 = vrot.slane %v2517_v45, %v5867_v22 }
 0x21d   : > { %v6803_v21 = vpop.permute.xlu1 %827 }
 0x21e   : > { %v2642_v55 = vcombine.high %v2634_v4, %v2634_v4  ;;  %v3171_v19 = vcombine.low %v2626_v36, %v2634_v4  ;;  %v1109_v41 = vpop.permute.xlu0 %1108  ;;  %v2641_v2 = vrot.slane %v2627_v58, %v5867_v22  ;;  %v5137_v58 = vld [vmem:[%s5367_s26 + $0xc0] sm:$0xff] }
 0x21f   : > { %v6807_v20 = vsel %vm7812_vm11, %v1363_v10, %v1109_v41  ;;  %v7813_v4 = vld [vmem:[#allocation23_spill] sm:$0xff]  ;;  %v5138_v10 = vld [vmem:[%s5367_s26 + $0xb8] sm:$0xf] }
 0x220   : > { %v3185_v51 = vrot.slane %v3171_v19, %v5867_v22  ;;  %v3193_v31 = vrot.slane %v2642_v55, %v5867_v22  ;;  %v2378_v16 = vpop.f32.mrb[10].mxu0  ;;  %v6823_v29 = vrot.slane %v6807_v20, %v5867_v22  ;;  %v2643_v33 = vcombine.high %v2641_v2, %v2641_v2  ;;  %v7814_v55 = vld [vmem:[#allocation20_spill] sm:$0xff] }
 0x221   : > { %v2379_v17 = vadd.f32 %v6530_v15, %v2378_v16  ;;  %v6826_v18 = vpop.permute.xlu1 %548  ;;  %v4580_v63 = vpop.f32.mrb[11].mxu0  ;;  %v1179_v23 = vsel %vm1154_vm4, %v5137_v58, %v7813_v4  ;;  %v1178_v19 = vsel %vm1154_vm4, %v5138_v10, %v7814_v55 }
 0x222   : > { %v3186_v46 = vcombine.low %v3178_v48, %v3185_v51  ;;  %v830_v24 = vpop.permute.xlu0 %829  ;;  %v2127_v6 = vcombine.low %v1735_v44, %v6823_v29  ;;  %v3557_v27 = vsel %vm3027_vm2, %v3193_v31, 0.0  ;;  %v3194_v62 = vcombine.low %v2641_v2, %v2643_v33  ;;  %vm7818_vm2 = vmmov %vm7817_vm6 }
 0x223   : > { %vm2472_vm15 = vcmp.ge.f32.partialorder %v2379_v17, 0.0  ;;  %v2495_v56 = vmul.f32 0.2, %v2379_v17  ;;  %v3614_v61 = vrot.slane %v3557_v27, 1  ;;  %v3702_v36 = vrot.slane %v3557_v27, 2 }
 0x224   : > { %v6834_v60 = vsel %vm6799_vm10, %v3186_v46, 0.0  ;;  %v2141_v32 = vrot.slane %v2127_v6, %v5867_v22  ;;  %v1210_v41 = vsel %vm1185_vm5, %v1179_v23, %v6767_v12  ;;  %v3202_v51 = vrot.slane %v3194_v62, %v5867_v22  ;;  %v5139_v62 = vld [vmem:[%s5367_s26 + $0xc8] sm:$0xff] }
 0x225   : > { %v6838_v26 = vsel %vm2472_vm15, %v2379_v17, %v2495_v56  ;;  %v923_v39 = vpop.permute.xlu1 %922  ;;  %v4804_v35 = vpack.i.bf16 %v6834_v60, %v6830_v54  ;;  %v3612_v14 = vrot.slane %v6834_v60, 1  ;;  %v3700_v59 = vrot.slane %v6834_v60, 2 }
 0x226   : > { %v2651_v8 = vrot.slane %v6838_v26, %v5867_v22  ;;  %v921_v30 = vpop.permute.xlu0 %920  ;;  %v2142_v25 = vcombine.low %v2134_v28, %v2141_v32  ;;  %v1736_v31 = vcombine.high %v6807_v20, %v6807_v20  ;;  %v1209_v44 = vsel %vm1185_vm5, %v1178_v19, %v6769_v47 }
 0x227   : > { %4805 = vrot.lane.b32.xlu0 %v4804_v35, %s5248_s16  ;;  %v3613_v1 = vsel %vm306_vm0, %v3611_v7, %v3612_v14  ;;  %v3615_v45 = vsel %vm306_vm0, %v3612_v14, %v3614_v61  ;;  %v3701_v48 = vsel %vm447_vm1, %v3699_v34, %v3700_v59  ;;  %v3703_v2 = vsel %vm447_vm1, %v3700_v59, %v3702_v36 }
 0x228   : > { %v2659_v52 = vcombine.high %v2651_v8, %v2651_v8  ;;  %4612 = vmatmul.mubr.msk.f32.gmra.mrb[32].mxu0 %vm2236_vm12, %v2142_v25  ;;  %v6855_v40 = vpack.i.bf16 %v3615_v45, %v3613_v1  ;;  %v6872_v38 = vpack.i.bf16 %v3703_v2, %v3701_v48  ;;  %vm7815_vm10 = vcmask 97280  }
 0x229   : > { %v1016_v37 = vpop.permute.xlu1 %1015  ;;  %4614 = vmatprep.mubr.msk.f32.mxu0 %vm5251_vm3, %v7785_v43  ;;  %v1241_v12 = vsel %vm7815_vm10, %v1210_v41, %v6779_v57  ;;  %vm7816_vm11 = vmmov %vm7815_vm10  ;;  %vm7819_vm15 = vcmask 261120  }
 0x22a   : > { %v3195_v53 = vcombine.low %v2651_v8, %v2659_v52  ;;  %v642_v3 = vpop.permute.xlu0 %641  ;;  %4810 = vrot.lane.b32.xlu1 %v6855_v40, %s5252_s27  ;;  %v1240_v63 = vsel %vm7816_vm11, %v1209_v44, %v6773_v9  ;;  %v1272_v20 = vsel %vm1247_vm7, %v1241_v12, %v6788_v42  ;;  %v1750_v9 = vrot.slane %v1736_v31, %v5867_v22  ;;  %vm7820_vm10 = vmmov %vm7819_vm15  ;;  %v7821_v52 = vld [vmem:[#allocation22_spill] sm:$0xff] }
 0x22b   : > { %4815 = vrot.lane.b32.xlu0 %v6872_v38, %s5254_s30  ;;  %v1271_v47 = vsel %vm1247_vm7, %v1240_v63, %v6792_v11  ;;  %v1303_v56 = vsel %vm1278_vm8, %v1272_v20, %v830_v24  ;;  %v1751_v42 = vcombine.high %v6823_v29, %v6823_v29  ;;  %v1180_v1 = vsel %vm1154_vm4, %v5139_v62, %v7821_v52 }
 0x22c   : > { %v3209_v16 = vrot.slane %v3195_v53, %v5867_v22  ;;  %v1302_v57 = vsel %vm1278_vm8, %v1271_v47, %v6803_v21  ;;  %v1334_v33 = vsel %vm7758_vm9, %v1303_v56, %v923_v39  ;;  %v1752_v29 = vcombine.high %v1750_v9, %v1750_v9 }
 0x22d   : > { %v737_v17 = vpop.permute.xlu1 %736  ;;  %v1333_v27 = vsel %vm7758_vm9, %v1302_v57, %v921_v30  ;;  %v2143_v14 = vcombine.low %v1751_v42, %v1750_v9  ;;  %v1211_v45 = vsel %vm1185_vm5, %v1180_v1, %v6826_v18  ;;  %v2644_v18 = vcombine.high %v6838_v26, %v6838_v26 }
 0x22e   : > { %v6882_v46 = vcombine.low %v3202_v51, %v3209_v16  ;;  %v1018_v6 = vpop.permute.xlu0 %1017  ;;  %v1364_v11 = vsel %vm7818_vm2, %v1333_v27, %v1016_v37  ;;  %v1242_v4 = vsel %vm7816_vm11, %v1211_v45, %v642_v3  ;;  %v2944_v20 = vadd.s32 2, %v6626_v0 }
 0x22f   : > { %v1365_v28 = vsel %vm7817_vm6, %v1334_v33, %v1018_v6  ;;  %v2151_v58 = vrot.slane %v2143_v14, %v5867_v22  ;;  %v1273_v53 = vsel %vm1247_vm7, %v1242_v4, %v737_v17  ;;  %vm7822_vm6 = vmmov %vm7818_vm2  ;;  %v2658_v17 = vrot.slane %v2644_v18, %v5867_v22 }
 0x230   : > { %vm7823_vm2 = vmmov %vm7820_vm10  ;;  %vm2968_vm11 = vcmp.lt.s32.totalorder %v2944_v20, 16 }
 0x231   : > { %v1113_v32 = vpop.permute.xlu1 %1112 }
 0x232   : > { %v1396_v24 = vsel %vm7819_vm15, %v1365_v28, %v1113_v32  ;;  %v1111_v35 = vpop.permute.xlu0 %1110  ;;  %v2660_v32 = vcombine.high %v2658_v17, %v2658_v17 }
 0x233   : > { %v1760_v8 = vcombine.high %v1396_v24, %v1396_v24  ;;  %v1767_v21 = vrot.slane %v1396_v24, %v5867_v22  ;;  %v1395_v7 = vsel %vm7820_vm10, %v1364_v11, %v1111_v35  ;;  %vm2958_vm10 = vcmp.ge.s32.totalorder %v2944_v20, 0 }
 0x234   : > { %v1759_v39 = vrot.slane %v1395_v7, %v5867_v22 }
 0x235   : > { %v1774_v25 = vrot.slane %v1760_v8, %v5867_v22  ;;  %v1775_v30 = vcombine.high %v1767_v21, %v1767_v21  ;;  %v925_v61 = vpop.permute.xlu1 %924 }
 0x236   : > { %v2144_v59 = vcombine.low %v1752_v29, %v1759_v39  ;;  %v832_v37 = vpop.permute.xlu0 %831 }
 0x237   : > { %v1776_v34 = vcombine.high %v1774_v25, %v1774_v25  ;;  %v2160_v36 = vcombine.low %v1767_v21, %v1775_v30  ;;  %v1304_v19 = vsel %vm1278_vm8, %v1273_v53, %v832_v37 }
 0x238   : > { %v2158_v23 = vrot.slane %v2144_v59, %v5867_v22  ;;  %v1335_v3 = vsel %vm7758_vm9, %v1304_v19, %v925_v61 }
 0x239   : > { %v2161_v10 = vcombine.low %v1774_v25, %v1776_v34  ;;  %v6912_v55 = vpop.permute.xlu1 %552  ;;  %v2168_v2 = vrot.slane %v2160_v36, %v5867_v22  ;;  %v3211_v25 = vcombine.low %v2658_v17, %v2660_v32 }
 0x23a   : > { %v1020_v41 = vpop.permute.xlu0 %1019  ;;  %v2159_v48 = vcombine.low %v2151_v58, %v2158_v23 }
 0x23b   : > { %v2175_v51 = vrot.slane %v2161_v10, %v5867_v22  ;;  %v1366_v44 = vsel %vm7822_vm6, %v1335_v3, %v1020_v41  ;;  %vm6940_vm6 = vmand %vm2958_vm10, %vm2968_vm11  ;;  %v3219_v36 = vrot.slane %v3211_v25, %v5867_v22  ;;  %vm7827_vm10 = vcmask 97280  }
 0x23c   : > { %4615 = vmatmul.mubr.msk.f32.gmra.mrb[34].mxu0 %vm2236_vm12, %v2159_v48 }
 0x23d   : > { %v6921_v31 = vpop.permute.xlu1 %645  ;;  %4617 = vmatprep.mubr.msk.f32.mxu0 %vm5251_vm3, %v7785_v43  ;;  %v2176_v16 = vcombine.low %v2168_v2, %v2175_v51 }
 0x23e   : > { %v1115_v12 = vpop.permute.xlu0 %1114 }
 0x23f   : > { %v1397_v26 = vsel %vm7823_vm2, %v1366_v44, %v1115_v12  ;;  %v2383_v63 = vpop.f32.mrb[12].mxu0  ;;  %vm2995_vm2 = vmand %vm6940_vm6, %vm2986_vm13 }
 0x240   : > { %v1777_v6 = vcombine.high %v1397_v26, %v1397_v26  ;;  %v1784_v47 = vrot.slane %v1397_v26, %v5867_v22  ;;  %v2384_v56 = vadd.f32 %v6530_v15, %v2383_v63  ;;  %v4583_v57 = vpop.f32.mrb[13].mxu0  ;;  %4618 = vmatmul.mubr.msk.f32.gmra.mrb[36].mxu0 %vm2236_vm12, %v2176_v16  ;;  %v6969_v4 = vsel %vm2995_vm2, %v6882_v46, 0.0 }
 0x241   : > { %v6932_v9 = vpop.permute.xlu1 %740  ;;  %4620 = vmatprep.mubr.msk.f32.mxu0 %vm5251_vm3, %v7785_v43  ;;  %v3616_v48 = vrot.slane %v6969_v4, 1  ;;  %v3704_v18 = vrot.slane %v6969_v4, 2  ;;  %v7826_v57 = vld [vmem:[#allocation24_spill] sm:$0xff]  ;;  %vm7829_vm2 = vcmask 261120  }
 0x242   : > { %v1791_v42 = vrot.slane %v1777_v6, %v5867_v22  ;;  %v1792_v33 = vcombine.high %v1784_v47, %v1784_v47  ;;  %vm2473_vm15 = vcmp.ge.f32.partialorder %v2384_v56, 0.0  ;;  %v2496_v27 = vmul.f32 0.2, %v2384_v56  ;;  %v6937_v28 = vpop.permute.xlu0 %550 }
 0x244   : > { %v1793_v11 = vcombine.high %v1791_v42, %v1791_v42  ;;  %v2177_v24 = vcombine.low %v1784_v47, %v1792_v33  ;;  %v2519_v35 = vsel %vm2473_vm15, %v2384_v56, %v2496_v27  ;;  %vm3030_vm15 = vmand %vm6940_vm6, %vm3021_vm14  ;;  %v5140_v56 = vld [vmem:[%s5367_s26 + $0xd8] sm:$0xff] }
 0x245   : > { %v2661_v8 = vcombine.high %v2519_v35, %v2519_v35  ;;  %v2668_v21 = vrot.slane %v2519_v35, %v5867_v22  ;;  %v836_v7 = vpop.permute.xlu1 %835 }
 0x246   : > { %v2178_v14 = vcombine.low %v1791_v42, %v1793_v11  ;;  %v6944_v39 = vpop.permute.xlu0 %643  ;;  %v2185_v62 = vrot.slane %v2177_v24, %v5867_v22  ;;  %v1182_v42 = vsel %vm1154_vm4, %v5140_v56, %v7826_v57 }
 0x247   : > { %v6947_v30 = vrot.slane %v2661_v8, %v5867_v22  ;;  %v2676_v61 = vcombine.high %v2668_v21, %v2668_v21  ;;  %v1213_v11 = vsel %vm1185_vm5, %v1182_v42, %v6912_v55 }
 0x248   : > { %v2192_v52 = vrot.slane %v2178_v14, %v5867_v22  ;;  %v1244_v35 = vsel %vm7827_vm10, %v1213_v11, %v6921_v31 }
 0x249   : > { %v3212_v1 = vcombine.low %v2668_v21, %v2676_v61  ;;  %v3234_v59 = vrot.slane %v6947_v30, %v5867_v22  ;;  %v6953_v37 = vpop.permute.xlu1 %738  ;;  %v1275_v21 = vsel %vm1247_vm7, %v1244_v35, %v6932_v9  ;;  %v2677_v25 = vcombine.high %v6947_v30, %v6947_v30 }
 0x24a   : > { %v6963_v45 = vpop.permute.xlu0 %554  ;;  %v2193_v34 = vcombine.low %v2185_v62, %v2192_v52  ;;  %v1306_v55 = vsel %vm1278_vm8, %v1275_v21, %v836_v7 }
 0x24b   : > { %v3226_v58 = vrot.slane %v3212_v1, %v5867_v22  ;;  %v3560_v53 = vsel %vm3030_vm15, %v3234_v59, 0.0  ;;  %vm7832_vm15 = vmmov %vm7827_vm10 }
 0x24c   : > { %4621 = vmatmul.mubr.msk.f32.gmra.mrb[38].mxu0 %vm2236_vm12, %v2193_v34  ;;  %v3619_v2 = vrot.slane %v3560_v53, 1  ;;  %v3707_v16 = vrot.slane %v3560_v53, 2  ;;  %v5141_v34 = vld [vmem:[%s5367_s26 + $0xd0] sm:$0xf] }
 0x24d   : > { %v3227_v23 = vcombine.low %v3219_v36, %v3226_v58  ;;  %v6971_v10 = vpop.permute.xlu1 %647  ;;  %4623 = vmatprep.mubr.msk.f32.mxu0 %vm5251_vm3, %v7785_v43  ;;  %v7830_v36 = vld [vmem:[#allocation25_spill] sm:$0xff] }
 0x24e   : > { %v929_v19 = vpop.permute.xlu0 %928  ;;  %v1181_v58 = vsel %vm1154_vm4, %v5141_v34, %v7830_v36 }
 0x24f   : > { %v6977_v41 = vsel %vm6940_vm6, %v3227_v23, 0.0  ;;  %v1337_v29 = vsel %vm7758_vm9, %v1306_v55, %v929_v19  ;;  %vm7828_vm6 = vcmask 228352   ;;  %v7836_v55 = vld [vmem:[#allocation26_spill] sm:$0xff] }
 0x250   : > { %v4819_v46 = vpack.i.bf16 %v6977_v41, %v6969_v4  ;;  %v3617_v51 = vrot.slane %v6977_v41, 1  ;;  %v3705_v3 = vrot.slane %v6977_v41, 2 }
 0x251   : > { %v1024_v44 = vpop.permute.xlu1 %1023 }
 0x252   : > { %4820 = vrot.lane.b32.xlu1 %v4819_v46, %s5255_s9  ;;  %v834_v12 = vpop.permute.xlu0 %833  ;;  %v3618_v17 = vsel %vm306_vm0, %v3616_v48, %v3617_v51  ;;  %v3620_v26 = vsel %vm306_vm0, %v3617_v51, %v3619_v2  ;;  %v3706_v63 = vsel %vm447_vm1, %v3704_v18, %v3705_v3  ;;  %v3708_v47 = vsel %vm447_vm1, %v3705_v3, %v3707_v16  ;;  %v5142_v48 = vld [vmem:[%s5367_s26 + $0xe0] sm:$0xff] }
 0x253   : > { %v2388_v20 = vpop.f32.mrb[14].mxu0  ;;  %v6989_v6 = vpack.i.bf16 %v3620_v26, %v3618_v17  ;;  %v6996_v32 = vpack.i.bf16 %v3708_v47, %v3706_v63  ;;  %v1368_v52 = vsel %vm7828_vm6, %v1337_v29, %v1024_v44  ;;  %v7831_v18 = vld [vmem:[#allocation27_spill] sm:$0xff] }
 0x254   : > { %v2389_v33 = vadd.f32 %v6530_v15, %v2388_v20  ;;  %v4586_v27 = vpop.f32.mrb[15].mxu0  ;;  %v1183_v2 = vsel %vm1154_vm4, %v5142_v48, %v7831_v18 }
 0x255   : > { %v927_v24 = vpop.permute.xlu1 %926  ;;  %4825 = vrot.lane.b32.xlu0 %v6989_v6, %s5256_s13 }
 0x256   : > { %vm2474_vm11 = vcmp.ge.f32.partialorder %v2389_v33, 0.0  ;;  %v2497_v8 = vmul.f32 0.2, %v2389_v33  ;;  %4830 = vrot.lane.b32.xlu1 %v6996_v32, %s5257_s10  ;;  %v743_v15 = vpop.permute.xlu0 %742 }
 0x258   : > { %v2520_v14 = vsel %vm2474_vm11, %v2389_v33, %v2497_v8  ;;  %vm7833_vm11 = vmmov %vm7828_vm6 }
 0x259   : > { %v2678_v31 = vcombine.high %v2520_v14, %v2520_v14  ;;  %v2685_v61 = vrot.slane %v2520_v14, %v5867_v22  ;;  %v838_v62 = vpop.permute.xlu1 %837  ;;  %4835 = vrot.lane.b32.xlu0 %v6855_v40, %s5244_s8  ;;  %v1212_v40 = vsel %vm1185_vm5, %v1181_v58, %v6937_v28  ;;  %vm7834_vm6 = vmmov %vm7829_vm2 }
 0x25a   : > { %4840 = vrot.lane.b32.xlu1 %v6872_v38, %s5246_s15  ;;  %v1119_v9 = vpop.permute.xlu0 %1118  ;;  %v1243_v51 = vsel %vm7832_vm15, %v1212_v40, %v6944_v39  ;;  %vm7837_vm15 = vmmov %vm7834_vm6 }
 0x25b   : > { %v7019_v7 = vrot.slane %v2678_v31, %v5867_v22  ;;  %v2693_v1 = vcombine.high %v2685_v61, %v2685_v61  ;;  %v3235_v59 = vcombine.low %v2677_v25, %v2685_v61  ;;  %v1399_v30 = vsel %vm7829_vm2, %v1368_v52, %v1119_v9  ;;  %vm7835_vm2 = vmmov %vm7833_vm11  ;;  %v7069_v9 = vld [vmem:[%s7735_s2] ss:$0 sm:$0xff] }
 0x25c   : > { %v1801_v53 = vcombine.high %v1399_v30, %v1399_v30  ;;  %v1808_v38 = vrot.slane %v1399_v30, %v5867_v22  ;;  %v1274_v28 = vsel %vm1247_vm7, %v1243_v51, %v6953_v37  ;;  %v2945_v31 = vadd.s32 3, %v6626_v0 }
 0x25d   : > { %v3236_v23 = vcombine.low %v2693_v1, %v7019_v7  ;;  %v931_v19 = vpop.permute.xlu1 %930  ;;  %4845 = vrot.lane.b32.xlu0 %v4819_v46, %s5248_s16  ;;  %v3243_v16 = vrot.slane %v3235_v59, %v5867_v22  ;;  %v1214_v46 = vsel %vm1185_vm5, %v1183_v2, %v6963_v45  ;;  %v1305_v17 = vsel %vm1278_vm8, %v1274_v28, %v834_v12 }
 0x25e   : > { %4850 = vrot.lane.b32.xlu1 %v6989_v6, %s5252_s27  ;;  %v1022_v3 = vpop.permute.xlu0 %1021  ;;  %v1336_v39 = vsel %vm7758_vm9, %v1305_v17, %v927_v24  ;;  %v1815_v63 = vrot.slane %v1801_v53, %v5867_v22  ;;  %v1816_v20 = vcombine.high %v1808_v38, %v1808_v38  ;;  %v1245_v37 = vsel %vm7827_vm10, %v1214_v46, %v6971_v10  ;;  %v5143_v10 = vld [vmem:[%s5367_s26 + $0xe8] sm:$0xf] }
 0x25f   : > { %v3250_v44 = vrot.slane %v3236_v23, %v5867_v22  ;;  %v1367_v56 = vsel %vm7833_vm11, %v1336_v39, %v1022_v3  ;;  %v1276_v12 = vsel %vm1247_vm7, %v1245_v37, %v743_v15  ;;  %v1184_v14 = vsel %vm1154_vm4, %v5143_v10, %v7836_v55 }
 0x260   : > { %v1307_v42 = vsel %vm1278_vm8, %v1276_v12, %v838_v62  ;;  %v2195_v27 = vcombine.low %v1816_v20, %v1815_v63  ;;  %v1817_v29 = vcombine.high %v1815_v63, %v1815_v63  ;;  %vm2959_vm11 = vcmp.ge.s32.totalorder %v2945_v31, 0 }
 0x261   : > { %v7044_v26 = vcombine.low %v3243_v16, %v3250_v44  ;;  %v1026_v47 = vpop.permute.xlu1 %1025  ;;  %4855 = vrot.lane.b32.xlu0 %v6996_v32, %s5254_s30  ;;  %v1338_v11 = vsel %vm7758_vm9, %v1307_v42, %v931_v19  ;;  %v2694_v44 = vcombine.high %v7019_v7, %v7019_v7 }
 0x262   : > { %v1117_v45 = vpop.permute.xlu0 %1116  ;;  %v1369_v35 = vsel %vm7835_vm2, %v1338_v11, %v1026_v47  ;;  %v2209_v30 = vrot.slane %v2195_v27, %v5867_v22 }
 0x263   : > { %v1398_v57 = vsel %vm7834_vm6, %v1367_v56, %v1117_v45  ;;  %vm2969_vm6 = vcmp.lt.s32.totalorder %v2945_v31, 16 }
 0x264   : > { %v1800_v33 = vrot.slane %v1398_v57, %v5867_v22 }
 0x265   : > { %v557_v24 = vpop.permute.xlu1 %556 }
 0x266   : > { %v2194_v8 = vcombine.low %v1800_v33, %v1808_v38  ;;  %v1121_v21 = vpop.permute.xlu0 %1120  ;;  %v1215_v34 = vsel %vm1185_vm5, %v1184_v14, %v557_v24 }
 0x267   : > { %v1400_v15 = vsel %vm7837_vm15, %v1369_v35, %v1121_v21  ;;  %v2393_v25 = vpop.f32.mrb[16].mxu0  ;;  %vm7090_vm15 = vmand %vm2959_vm11, %vm2969_vm6 }
 0x268   : > { %v2202_v61 = vrot.slane %v2194_v8, %v5867_v22  ;;  %v1818_v62 = vcombine.high %v1400_v15, %v1400_v15  ;;  %v1825_v52 = vrot.slane %v1400_v15, %v5867_v22  ;;  %v2394_v1 = vadd.f32 %v7069_v9, %v2393_v25  ;;  %v4589_v59 = vpop.f32.mrb[17].mxu0  ;;  %vm3033_vm11 = vmand %vm7090_vm15, %vm3021_vm14 }
 0x269   : > { %v745_v36 = vpop.permute.xlu1 %744 }
 0x26a   : > { %v1832_v58 = vrot.slane %v1818_v62, %v5867_v22  ;;  %v1833_v40 = vcombine.high %v1825_v52, %v1825_v52  ;;  %v2211_v23 = vcombine.low %v1817_v29, %v1825_v52  ;;  %vm2475_vm4 = vcmp.ge.f32.partialorder %v2394_v1, 0.0  ;;  %v650_v53 = vpop.permute.xlu0 %649 }
 0x26b   : > { %v2498_v38 = vmul.f32 0.2, %v2394_v1  ;;  %v1246_v19 = vsel %vm7827_vm10, %v1215_v34, %v650_v53  ;;  %v2398_v48 = vpop.f32.mrb[18].mxu0  ;;  %v2210_v18 = vcombine.low %v2202_v61, %v2209_v30  ;;  %vm2998_vm10 = vmand %vm7090_vm15, %vm2986_vm13 }
 0x26c   : > { %v2212_v2 = vcombine.low %v1833_v40, %v1832_v58  ;;  %v2399_v51 = vadd.f32 %v7069_v9, %v2398_v48  ;;  %v4592_v3 = vpop.f32.mrb[19].mxu0  ;;  %v2219_v28 = vrot.slane %v2211_v23, %v5867_v22  ;;  %v1277_v17 = vsel %vm1247_vm7, %v1246_v19, %v745_v36 }
 0x26d   : > { %v2521_v16 = vsel %vm2475_vm4, %v2394_v1, %v2498_v38  ;;  %4624 = vmatmul.mubr.msk.f32.gmra.mrb[40].mxu0 %vm2236_vm12, %v2210_v18  ;;  %v933_v46 = vpop.permute.xlu1 %932  ;;  %vm7841_vm4 = vcmask 261120   ;;  %v1834_v31 = vcombine.high %v1832_v58, %v1832_v58  ;;  %v7115_v59 = vsel %vm2998_vm10, %v7044_v26, 0.0 }
 0x26e   : > { %v2226_v39 = vrot.slane %v2212_v2, %v5867_v22  ;;  %v2695_v63 = vcombine.high %v2521_v16, %v2521_v16  ;;  %v2702_v20 = vrot.slane %v2521_v16, %v5867_v22  ;;  %vm2476_vm2 = vcmp.ge.f32.partialorder %v2399_v51, 0.0  ;;  %v840_v47 = vpop.permute.xlu0 %839  ;;  %4626 = vmatprep.mubr.msk.f32.mxu0 %vm5251_vm3, %v7785_v43 }
 0x26f   : > { %v2499_v37 = vmul.f32 0.2, %v2399_v51  ;;  %v1308_v56 = vsel %vm1278_vm8, %v1277_v17, %v840_v47  ;;  %vm7840_vm8 = vcmask 228352   ;;  %v3621_v19 = vrot.slane %v7115_v59, 1 }
 0x270   : > { %v2709_v7 = vrot.slane %v2695_v63, %v5867_v22  ;;  %v2710_v45 = vcombine.high %v2702_v20, %v2702_v20  ;;  %v3252_v12 = vcombine.low %v2694_v44, %v2702_v20  ;;  %v2227_v57 = vcombine.low %v2219_v28, %v2226_v39 }
 0x271   : > { %v2522_v33 = vsel %vm2476_vm2, %v2399_v51, %v2499_v37  ;;  %v1339_v35 = vsel %vm7758_vm9, %v1308_v56, %v933_v46  ;;  %v1123_v10 = vpop.permute.xlu1 %1122  ;;  %v2946_v26 = vadd.s32 4, %v6626_v0  ;;  %v3709_v16 = vrot.slane %v7115_v59, 2 }
 0x272   : > { %v2711_v27 = vcombine.high %v2709_v7, %v2709_v7  ;;  %v3253_v11 = vcombine.low %v2710_v45, %v2709_v7  ;;  %v2712_v24 = vcombine.high %v2522_v33, %v2522_v33  ;;  %4627 = vmatmul.mubr.msk.f32.gmra.mrb[42].mxu0 %vm2236_vm12, %v2227_v57  ;;  %v1028_v8 = vpop.permute.xlu0 %1027  ;;  %v3260_v21 = vrot.slane %v3252_v12, %v5867_v22 }
 0x273   : > { %v1370_v55 = vsel %vm7840_vm8, %v1339_v35, %v1028_v8  ;;  %4629 = vmatprep.mubr.msk.f32.mxu0 %vm5251_vm3, %v7785_v43  ;;  %v2719_v62 = vrot.slane %v2522_v33, %v5867_v22  ;;  %vm2970_vm6 = vcmp.lt.s32.totalorder %v2946_v26, 16 }
 0x274   : > { %v3267_v14 = vrot.slane %v3253_v11, %v5867_v22  ;;  %v3275_v29 = vrot.slane %v2711_v27, %v5867_v22  ;;  %v2726_v15 = vrot.slane %v2712_v24, %v5867_v22  ;;  %v1401_v25 = vsel %vm7841_vm4, %v1370_v55, %v1123_v10 }
 0x275   : > { %v1841_v43 = vrot.slane %v1401_v25, %v5867_v22  ;;  %v2727_v48 = vcombine.high %v2719_v62, %v2719_v62 }
 0x276   : > { %v3268_v61 = vcombine.low %v3260_v21, %v3267_v14  ;;  %v3563_v30 = vsel %vm3033_vm11, %v3275_v29, 0.0  ;;  %v2728_v34 = vcombine.high %v2726_v15, %v2726_v15 }
 0x277   : > { %v2228_v52 = vcombine.low %v1834_v31, %v1841_v43  ;;  %v2403_v1 = vpop.f32.mrb[20].mxu0  ;;  %v3624_v2 = vrot.slane %v3563_v30, 1  ;;  %v3712_v44 = vrot.slane %v3563_v30, 2  ;;  %v3276_v56 = vcombine.low %v2719_v62, %v2727_v48 }
 0x278   : > { %v2404_v36 = vadd.f32 %v7069_v9, %v2403_v1  ;;  %v4595_v58 = vpop.f32.mrb[21].mxu0  ;;  %v7120_v40 = vsel %vm7090_vm15, %v3268_v61, 0.0  ;;  %v3277_v3 = vcombine.low %v2726_v15, %v2728_v34 }
 0x279   : > { %v4859_v23 = vpack.i.bf16 %v7120_v40, %v7115_v59  ;;  %v2235_v53 = vrot.slane %v2228_v52, %v5867_v22  ;;  %v3622_v18 = vrot.slane %v7120_v40, 1  ;;  %v3710_v51 = vrot.slane %v7120_v40, 2 }
 0x27a   : > { %vm2477_vm3 = vcmp.ge.f32.partialorder %v2404_v36, 0.0  ;;  %v2500_v38 = vmul.f32 0.2, %v2404_v36  ;;  %v3291_v57 = vrot.slane %v3277_v3, %v5867_v22  ;;  %v3284_v27 = vrot.slane %v3276_v56, %v5867_v22 }
 0x27b   : > { %4860 = vrot.lane.b32.xlu1 %v4859_v23, %s5255_s9  ;;  %4630 = vmatmul.mubr.msk.f32.gmra.mrb[44].mxu0 %vm2236_vm12, %v2235_v53  ;;  %v3623_v39 = vsel %vm306_vm0, %v3621_v19, %v3622_v18  ;;  %v3625_v63 = vsel %vm306_vm0, %v3622_v18, %v3624_v2  ;;  %v3711_v47 = vsel %vm447_vm1, %v3709_v16, %v3710_v51  ;;  %vm2960_vm12 = vcmp.ge.s32.totalorder %v2946_v26, 0 }
 0x27c   : > { %v2523_v28 = vsel %vm2477_vm3, %v2404_v36, %v2500_v38  ;;  %v7135_v20 = vpack.i.bf16 %v3625_v63, %v3623_v39  ;;  %v3713_v37 = vsel %vm447_vm1, %v3710_v51, %v3712_v44  ;;  %vm7145_vm2 = vmand %vm2960_vm12, %vm2970_vm6  ;;  %v3292_v35 = vcombine.low %v3284_v27, %v3291_v57 }
 0x27d   : > { %v2729_v46 = vcombine.high %v2523_v28, %v2523_v28  ;;  %v2736_v17 = vrot.slane %v2523_v28, %v5867_v22  ;;  %v4869_v12 = vpack.i.bf16 %v3713_v37, %v3711_v47  ;;  %vm3001_vm15 = vmand %vm7145_vm2, %vm2986_vm13  ;;  %vm7844_vm3 = vcmask 261120  }
 0x27e   : > { %4865 = vrot.lane.b32.xlu0 %v7135_v20, %s5256_s13  ;;  %vm3036_vm4 = vmand %vm7145_vm2, %vm3021_vm14  ;;  %vm4160_vm12 = vcmask 326656  }
 0x27f   : > { %v2743_v7 = vrot.slane %v2729_v46, %v5867_v22  ;;  %v2744_v45 = vcombine.high %v2736_v17, %v2736_v17  ;;  %4870 = vrot.lane.b32.xlu1 %v4869_v12, %s5257_s10  ;;  %vm7845_vm6 = vmmov %vm7844_vm3 }
 0x281   : > { %v2745_v42 = vcombine.high %v2743_v7, %v2743_v7  ;;  %v3293_v33 = vcombine.low %v2736_v17, %v2744_v45  ;;  %v4801_v45 = vpop.permute.xlu1 %4800 }
 0x282   : > { %4875 = vrot.lane.b32.xlu0 %v6989_v6, %s5244_s8  ;;  %v7162_v6 = vsel %vm3001_vm15, %v3292_v35, 0.0  ;;  %v4802_v35 = vunpack.i.l.bf16 %v4801_v45 }
 0x283   : > { %v3294_v11 = vcombine.low %v2743_v7, %v2745_v42  ;;  %v3301_v8 = vrot.slane %v3293_v33, %v5867_v22  ;;  %4880 = vrot.lane.b32.xlu1 %v6996_v32, %s5246_s15  ;;  %v3714_v30 = vrot.slane %v7162_v6, 2  ;;  %v3626_v58 = vrot.slane %v7162_v6, 1 }
 0x285   : > { %v3308_v21 = vrot.slane %v3294_v11, %v5867_v22 }
 0x286   : > { %4885 = vrot.lane.b32.xlu0 %v4859_v23, %s5248_s16 }
 0x287   : > { %v3309_v10 = vcombine.low %v3301_v8, %v3308_v21  ;;  %4890 = vrot.lane.b32.xlu1 %v7135_v20, %s5252_s27 }
 0x289   : > { %v7166_v55 = vsel %vm7145_vm2, %v3309_v10, 0.0 }
 0x28a   : > { %v4899_v32 = vpack.i.bf16 %v7166_v55, %v7162_v6  ;;  %4895 = vrot.lane.b32.xlu0 %v4869_v12, %s5254_s30  ;;  %v3715_v62 = vrot.slane %v7166_v55, 2  ;;  %v3627_v52 = vrot.slane %v7166_v55, 1 }
 0x28c   : > { %4900 = vrot.lane.b32.xlu1 %v4899_v32, %s5255_s9  ;;  %v3716_v23 = vsel %vm447_vm1, %v3714_v30, %v3715_v62  ;;  %v3628_v19 = vsel %vm306_vm0, %v3626_v58, %v3627_v52 }
 0x296   : > { %v2408_v14 = vpop.f32.mrb[22].mxu0 }
 0x297   : > { %v2409_v29 = vadd.f32 %v7069_v9, %v2408_v14  ;;  %v4598_v15 = vpop.f32.mrb[23].mxu0  ;;  %v4803_v14 = vunpack.i.h.bf16 %v4801_v45 }
 0x299   : > { %vm2478_vm8 = vcmp.ge.f32.partialorder %v2409_v29, 0.0  ;;  %v2501_v25 = vmul.f32 0.2, %v2409_v29 }
 0x29b   : > { %v2524_v31 = vsel %vm2478_vm8, %v2409_v29, %v2501_v25  ;;  %vm4177_vm8 = vcmask 392192  }
 0x29c   : > { %v2753_v43 = vrot.slane %v2524_v31, %v5867_v22  ;;  %v2746_v53 = vcombine.high %v2524_v31, %v2524_v31  ;;  %v4811_v33 = vpop.permute.xlu1 %4810 }
 0x29d   : > { %v4812_v10 = vunpack.i.l.bf16 %v4811_v33 }
 0x29e   : > { %v3316_v61 = vrot.slane %v2753_v43, %v5867_v22  ;;  %v2760_v28 = vrot.slane %v2746_v53, %v5867_v22  ;;  %v2761_v16 = vcombine.high %v2753_v43, %v2753_v43 }
 0x2a0   : > { %v3566_v1 = vsel %vm3036_vm4, %v3316_v61, 0.0  ;;  %v3317_v17 = vcombine.low %v2761_v16, %v2760_v28  ;;  %v2762_v39 = vcombine.high %v2760_v28, %v2760_v28  ;;  %v4813_v61 = vunpack.i.h.bf16 %v4811_v33 }
 0x2a1   : > { %v3629_v34 = vrot.slane %v3566_v1, 1  ;;  %v3717_v36 = vrot.slane %v3566_v1, 2  ;;  %vm7756_vm4 = vcmask 457728  }
 0x2a2   : > { %v3325_v37 = vrot.slane %v3317_v17, %v5867_v22 }
 0x2a3   : > { %v3718_v38 = vsel %vm447_vm1, %v3715_v62, %v3717_v36  ;;  %v3630_v26 = vsel %vm306_vm0, %v3627_v52, %v3629_v34 }
 0x2a4   : > { %v7187_v48 = vpack.i.bf16 %v3718_v38, %v3716_v23  ;;  %v7189_v18 = vpack.i.bf16 %v3630_v26, %v3628_v19 }
 0x2a5   : > { %v2413_v2 = vpop.f32.mrb[24].mxu0 }
 0x2a6   : > { %v2414_v51 = vadd.f32 %v7069_v9, %v2413_v2  ;;  %4910 = vrot.lane.b32.xlu1 %v7187_v48, %s5257_s10  ;;  %v4601_v3 = vpop.f32.mrb[25].mxu0  ;;  %4905 = vrot.lane.b32.xlu0 %v7189_v18, %s5256_s13 }
 0x2a8   : > { %vm2479_vm10 = vcmp.ge.f32.partialorder %v2414_v51, 0.0  ;;  %v2502_v44 = vmul.f32 0.2, %v2414_v51 }
 0x2aa   : > { %v2525_v46 = vsel %vm2479_vm10, %v2414_v51, %v2502_v44  ;;  %4920 = vrot.lane.b32.xlu1 %v4869_v12, %s5246_s15  ;;  %4915 = vrot.lane.b32.xlu0 %v7135_v20, %s5244_s8  ;;  %v4796_v20 = vpop.permute.xlu0 %4795  ;;  %vm4211_vm10 = vcmask 523264  }
 0x2ab   : > { %v2770_v63 = vrot.slane %v2525_v46, %v5867_v22  ;;  %v4797_v12 = vunpack.i.l.bf16 %v4796_v20  ;;  %v4798_v57 = vunpack.i.h.bf16 %v4796_v20  ;;  %v2763_v27 = vcombine.high %v2525_v46, %v2525_v46 }
 0x2ad   : > { %v3318_v47 = vcombine.low %v2762_v39, %v2770_v63  ;;  %v4096_v11 = vsel %vm1185_vm5, %v6706_v13, %v4797_v12  ;;  %v4097_v8 = vsel %vm1185_vm5, %v6700_v49, %v4798_v57  ;;  %v2777_v29 = vrot.slane %v2763_v27, %v5867_v22 }
 0x2ae   : > { %4930 = vrot.lane.b32.xlu1 %v7189_v18, %s5252_s27  ;;  %4925 = vrot.lane.b32.xlu0 %v4899_v32, %s5248_s16  ;;  %v4806_v42 = vpop.permute.xlu0 %4805  ;;  %v2778_v15 = vcombine.high %v2770_v63, %v2770_v63  ;;  %v4112_v43 = vsel %vm1247_vm7, %v4096_v11, %v4802_v35  ;;  %v2947_v13 = vadd.s32 5, %v6626_v0  ;;  %v4113_v52 = vsel %vm1247_vm7, %v4097_v8, %v4803_v14 }
 0x2af   : > { %v3332_v56 = vrot.slane %v3318_v47, %v5867_v22  ;;  %v4807_v24 = vunpack.i.l.bf16 %v4806_v42  ;;  %v4808_v21 = vunpack.i.h.bf16 %v4806_v42  ;;  %v2779_v19 = vcombine.high %v2777_v29, %v2777_v29 }
 0x2b0   : > { %v3334_v23 = vcombine.low %v2778_v15, %v2777_v29  ;;  %vm2961_vm2 = vcmp.ge.s32.totalorder %v2947_v13, 0  ;;  %vm2971_vm15 = vcmp.lt.s32.totalorder %v2947_v13, 16 }
 0x2b1   : > { %v7206_v7 = vcombine.low %v3325_v37, %v3332_v56  ;;  %v4128_v49 = vsel %vm7758_vm9, %v4112_v43, %v4807_v24  ;;  %v4129_v30 = vsel %vm7758_vm9, %v4113_v52, %v4808_v21 }
 0x2b2   : > { %4935 = vrot.lane.b32.xlu0 %v7187_v48, %s5254_s30  ;;  %v4816_v62 = vpop.permute.xlu0 %4815  ;;  %v4144_v34 = vsel %vm7844_vm3, %v4128_v49, %v4812_v10  ;;  %v4145_v38 = vsel %vm7845_vm6, %v4129_v30, %v4813_v61  ;;  %v3342_v17 = vrot.slane %v3334_v23, %v5867_v22  ;;  %vm7757_vm3 = vcmask 588800  }
 0x2b3   : > { %v4818_v36 = vunpack.i.h.bf16 %v4816_v62  ;;  %v4817_v58 = vunpack.i.l.bf16 %v4816_v62 }
 0x2b5   : > { %v4161_v44 = vsel %vm4160_vm12, %v4144_v34, %v4817_v58  ;;  %v4162_v46 = vsel %vm4160_vm12, %v4145_v38, %v4818_v36  ;;  %v7850_v36 = vmov 0.0|0.0  }
 0x2be   : > { %v2418_v32 = vpop.f32.mrb[26].mxu0 }
 0x2bf   : > { %v2419_v25 = vadd.f32 %v7069_v9, %v2418_v32  ;;  %v4604_v31 = vpop.f32.mrb[27].mxu0 }
 0x2c1   : > { %vm2480_vm11 = vcmp.ge.f32.partialorder %v2419_v25, 0.0  ;;  %v2503_v1 = vmul.f32 0.2, %v2419_v25 }
 0x2c3   : > { %v2526_v53 = vsel %vm2480_vm11, %v2419_v25, %v2503_v1  ;;  %vm7228_vm11 = vmand %vm2961_vm2, %vm2971_vm15 }
 0x2c4   : > { %v2780_v26 = vcombine.high %v2526_v53, %v2526_v53  ;;  %v2787_v2 = vrot.slane %v2526_v53, %v5867_v22  ;;  %v4821_v51 = vpop.permute.xlu1 %4820  ;;  %vm3004_vm2 = vmand %vm7228_vm11, %vm2986_vm13 }
 0x2c5   : > { %v4823_v3 = vunpack.i.h.bf16 %v4821_v51  ;;  %v4822_v16 = vunpack.i.l.bf16 %v4821_v51  ;;  %vm3039_vm15 = vmand %vm7228_vm11, %vm3021_vm14  ;;  %v7257_v52 = vsel %vm3004_vm2, %v7206_v7, 0.0 }
 0x2c6   : > { %v3335_v28 = vcombine.low %v2779_v19, %v2787_v2  ;;  %v2795_v39 = vcombine.high %v2787_v2, %v2787_v2  ;;  %v2794_v47 = vrot.slane %v2780_v26, %v5867_v22  ;;  %v3631_v23 = vrot.slane %v7257_v52, 1 }
 0x2c7   : > { %v4826_v63 = vpop.permute.xlu0 %4825  ;;  %v4179_v20 = vsel %vm4177_vm8, %v4162_v46, %v4823_v3  ;;  %v4178_v8 = vsel %vm4177_vm8, %v4161_v44, %v4822_v16  ;;  %v3719_v38 = vrot.slane %v7257_v52, 2 }
 0x2c8   : > { %v3349_v56 = vrot.slane %v3335_v28, %v5867_v22  ;;  %v4828_v45 = vunpack.i.h.bf16 %v4826_v63  ;;  %v4831_v12 = vpop.permute.xlu1 %4830  ;;  %v2423_v57 = vpop.f32.mrb[28].mxu0  ;;  %v4827_v42 = vunpack.i.l.bf16 %v4826_v63  ;;  %v3357_v10 = vrot.slane %v2795_v39, %v5867_v22 }
 0x2c9   : > { %v4833_v33 = vunpack.i.h.bf16 %v4831_v12  ;;  %v4832_v27 = vunpack.i.l.bf16 %v4831_v12  ;;  %v2424_v11 = vadd.f32 %v7069_v9, %v2423_v57  ;;  %v4607_v24 = vpop.f32.mrb[29].mxu0  ;;  %v2796_v29 = vcombine.high %v2794_v47, %v2794_v47 }
 0x2ca   : > { %v3350_v35 = vcombine.low %v3342_v17, %v3349_v56  ;;  %v4196_v21 = vsel %vm7756_vm4, %v4179_v20, %v4828_v45  ;;  %v4195_v32 = vsel %vm7756_vm4, %v4178_v8, %v4827_v42  ;;  %vm7251_vm4 = vmpackc.low %vm7757_vm3, %vm7757_vm3  ;;  %v3569_v62 = vsel %vm3039_vm15, %v3357_v10, 0.0 }
 0x2cb   : > { %vm2481_vm6 = vcmp.ge.f32.partialorder %v2424_v11, 0.0  ;;  %v2504_v14 = vmul.f32 0.2, %v2424_v11  ;;  %v4212_v15 = vsel %vm4211_vm10, %v4195_v32, %v4832_v27  ;;  %v4213_v25 = vsel %vm4211_vm10, %v4196_v21, %v4833_v33  ;;  %v4836_v63 = vpop.permute.xlu0 %4835 }
 0x2cc   : > { %v4674_v61 = vpack.c.bf16 %v4213_v25, %v4212_v15  ;;  %v7263_v49 = vsel %vm7228_vm11, %v3350_v35, 0.0  ;;  %v3358_v1 = vcombine.low %v2794_v47, %v2796_v29  ;;  %v3634_v58 = vrot.slane %v3569_v62, 1  ;;  %v4841_v37 = vpop.permute.xlu1 %4840 }
 0x2cd   : > { %v2527_v43 = vsel %vm2481_vm6, %v2424_v11, %v2504_v14  ;;  %v4939_v34 = vpack.i.bf16 %v7263_v49, %v7257_v52  ;;  %v3632_v7 = vrot.slane %v7263_v49, 1  ;;  %v3720_v19 = vrot.slane %v7263_v49, 2 }
 0x2ce   : > { %v2804_v13 = vrot.slane %v2527_v43, %v5867_v22  ;;  %4676 = vmatpush3.bf16.xpose.msk.msra.mxu1 %vm7251_vm4, %v4674_v61  ;;  %v3722_v26 = vrot.slane %v3569_v62, 2  ;;  %v3366_v3 = vrot.slane %v3358_v1, %v5867_v22  ;;  %v2797_v47 = vcombine.high %v2527_v43, %v2527_v43 }
 0x2cf   : > { %4677 = vmatprep.subr.bf16.mxu1 %v7850_v36  ;;  %4940 = vrot.lane.b32.xlu1 %v4939_v34, %s5255_s9  ;;  %v3633_v2 = vsel %vm306_vm0, %v3631_v23, %v3632_v7  ;;  %v3635_v51 = vsel %vm306_vm0, %v3632_v7, %v3634_v58  ;;  %v3721_v44 = vsel %vm447_vm1, %v3719_v38, %v3720_v19  ;;  %v2948_v56 = vadd.s32 6, %v6626_v0  ;;  %v4846_v12 = vpop.permute.xlu0 %4845 }
 0x2d0   : > { %v2812_v30 = vcombine.high %v2804_v13, %v2804_v13  ;;  %v7277_v16 = vpack.i.bf16 %v3635_v51, %v3633_v2  ;;  %v3723_v46 = vsel %vm447_vm1, %v3720_v19, %v3722_v26  ;;  %v4838_v20 = vunpack.i.h.bf16 %v4836_v63  ;;  %v4851_v8 = vpop.permute.xlu1 %4850 }
 0x2d1   : > { %v7285_v39 = vpack.i.bf16 %v3723_v46, %v3721_v44  ;;  %v4837_v45 = vunpack.i.l.bf16 %v4836_v63  ;;  %v4842_v42 = vunpack.i.l.bf16 %v4841_v37  ;;  %vm2962_vm11 = vcmp.ge.s32.totalorder %v2948_v56, 0 }
 0x2d2   : > { %v3359_v53 = vcombine.low %v2804_v13, %v2812_v30  ;;  %4945 = vrot.lane.b32.xlu0 %v7277_v16, %s5256_s13  ;;  %v4099_v11 = vsel %vm1185_vm5, %v6834_v60, %v4838_v20  ;;  %v4847_v35 = vunpack.i.l.bf16 %v4846_v12  ;;  %vm2972_vm6 = vcmp.lt.s32.totalorder %v2948_v56, 16 }
 0x2d3   : > { %4950 = vrot.lane.b32.xlu1 %v7285_v39, %s5257_s10  ;;  %v4098_v24 = vsel %vm1185_vm5, %v6830_v54, %v4837_v45  ;;  %v4848_v10 = vunpack.i.h.bf16 %v4846_v12  ;;  %v4856_v14 = vpop.permute.xlu0 %4855  ;;  %v4853_v25 = vunpack.i.h.bf16 %v4851_v8  ;;  %v4852_v60 = vunpack.i.l.bf16 %v4851_v8  ;;  %vm7310_vm15 = vmand %vm2962_vm11, %vm2972_vm6 }
 0x2d4   : > { %v3373_v28 = vrot.slane %v3359_v53, %v5867_v22  ;;  %v4114_v29 = vsel %vm1247_vm7, %v4098_v24, %v4842_v42  ;;  %v4858_v58 = vunpack.i.h.bf16 %v4856_v14  ;;  %v4857_v23 = vunpack.i.l.bf16 %v4856_v14  ;;  %vm3007_vm11 = vmand %vm7310_vm15, %vm2986_vm13 }
 0x2d5   : > { %v4130_v61 = vsel %vm7758_vm9, %v4114_v29, %v4847_v35  ;;  %vm7853_vm6 = vcmask 261120   ;;  %vm3042_vm3 = vmand %vm7310_vm15, %vm3021_vm14 }
 0x2d6   : > { %v7281_v17 = vcombine.low %v3366_v3, %v3373_v28  ;;  %4955 = vrot.lane.b32.xlu0 %v7189_v18, %s5244_s8  ;;  %v2811_v18 = vrot.slane %v2797_v47, %v5867_v22  ;;  %v4146_v26 = vsel %vm7853_vm6, %v4130_v61, %v4852_v60 }
 0x2d7   : > { %4960 = vrot.lane.b32.xlu1 %v7187_v48, %s5246_s15  ;;  %v4843_v48 = vunpack.i.h.bf16 %v4841_v37  ;;  %v4163_v44 = vsel %vm4160_vm12, %v4146_v26, %v4857_v23 }
 0x2d8   : > { %v2813_v21 = vcombine.high %v2811_v18, %v2811_v18  ;;  %v7335_v45 = vsel %vm3007_vm11, %v7281_v17, 0.0 }
 0x2d9   : > { %v4115_v15 = vsel %vm1247_vm7, %v4099_v11, %v4843_v48  ;;  %v3724_v29 = vrot.slane %v7335_v45, 2 }
 0x2da   : > { %4965 = vrot.lane.b32.xlu0 %v4939_v34, %s5248_s16  ;;  %v3375_v30 = vcombine.low %v2811_v18, %v2813_v21  ;;  %v4131_v34 = vsel %vm7758_vm9, %v4115_v15, %v4848_v10 }
 0x2db   : > { %4970 = vrot.lane.b32.xlu1 %v7277_v16, %s5252_s27 }
 0x2dc   : > { %v3383_v28 = vrot.slane %v3375_v30, %v5867_v22 }
 0x2de   : > { %4975 = vrot.lane.b32.xlu0 %v7285_v39, %s5254_s30 }
 0x2e7   : > { %v2428_v57 = vpop.f32.mrb[30].mxu0 }
 0x2e8   : > { %v2429_v33 = vadd.f32 %v7069_v9, %v2428_v57  ;;  %v4610_v27 = vpop.f32.mrb[31].mxu0 }
 0x2ea   : > { %vm2482_vm2 = vcmp.ge.f32.partialorder %v2429_v33, 0.0  ;;  %v2505_v32 = vmul.f32 0.2, %v2429_v33 }
 0x2ec   : > { %v2528_v43 = vsel %vm2482_vm2, %v2429_v33, %v2505_v32  ;;  %vm7854_vm2 = vmmov %vm7853_vm6  ;;  %vm7855_vm6 = vcmask 457728   ;;  %v3636_v32 = vrot.slane %v7335_v45, 1 }
 0x2ed   : > { %v2814_v62 = vcombine.high %v2528_v43, %v2528_v43  ;;  %v2821_v54 = vrot.slane %v2528_v43, %v5867_v22  ;;  %v4861_v1 = vpop.permute.xlu1 %4860  ;;  %v4147_v2 = vsel %vm7854_vm2, %v4131_v34, %v4853_v25  ;;  %vm7856_vm2 = vmmov %vm7855_vm6 }
 0x2ee   : > { %v4863_v38 = vunpack.i.h.bf16 %v4861_v1  ;;  %v4862_v19 = vunpack.i.l.bf16 %v4861_v1  ;;  %v4164_v46 = vsel %vm4160_vm12, %v4147_v2, %v4858_v58 }
 0x2ef   : > { %v7316_v7 = vrot.slane %v2814_v62, %v5867_v22  ;;  %v2829_v53 = vcombine.high %v2821_v54, %v2821_v54 }
 0x2f0   : > { %v4866_v63 = vpop.permute.xlu0 %4865  ;;  %v4180_v12 = vsel %vm4177_vm8, %v4163_v44, %v4862_v19  ;;  %v4181_v18 = vsel %vm4177_vm8, %v4164_v46, %v4863_v38 }
 0x2f1   : > { %v3376_v51 = vcombine.low %v2821_v54, %v2829_v53  ;;  %v3398_v3 = vrot.slane %v7316_v7, %v5867_v22  ;;  %v4868_v37 = vunpack.i.h.bf16 %v4866_v63  ;;  %v4867_v56 = vunpack.i.l.bf16 %v4866_v63  ;;  %v4871_v20 = vpop.permute.xlu1 %4870 }
 0x2f2   : > { %v4873_v57 = vunpack.i.h.bf16 %v4871_v20  ;;  %v4872_v48 = vunpack.i.l.bf16 %v4871_v20  ;;  %v2830_v53 = vcombine.high %v7316_v7, %v7316_v7 }
 0x2f3   : > { %v3390_v47 = vrot.slane %v3376_v51, %v5867_v22  ;;  %v3572_v33 = vsel %vm3042_vm3, %v3398_v3, 0.0  ;;  %v4197_v27 = vsel %vm7855_vm6, %v4180_v12, %v4867_v56  ;;  %v4198_v11 = vsel %vm7856_vm2, %v4181_v18, %v4868_v37 }
 0x2f4   : > { %v4214_v24 = vsel %vm4211_vm10, %v4197_v27, %v4872_v48  ;;  %v4215_v35 = vsel %vm4211_vm10, %v4198_v11, %v4873_v57  ;;  %v3639_v21 = vrot.slane %v3572_v33, 1  ;;  %v3727_v25 = vrot.slane %v3572_v33, 2  ;;  %v4876_v3 = vpop.permute.xlu0 %4875 }
 0x2f5   : > { %v3391_v42 = vcombine.low %v3383_v28, %v3390_v47  ;;  %v4678_v8 = vpack.c.bf16 %v4215_v35, %v4214_v24  ;;  %v4878_v46 = vunpack.i.h.bf16 %v4876_v3  ;;  %v4877_v63 = vunpack.i.l.bf16 %v4876_v3 }
 0x2f6   : > { %v2949_v24 = vadd.s32 7, %v6626_v0 }
 0x2f7   : > { %v7345_v17 = vsel %vm7310_vm15, %v3391_v42, 0.0  ;;  %4680 = vmatpush3.bf16.xpose.msk.msra.mxu1 %vm7251_vm4, %v4678_v8  ;;  %v4101_v12 = vsel %vm1185_vm5, %v6977_v41, %v4878_v46  ;;  %v4100_v18 = vsel %vm1185_vm5, %v6969_v4, %v4877_v63 }
 0x2f8   : > { %v4979_v10 = vpack.i.bf16 %v7345_v17, %v7335_v45  ;;  %v3637_v14 = vrot.slane %v7345_v17, 1  ;;  %v3725_v15 = vrot.slane %v7345_v17, 2  ;;  %4681 = vmatprep.subr.bf16.mxu1 %v7850_v36  ;;  %v4886_v47 = vpop.permute.xlu0 %4885  ;;  %vm2963_vm11 = vcmp.ge.s32.totalorder %v2949_v24, 0 }
 0x2f9   : > { %v4888_v57 = vunpack.i.h.bf16 %v4886_v47  ;;  %v4887_v48 = vunpack.i.l.bf16 %v4886_v47  ;;  %vm2973_vm6 = vcmp.lt.s32.totalorder %v2949_v24, 16 }
 0x2fa   : > { %4980 = vrot.lane.b32.xlu1 %v4979_v10, %s5255_s9  ;;  %v3638_v43 = vsel %vm306_vm0, %v3636_v32, %v3637_v14  ;;  %v3640_v61 = vsel %vm306_vm0, %v3637_v14, %v3639_v21  ;;  %v3726_v62 = vsel %vm447_vm1, %v3724_v29, %v3725_v15  ;;  %v3728_v13 = vsel %vm447_vm1, %v3725_v15, %v3727_v25 }
 0x2fb   : > { %v7358_v60 = vpack.i.bf16 %v3640_v61, %v3638_v43  ;;  %v2433_v54 = vpop.f32.mrb[32].mxu0  ;;  %v7366_v34 = vpack.i.bf16 %v3728_v13, %v3726_v62 }
 0x2fc   : > { %v2434_v1 = vadd.f32 %v7069_v9, %v2433_v54  ;;  %v4613_v30 = vpop.f32.mrb[33].mxu0  ;;  %v4896_v11 = vpop.permute.xlu0 %4895 }
 0x2fd   : > { %4985 = vrot.lane.b32.xlu0 %v7358_v60, %s5256_s13  ;;  %v4898_v15 = vunpack.i.h.bf16 %v4896_v11  ;;  %v4897_v25 = vunpack.i.l.bf16 %v4896_v11 }
 0x2fe   : > { %vm2483_vm3 = vcmp.ge.f32.partialorder %v2434_v1, 0.0  ;;  %v2506_v58 = vmul.f32 0.2, %v2434_v1  ;;  %4990 = vrot.lane.b32.xlu1 %v7366_v34, %s5257_s10 }
 0x300   : > { %v2529_v23 = vsel %vm2483_vm3, %v2434_v1, %v2506_v58  ;;  %vm7857_vm3 = vcmask 261120  }
 0x301   : > { %4995 = vrot.lane.b32.xlu0 %v7277_v16, %s5244_s8  ;;  %v2831_v38 = vcombine.high %v2529_v23, %v2529_v23  ;;  %v2838_v19 = vrot.slane %v2529_v23, %v5867_v22  ;;  %v4881_v16 = vpop.permute.xlu1 %4880 }
 0x302   : > { %5000 = vrot.lane.b32.xlu1 %v7285_v39, %s5246_s15  ;;  %v4883_v37 = vunpack.i.h.bf16 %v4881_v16  ;;  %v4882_v56 = vunpack.i.l.bf16 %v4881_v16 }
 0x303   : > { %v2845_v26 = vrot.slane %v2831_v38, %v5867_v22  ;;  %v2846_v2 = vcombine.high %v2838_v19, %v2838_v19  ;;  %v3399_v51 = vcombine.low %v2830_v53, %v2838_v19 }
 0x304   : > { %v4116_v35 = vsel %vm1247_vm7, %v4100_v18, %v4882_v56  ;;  %v4117_v8 = vsel %vm1247_vm7, %v4101_v12, %v4883_v37 }
 0x305   : > { %5005 = vrot.lane.b32.xlu0 %v4979_v10, %s5248_s16  ;;  %v3400_v28 = vcombine.low %v2846_v2, %v2845_v26  ;;  %v3407_v7 = vrot.slane %v3399_v51, %v5867_v22  ;;  %v4891_v20 = vpop.permute.xlu1 %4890  ;;  %v4132_v41 = vsel %vm7758_vm9, %v4116_v35, %v4887_v48  ;;  %v4133_v4 = vsel %vm7758_vm9, %v4117_v8, %v4888_v57  ;;  %vm7858_vm9 = vmmov %vm7857_vm3 }
 0x306   : > { %5010 = vrot.lane.b32.xlu1 %v7358_v60, %s5252_s27  ;;  %v4893_v32 = vunpack.i.h.bf16 %v4891_v20  ;;  %v4892_v14 = vunpack.i.l.bf16 %v4891_v20  ;;  %v2847_v13 = vcombine.high %v2845_v26, %v2845_v26 }
 0x307   : > { %v3414_v44 = vrot.slane %v3400_v28, %v5867_v22 }
 0x308   : > { %v4149_v23 = vsel %vm7857_vm3, %v4133_v4, %v4893_v32  ;;  %v4148_v2 = vsel %vm7858_vm9, %v4132_v41, %v4892_v14  ;;  %vm7411_vm9 = vmand %vm2963_vm11, %vm2973_vm6 }
 0x309   : > { %5015 = vrot.lane.b32.xlu0 %v7366_v34, %s5254_s30  ;;  %v7385_v39 = vcombine.low %v3407_v7, %v3414_v44  ;;  %v4901_v21 = vpop.permute.xlu1 %4900  ;;  %v4166_v51 = vsel %vm4160_vm12, %v4149_v23, %v4898_v15  ;;  %v4165_v7 = vsel %vm4160_vm12, %v4148_v2, %v4897_v25  ;;  %vm3010_vm11 = vmand %vm7411_vm9, %vm2986_vm13  ;;  %v2950_v25 = vadd.s32 8, %v6626_v0 }
 0x30a   : > { %v4903_v54 = vunpack.i.h.bf16 %v4901_v21  ;;  %v4902_v3 = vunpack.i.l.bf16 %v4901_v21  ;;  %vm3045_vm6 = vmand %vm7411_vm9, %vm3021_vm14 }
 0x30c   : > { %v4183_v44 = vsel %vm4177_vm8, %v4166_v51, %v4903_v54  ;;  %v7434_v54 = vsel %vm3010_vm11, %v7385_v39, 0.0 }
 0x30d   : > { %v3641_v39 = vrot.slane %v7434_v54, 1 }
 0x30f   : > { %v2438_v42 = vpop.f32.mrb[34].mxu0 }
 0x310   : > { %v2439_v33 = vadd.f32 %v7069_v9, %v2438_v42  ;;  %v4616_v27 = vpop.f32.mrb[35].mxu0  ;;  %v4182_v42 = vsel %vm4177_vm8, %v4165_v7, %v4902_v3  ;;  %v3729_v3 = vrot.slane %v7434_v54, 2 }
 0x312   : > { %vm2484_vm15 = vcmp.ge.f32.partialorder %v2439_v33, 0.0  ;;  %v2507_v10 = vmul.f32 0.2, %v2439_v33 }
 0x313   : > { %v2443_v29 = vpop.f32.mrb[36].mxu0 }
 0x314   : > { %v2530_v43 = vsel %vm2484_vm15, %v2439_v33, %v2507_v10  ;;  %v2444_v61 = vadd.f32 %v7069_v9, %v2443_v29  ;;  %v4619_v62 = vpop.f32.mrb[37].mxu0  ;;  %vm7861_vm15 = vcmask 457728  }
 0x315   : > { %v2848_v1 = vcombine.high %v2530_v43, %v2530_v43  ;;  %v2855_v30 = vrot.slane %v2530_v43, %v5867_v22 }
 0x316   : > { %vm2485_vm2 = vcmp.ge.f32.partialorder %v2444_v61, 0.0  ;;  %v2508_v58 = vmul.f32 0.2, %v2444_v61 }
 0x317   : > { %v2862_v53 = vrot.slane %v2848_v1, %v5867_v22  ;;  %v2863_v38 = vcombine.high %v2855_v30, %v2855_v30  ;;  %v3416_v19 = vcombine.low %v2847_v13, %v2855_v30 }
 0x318   : > { %v2531_v28 = vsel %vm2485_vm2, %v2444_v61, %v2508_v58  ;;  %v4911_v26 = vpop.permute.xlu1 %4910  ;;  %v4906_v16 = vpop.permute.xlu0 %4905  ;;  %vm7862_vm2 = vmmov %vm7861_vm15 }
 0x319   : > { %v3417_v46 = vcombine.low %v2863_v38, %v2862_v53  ;;  %v2865_v63 = vcombine.high %v2531_v28, %v2531_v28  ;;  %v2864_v47 = vcombine.high %v2862_v53, %v2862_v53  ;;  %v3424_v37 = vrot.slane %v3416_v19, %v5867_v22 }
 0x31a   : > { %v4913_v56 = vunpack.i.h.bf16 %v4911_v26  ;;  %v4908_v20 = vunpack.i.h.bf16 %v4906_v16  ;;  %v4912_v57 = vunpack.i.l.bf16 %v4911_v26  ;;  %v4907_v48 = vunpack.i.l.bf16 %v4906_v16 }
 0x31b   : > { %v3431_v12 = vrot.slane %v3417_v46, %v5867_v22  ;;  %v2879_v18 = vrot.slane %v2865_v63, %v5867_v22  ;;  %v2872_v27 = vrot.slane %v2531_v28, %v5867_v22  ;;  %v3439_v10 = vrot.slane %v2864_v47, %v5867_v22 }
 0x31c   : > { %v4200_v11 = vsel %vm7861_vm15, %v4183_v44, %v4908_v20  ;;  %v4199_v8 = vsel %vm7862_vm2, %v4182_v42, %v4907_v48  ;;  %vm2964_vm15 = vcmp.ge.s32.totalorder %v2950_v25, 0  ;;  %vm2974_vm2 = vcmp.lt.s32.totalorder %v2950_v25, 16 }
 0x31d   : > { %v3432_v35 = vcombine.low %v3424_v37, %v3431_v12  ;;  %v2881_v21 = vcombine.high %v2879_v18, %v2879_v18  ;;  %v4216_v4 = vsel %vm4211_vm10, %v4199_v8, %v4912_v57  ;;  %v4217_v32 = vsel %vm4211_vm10, %v4200_v11, %v4913_v56 }
 0x31e   : > { %v2880_v24 = vcombine.high %v2872_v27, %v2872_v27  ;;  %v4682_v29 = vpack.c.bf16 %v4217_v32, %v4216_v4  ;;  %v3575_v62 = vsel %vm3045_vm6, %v3439_v10, 0.0  ;;  %v4916_v4 = vpop.permute.xlu0 %4915  ;;  %v4921_v32 = vpop.permute.xlu1 %4920 }
 0x31f   : > { %v2448_v41 = vpop.f32.mrb[38].mxu0  ;;  %v3441_v43 = vcombine.low %v2879_v18, %v2881_v21  ;;  %v7438_v13 = vsel %vm7411_vm9, %v3432_v35, 0.0  ;;  %v3644_v19 = vrot.slane %v3575_v62, 1  ;;  %v3732_v44 = vrot.slane %v3575_v62, 2  ;;  %vm7455_vm9 = vmand %vm2964_vm15, %vm2974_vm2 }
 0x320   : > { %v2449_v14 = vadd.f32 %v7069_v9, %v2448_v41  ;;  %v4622_v15 = vpop.f32.mrb[39].mxu0  ;;  %4684 = vmatpush3.bf16.xpose.msk.msra.mxu1 %vm7251_vm4, %v4682_v29  ;;  %v3440_v9 = vcombine.low %v2872_v27, %v2880_v24  ;;  %v5019_v30 = vpack.i.bf16 %v7438_v13, %v7434_v54  ;;  %v3642_v38 = vrot.slane %v7438_v13, 1  ;;  %vm3013_vm11 = vmand %vm7455_vm9, %vm2986_vm13 }
 0x321   : > { %4685 = vmatprep.subr.bf16.mxu1 %v7850_v36  ;;  %v3455_v53 = vrot.slane %v3441_v43, %v5867_v22  ;;  %v3730_v28 = vrot.slane %v7438_v13, 2  ;;  %v4918_v29 = vunpack.i.h.bf16 %v4916_v4  ;;  %v4922_v15 = vunpack.i.l.bf16 %v4921_v32 }
 0x322   : > { %vm2486_vm3 = vcmp.ge.f32.partialorder %v2449_v14, 0.0  ;;  %v2509_v61 = vmul.f32 0.2, %v2449_v14  ;;  %5020 = vrot.lane.b32.xlu1 %v5019_v30, %s5255_s9  ;;  %v3448_v26 = vrot.slane %v3440_v9, %v5867_v22  ;;  %v3643_v16 = vsel %vm306_vm0, %v3641_v39, %v3642_v38  ;;  %v4926_v24 = vpop.permute.xlu0 %4925 }
 0x323   : > { %v3645_v7 = vsel %vm306_vm0, %v3642_v38, %v3644_v19  ;;  %v3731_v56 = vsel %vm447_vm1, %v3729_v3, %v3730_v28  ;;  %v3733_v12 = vsel %vm447_vm1, %v3730_v28, %v3732_v44  ;;  %v4923_v25 = vunpack.i.h.bf16 %v4921_v32 }
 0x324   : > { %v2532_v1 = vsel %vm2486_vm3, %v2449_v14, %v2509_v61  ;;  %v7459_v37 = vpack.i.bf16 %v3645_v7, %v3643_v16  ;;  %v3456_v20 = vcombine.low %v3448_v26, %v3455_v53  ;;  %v7465_v57 = vpack.i.bf16 %v3733_v12, %v3731_v56  ;;  %v4931_v61 = vpop.permute.xlu1 %4930 }
 0x325   : > { %v2882_v58 = vcombine.high %v2532_v1, %v2532_v1  ;;  %v2889_v23 = vrot.slane %v2532_v1, %v5867_v22  ;;  %v4917_v14 = vunpack.i.l.bf16 %v4916_v4  ;;  %v4927_v62 = vunpack.i.l.bf16 %v4926_v24 }
 0x326   : > { %5025 = vrot.lane.b32.xlu0 %v7459_v37, %s5256_s13  ;;  %5030 = vrot.lane.b32.xlu1 %v7465_v57, %s5257_s10  ;;  %v3576_v33 = vsel %vm3013_vm11, %v3456_v20, 0.0  ;;  %v4103_v1 = vsel %vm1185_vm5, %v7120_v40, %v4918_v29  ;;  %v4932_v38 = vunpack.i.l.bf16 %v4931_v61  ;;  %vm7865_vm3 = vcmask 195584   ;;  %vm3048_vm11 = vmand %vm7455_vm9, %vm3021_vm14 }
 0x327   : > { %v2896_v2 = vrot.slane %v2882_v58, %v5867_v22  ;;  %v2897_v51 = vcombine.high %v2889_v23, %v2889_v23  ;;  %v3886_v35 = vrot.slane %v3576_v33, 2  ;;  %v3833_v8 = vrot.slane %v3576_v33, 1  ;;  %v4936_v58 = vpop.permute.xlu0 %4935  ;;  %vm7866_vm15 = vmmov %vm7865_vm3 }
 0x328   : > { %v4102_v43 = vsel %vm1185_vm5, %v7115_v59, %v4917_v14  ;;  %v4933_v59 = vunpack.i.h.bf16 %v4931_v61  ;;  %v4937_v28 = vunpack.i.l.bf16 %v4936_v58  ;;  %v4938_v26 = vunpack.i.h.bf16 %v4936_v58 }
 0x329   : > { %v2898_v63 = vcombine.high %v2896_v2, %v2896_v2  ;;  %v3457_v47 = vcombine.low %v2889_v23, %v2897_v51  ;;  %v5145_v23 = vld [vmem:[%s7735_s2] ss:$0 sm:$0xff]  ;;  %v4118_v19 = vsel %vm1247_vm7, %v4102_v43, %v4922_v15  ;;  %v4119_v51 = vsel %vm1247_vm7, %v4103_v1, %v4923_v25 }
 0x32a   : > { %5035 = vrot.lane.b32.xlu0 %v7358_v60, %s5244_s8  ;;  %5040 = vrot.lane.b32.xlu1 %v7366_v34, %s5246_s15  ;;  %v4134_v3 = vsel %vm7865_vm3, %v4118_v19, %v4927_v62  ;;  %vm7867_vm2 = vcmask 261120   ;;  %v2951_v58 = vadd.s32 9, %v6626_v0 }
 0x32b   : > { %v3458_v18 = vcombine.low %v2896_v2, %v2898_v63  ;;  %v3465_v48 = vrot.slane %v3457_v47, %v5867_v22  ;;  %v4150_v20 = vsel %vm7867_vm2, %v4134_v3, %v4932_v38  ;;  %vm7868_vm3 = vmmov %vm7867_vm2 }
 0x32c   : > { %vm2965_vm2 = vcmp.ge.s32.totalorder %v2951_v58, 0 }
 0x32d   : > { %v3472_v42 = vrot.slane %v3458_v18, %v5867_v22 }
 0x32e   : > { %5045 = vrot.lane.b32.xlu0 %v5019_v30, %s5248_s16  ;;  %5050 = vrot.lane.b32.xlu1 %v7459_v37, %s5252_s27  ;;  %v4928_v30 = vunpack.i.h.bf16 %v4926_v24 }
 0x32f   : > { %v3473_v27 = vcombine.low %v3465_v48, %v3472_v42 }
 0x330   : > { %v4135_v40 = vsel %vm7866_vm15, %v4119_v51, %v4928_v30 }
 0x331   : > { %v7481_v11 = vsel %vm7455_vm9, %v3473_v27, 0.0  ;;  %v4151_v42 = vsel %vm7868_vm3, %v4135_v40, %v4933_v59  ;;  %vm7869_vm9 = vcmask 457728  }
 0x332   : > { %v7484_v21 = vpack.i.bf16 %v7481_v11, %v3576_v33  ;;  %v3887_v10 = vrot.slane %v7481_v11, 2  ;;  %v3834_v41 = vrot.slane %v7481_v11, 1  ;;  %5055 = vrot.lane.b32.xlu0 %v7465_v57, %s5254_s30  ;;  %v4167_v33 = vsel %vm4160_vm12, %v4150_v20, %v4937_v28  ;;  %vm7870_vm15 = vmmov %vm7869_vm9 }
 0x334   : > { %v7492_v60 = vsel %vm447_vm1, %v3886_v35, %v3887_v10  ;;  %v7497_v34 = vsel %vm306_vm0, %v3833_v8, %v3834_v41  ;;  %5060 = vrot.lane.b32.xlu1 %v7484_v21, %s5255_s9  ;;  %v4168_v35 = vsel %vm4160_vm12, %v4151_v42, %v4938_v26 }
 0x340   : > { %v2453_v9 = vpop.f32.mrb[40].mxu0 }
 0x341   : > { %v2454_v53 = vadd.f32 %v5145_v23, %v2453_v9  ;;  %v4625_v39 = vpop.f32.mrb[41].mxu0  ;;  %v4941_v7 = vpop.permute.xlu1 %4940 }
 0x342   : > { %v4943_v12 = vunpack.i.h.bf16 %v4941_v7  ;;  %v4942_v18 = vunpack.i.l.bf16 %v4941_v7 }
 0x343   : > { %vm2487_vm6 = vcmp.ge.f32.partialorder %v2454_v53, 0.0  ;;  %v2510_v2 = vmul.f32 0.2, %v2454_v53 }
 0x344   : > { %v4946_v4 = vpop.permute.xlu0 %4945  ;;  %v4184_v25 = vsel %vm4177_vm8, %v4167_v33, %v4942_v18  ;;  %v4185_v43 = vsel %vm4177_vm8, %v4168_v35, %v4943_v12 }
 0x345   : > { %v2533_v16 = vsel %vm2487_vm6, %v2454_v53, %v2510_v2  ;;  %v2458_v44 = vpop.f32.mrb[42].mxu0  ;;  %v4948_v46 = vunpack.i.h.bf16 %v4946_v4  ;;  %v4947_v29 = vunpack.i.l.bf16 %v4946_v4  ;;  %v4951_v61 = vpop.permute.xlu1 %4950 }
 0x346   : > { %v2899_v63 = vcombine.high %v2533_v16, %v2533_v16  ;;  %v2906_v47 = vrot.slane %v2533_v16, %v5867_v22  ;;  %v4628_v56 = vpop.f32.mrb[43].mxu0  ;;  %v2459_v48 = vadd.f32 %v5145_v23, %v2458_v44  ;;  %v4953_v30 = vunpack.i.h.bf16 %v4951_v61 }
 0x347   : > { %v4201_v9 = vsel %vm7869_vm9, %v4184_v25, %v4947_v29  ;;  %v4202_v1 = vsel %vm7870_vm15, %v4185_v43, %v4948_v46  ;;  %v4952_v53 = vunpack.i.l.bf16 %v4951_v61 }
 0x348   : > { %v3480_v27 = vrot.slane %v2906_v47, %v5867_v22  ;;  %v2913_v8 = vrot.slane %v2899_v63, %v5867_v22  ;;  %vm2488_vm6 = vcmp.ge.f32.partialorder %v2459_v48, 0.0  ;;  %v2511_v32 = vmul.f32 0.2, %v2459_v48 }
 0x349   : > { %v2914_v24 = vcombine.high %v2906_v47, %v2906_v47  ;;  %v4219_v2 = vsel %vm4211_vm10, %v4202_v1, %v4953_v30  ;;  %v4218_v40 = vsel %vm4211_vm10, %v4201_v9, %v4952_v53  ;;  %v4961_v9 = vpop.permute.xlu1 %4960 }
 0x34a   : > { %v3578_v14 = vsel %vm3048_vm11, %v3480_v27, 0.0  ;;  %v2534_v62 = vsel %vm2488_vm6, %v2459_v48, %v2511_v32  ;;  %v2915_v39 = vcombine.high %v2913_v8, %v2913_v8  ;;  %v4686_v0 = vpack.c.bf16 %v4219_v2, %v4218_v40  ;;  %v4956_v32 = vpop.permute.xlu0 %4955 }
 0x34b   : > { %v3889_v15 = vrot.slane %v3578_v14, 2  ;;  %v2923_v38 = vrot.slane %v2534_v62, %v5867_v22  ;;  %v2916_v59 = vcombine.high %v2534_v62, %v2534_v62  ;;  %v3481_v28 = vcombine.low %v2914_v24, %v2913_v8 }
 0x34c   : > { %v3836_v7 = vrot.slane %v3578_v14, 1  ;;  %4688 = vmatpush3.bf16.xpose.msk.msra.mxu1 %vm7251_vm4, %v4686_v0  ;;  %vm2975_vm11 = vcmp.lt.s32.totalorder %v2951_v58, 16  ;;  %v4958_v58 = vunpack.i.h.bf16 %v4956_v32 }
 0x34d   : > { %v3890_v19 = vsel %vm447_vm1, %v3887_v10, %v3889_v15  ;;  %v3482_v26 = vcombine.low %v2915_v39, %v2923_v38  ;;  %v2930_v10 = vrot.slane %v2916_v59, %v5867_v22  ;;  %v2931_v47 = vcombine.high %v2923_v38, %v2923_v38  ;;  %4689 = vmatprep.subr.bf16.mxu1 %v7850_v36  ;;  %vm7548_vm6 = vmand %vm2965_vm2, %vm2975_vm11 }
 0x34e   : > { %v2463_v51 = vpop.f32.mrb[44].mxu0  ;;  %v5069_v3 = vpack.i.bf16 %v3890_v19, %v7492_v60  ;;  %v3489_v60 = vrot.slane %v3481_v28, %v5867_v22  ;;  %v3837_v12 = vsel %vm306_vm0, %v3834_v41, %v3836_v7  ;;  %vm3016_vm9 = vmand %vm7548_vm6, %vm2986_vm13  ;;  %v4966_v53 = vpop.permute.xlu0 %4965  ;;  %v4957_v39 = vunpack.i.l.bf16 %v4956_v32 }
 0x34f   : > { %v4631_v16 = vpop.f32.mrb[45].mxu0  ;;  %v3496_v44 = vrot.slane %v3482_v26, %v5867_v22  ;;  %v2464_v63 = vadd.f32 %v5145_v23, %v2463_v51  ;;  %v3498_v48 = vcombine.low %v2931_v47, %v2930_v10  ;;  %v2932_v42 = vcombine.high %v2930_v10, %v2930_v10  ;;  %vm3051_vm15 = vmand %vm7548_vm6, %vm3021_vm14  ;;  %v4971_v28 = vpop.permute.xlu1 %4970 }
 0x350   : > { %5070 = vrot.lane.b32.xlu1 %v5069_v3, %s5257_s10  ;;  %v5064_v27 = vpack.i.bf16 %v3837_v12, %v7497_v34  ;;  %v4963_v38 = vunpack.i.h.bf16 %v4961_v9  ;;  %v4962_v19 = vunpack.i.l.bf16 %v4961_v9  ;;  %v4104_v2 = vsel %vm1185_vm5, %v7162_v6, %v4957_v39 }
 0x351   : > { %vm2489_vm3 = vcmp.ge.f32.partialorder %v2464_v63, 0.0  ;;  %v2512_v56 = vmul.f32 0.2, %v2464_v63  ;;  %v3497_v18 = vcombine.low %v3489_v60, %v3496_v44  ;;  %v4968_v59 = vunpack.i.h.bf16 %v4966_v53 }
 0x352   : > { %5065 = vrot.lane.b32.xlu0 %v5064_v27, %s5256_s13  ;;  %v4967_v51 = vunpack.i.l.bf16 %v4966_v53  ;;  %v4976_v40 = vpop.permute.xlu0 %4975  ;;  %v5258_v26 = vmov 0   ;;  %v4120_v16 = vsel %vm1247_vm7, %v4104_v2, %v4962_v19  ;;  %v4973_v0 = vunpack.i.h.bf16 %v4971_v28 }
 0x353   : > { %v2535_v20 = vsel %vm2489_vm3, %v2464_v63, %v2512_v56  ;;  %v3579_v34 = vsel %vm3016_vm9, %v3497_v18, 0.0  ;;  %5114 = vset.pattern.permute.xlu0 %v5258_v26  ;;  %v4972_v7 = vunpack.i.l.bf16 %v4971_v28  ;;  %v4978_v63 = vunpack.i.h.bf16 %v4976_v40 }
 0x354   : > { %5080 = vrot.lane.b32.xlu1 %v7465_v57, %s5246_s15  ;;  %v2939_v33 = vrot.slane %v2535_v20, %v5867_v22  ;;  %v3506_v57 = vrot.slane %v3498_v48, %v5867_v22  ;;  %v3990_v24 = vrot.slane %v3579_v34, 1  ;;  %v4043_v14 = vrot.slane %v3579_v34, 2 }
 0x355   : > { %v4977_v10 = vunpack.i.l.bf16 %v4976_v40  ;;  %vm7875_vm14 = vcmask 261120   ;;  %vm7877_vm2 = vcmask 457728  }
 0x356   : > { %v2940_v35 = vcombine.high %v2939_v33, %v2939_v33  ;;  %v3499_v8 = vcombine.low %v2932_v42, %v2939_v33  ;;  %5075 = vrot.lane.b32.xlu0 %v7459_v37, %s5244_s8  ;;  %vm7876_vm13 = vmmov %vm7875_vm14 }
 0x357   : > { %vm7878_vm11 = vmmov %vm7877_vm2 }
 0x358   : > { %5090 = vrot.lane.b32.xlu1 %v5064_v27, %s5252_s27  ;;  %v3513_v11 = vrot.slane %v3499_v8, %v5867_v22  ;;  %v3521_v41 = vrot.slane %v2940_v35, %v5867_v22  ;;  %vm7881_vm9 = vmmov %vm7876_vm13 }
 0x35a   : > { %v3581_v4 = vsel %vm3051_vm15, %v3521_v41, 0.0  ;;  %v3514_v5 = vcombine.low %v3506_v57, %v3513_v11  ;;  %5085 = vrot.lane.b32.xlu0 %v7484_v21, %s5248_s16  ;;  %v4105_v21 = vsel %vm1185_vm5, %v7166_v55, %v4958_v58  ;;  %vm7882_vm15 = vmmov %vm7881_vm9  ;;  %s5259_s16 = smov [#allocation2]  }
 0x35b   : > { %v3993_v46 = vrot.slane %v3581_v4, 1  ;;  %v4046_v43 = vrot.slane %v3581_v4, 2  ;;  %v4121_v55 = vsel %vm1247_vm7, %v4105_v21, %v4963_v38  ;;  %s5150_s27 = sshll.u32 %s5259_s16, 4  ;;  %s5151_s27 = int_to_ptr.vmem [resolvable:$false] %s5150_s27 }
 0x35c   : > { %v3580_v50 = vsel %vm7548_vm6, %v3514_v5, 0.0 }
 0x35d   : > { %v5099_v29 = vpack.i.bf16 %v3580_v50, %v3579_v34  ;;  %v3991_v15 = vrot.slane %v3580_v50, 1  ;;  %v4044_v25 = vrot.slane %v3580_v50, 2 }
 0x35e   : > { %5095 = vrot.lane.b32.xlu0 %v5069_v3, %s5254_s30  ;;  %v4229_v3 = vld [vmem:[%s7737_s4] sm:$0xff]  ;;  %s229_s30 = sand.u32 1, %s5216_s19  }
 0x35f   : > { %5100 = vrot.lane.b32.xlu1 %v5099_v29, %s5255_s9  ;;  %v3992_v22 = vsel %vm306_vm0, %v3990_v24, %v3991_v15  ;;  %v3994_v37 = vsel %vm306_vm0, %v3991_v15, %v3993_v46  ;;  %v4045_v61 = vsel %vm447_vm1, %v4043_v14, %v4044_v25  ;;  %v4047_v62 = vsel %vm447_vm1, %v4044_v25, %v4046_v43  ;;  %s4456_s9 = sshll.u32 %s229_s30, 3 }
 0x360   : > { %v5104_v1 = vpack.i.bf16 %v3994_v37, %v3992_v22  ;;  %v5109_v30 = vpack.i.bf16 %v4047_v62, %v4045_v61  ;;  %vm7873_vm0 = vcmask 195584   ;;  %s231_s14 = scalar_lea.vmem [#allocation2], %s4456_s9  ;;  %s5152_s9 = scalar_lea.vmem %s5151_s27, 256 }
 0x361   : > { %v4136_v6 = vsel %vm7873_vm0, %v4120_v16, %v4967_v51  ;;  %vm7874_vm1 = vmmov %vm7873_vm0  ;;  %s4377_s26 = sshll.u32 %s231_s14, 4  ;;  %s7682_s26 = int_to_ptr.vmem [resolvable:$true] %s4377_s26 }
 0x362   : > { %5105 = vrot.lane.b32.xlu0 %v5104_v1, %s5256_s13  ;;  %v4137_v44 = vsel %vm7874_vm1, %v4121_v55, %v4968_v59  ;;  %v4152_v20 = vsel %vm7875_vm14, %v4136_v6, %v4972_v7  ;;  %vm7879_vm3 = vmmov %vm7873_vm0  ;;  %s4504_s13 = sshll.u32 %s5228_s22, 1  ;;  %s5146_s22 = scalar_lea.vmem %s7682_s26, 128 }
 0x363   : > { %5110 = vrot.lane.b32.xlu1 %v5109_v30, %s5257_s10  ;;  %v4153_v23 = vsel %vm7876_vm13, %v4137_v44, %v4973_v0  ;;  %v4169_v18 = vsel %vm4160_vm12, %v4152_v20, %v4977_v10  ;;  %vm7880_vm6 = vmmov %vm7873_vm0  ;;  %s4373_s10 = sadd.s32 %s5224_s21, %s4504_s13  ;;  %s4362_s21 = scalar_lea.sflag [#allocation3], %s229_s30 }
 0x364   : > { %v4170_v48 = vsel %vm4160_vm12, %v4153_v23, %v4978_v63  ;;  %vm7883_vm0 = vmmov %vm7877_vm2  ;;  %s4505_s12 = sshll.u32 %s4373_s10, 7  ;;  %p5147_p13 = scmp.ne.s32.totalorder %s7682_s26, %s5146_s22 }
 0x365   : > { %vm7884_vm1 = vmmov %vm7883_vm0  ;;  %s7680_s15 = scalar_lea.hbm %s7738_s5, %s4505_s12  ;;  %p5153_p2 = scmp.lt.s32.totalorder %s7682_s26, %s5151_s27 }
 0x366   : > { %4232 = vperm.xlu0 %5114, %v4229_v3   ;;  %vm7885_vm14 = vmmov %vm7879_vm3  ;;  %p5148_p0 = pnand %p5147_p13, %p5341_p3  ;;  %p5154_p4 = scmp.lt.s32.totalorder %s5152_s9, %s5146_s22 }
 0x367   : > { %vm7886_vm13 = vmmov %vm7879_vm3 }
 0x368   : > { %p5149_p1 = pneg %p5148_p0  ;;  %p5155_p5 = por %p5154_p4, %p5153_p2 }
 0x36a   : > { %p5156_p6 = pnand %p5155_p5, %p5149_p1 }
 0x36c   : > { %v4981_v47 = vpop.permute.xlu1 %4980 }
 0x36d   : > { %v4983_v60 = vunpack.i.h.bf16 %v4981_v47  ;;  %v4982_v56 = vunpack.i.l.bf16 %v4981_v47 }
 0x36f   : > { %v4986_v12 = vpop.permute.xlu0 %4985  ;;  %v4186_v27 = vsel %vm4177_vm8, %v4169_v18, %v4982_v56  ;;  %v4187_v35 = vsel %vm4177_vm8, %v4170_v48, %v4983_v60 }
 0x370   : > { %v4988_v42 = vunpack.i.h.bf16 %v4986_v12  ;;  %v4987_v33 = vunpack.i.l.bf16 %v4986_v12  ;;  %v4991_v8 = vpop.permute.xlu1 %4990 }
 0x371   : > { %v4993_v41 = vunpack.i.h.bf16 %v4991_v8  ;;  %v4992_v34 = vunpack.i.l.bf16 %v4991_v8 }
 0x372   : > { %v4203_v57 = vsel %vm7877_vm2, %v4186_v27, %v4987_v33  ;;  %v4204_v11 = vsel %vm7878_vm11, %v4187_v35, %v4988_v42  ;;  %vm7887_vm2 = vmmov %vm7881_vm9 }
 0x373   : > { %v4220_v4 = vsel %vm4211_vm10, %v4203_v57, %v4992_v34  ;;  %v4221_v5 = vsel %vm4211_vm10, %v4204_v11, %v4993_v41  ;;  %v4996_v50 = vpop.permute.xlu0 %4995  ;;  %vm7888_vm11 = vmmov %vm7887_vm2 }
 0x374   : > { %v4690_v32 = vpack.c.bf16 %v4221_v5, %v4220_v4  ;;  %v5001_v24 = vpop.permute.xlu1 %5000  ;;  %v4998_v46 = vunpack.i.h.bf16 %v4996_v50  ;;  %v4997_v29 = vunpack.i.l.bf16 %v4996_v50 }
 0x375   : > { %v5003_v25 = vunpack.i.h.bf16 %v5001_v24  ;;  %v5002_v43 = vunpack.i.l.bf16 %v5001_v24 }
 0x376   : > { %4692 = vmatpush3.bf16.xpose.msk.msra.mxu1 %vm7251_vm4, %v4690_v32  ;;  %v4107_v22 = vsel %vm1185_vm5, %v7263_v49, %v4998_v46  ;;  %v4106_v37 = vsel %vm1185_vm5, %v7257_v52, %v4997_v29 }
 0x377   : > { %4693 = vmatprep.subr.bf16.mxu1 %v7850_v36  ;;  %v5006_v14 = vpop.permute.xlu0 %5005  ;;  %v4122_v30 = vsel %vm1247_vm7, %v4106_v37, %v5002_v43  ;;  %v4123_v58 = vsel %vm1247_vm7, %v4107_v22, %v5003_v25 }
 0x378   : > { %v5011_v15 = vpop.permute.xlu1 %5010  ;;  %v5008_v61 = vunpack.i.h.bf16 %v5006_v14  ;;  %v5007_v62 = vunpack.i.l.bf16 %v5006_v14 }
 0x379   : > { %v5013_v53 = vunpack.i.h.bf16 %v5011_v15  ;;  %v5012_v39 = vunpack.i.l.bf16 %v5011_v15 }
 0x37a   : > { %v4138_v21 = vsel %vm7879_vm3, %v4122_v30, %v5007_v62  ;;  %v4139_v38 = vsel %vm7880_vm6, %v4123_v58, %v5008_v61  ;;  %vm7889_vm3 = vmmov %vm7883_vm0 }
 0x37b   : > { %v5016_v9 = vpop.permute.xlu0 %5015  ;;  %v4154_v52 = vsel %vm7881_vm9, %v4138_v21, %v5012_v39  ;;  %v4155_v51 = vsel %vm7882_vm15, %v4139_v38, %v5013_v53  ;;  %vm7890_vm6 = vmmov %vm7883_vm0 }
 0x37c   : > { %v5018_v19 = vunpack.i.h.bf16 %v5016_v9  ;;  %v5017_v2 = vunpack.i.l.bf16 %v5016_v9  ;;  %vm7891_vm9 = vmmov %vm7886_vm13 }
 0x37d   : > { %vm7892_vm15 = vmmov %vm7891_vm9 }
 0x37e   : > { %v4171_v40 = vsel %vm4160_vm12, %v4154_v52, %v5017_v2  ;;  %v4172_v26 = vsel %vm4160_vm12, %v4155_v51, %v5018_v19 }
 0x394   : > { %v5021_v1 = vpop.permute.xlu1 %5020 }
 0x395   : > { %v5023_v49 = vunpack.i.h.bf16 %v5021_v1  ;;  %v5022_v59 = vunpack.i.l.bf16 %v5021_v1 }
 0x397   : > { %v4188_v55 = vsel %vm4177_vm8, %v4171_v40, %v5022_v59  ;;  %v4189_v0 = vsel %vm4177_vm8, %v4172_v26, %v5023_v49 }
 0x398   : > { %v5026_v28 = vpop.permute.xlu0 %5025  ;;  %v5031_v7 = vpop.permute.xlu1 %5030 }
 0x399   : > { %v5028_v3 = vunpack.i.h.bf16 %v5026_v28  ;;  %v5027_v16 = vunpack.i.l.bf16 %v5026_v28  ;;  %v5033_v63 = vunpack.i.h.bf16 %v5031_v7  ;;  %v5032_v10 = vunpack.i.l.bf16 %v5031_v7 }
 0x39b   : > { %v4205_v6 = vsel %vm7883_vm0, %v4188_v55, %v5027_v16  ;;  %v4206_v44 = vsel %vm7884_vm1, %v4189_v0, %v5028_v3  ;;  %vm7894_vm0 = vmmov %vm7887_vm2 }
 0x39c   : > { %v4222_v47 = vsel %vm4211_vm10, %v4205_v6, %v5032_v10  ;;  %v4223_v60 = vsel %vm4211_vm10, %v4206_v44, %v5033_v63  ;;  %v5041_v20 = vpop.permute.xlu1 %5040  ;;  %v5036_v23 = vpop.permute.xlu0 %5035 }
 0x39d   : > { %v4694_v56 = vpack.c.bf16 %v4223_v60, %v4222_v47  ;;  %v5038_v48 = vunpack.i.h.bf16 %v5036_v23  ;;  %v5037_v42 = vunpack.i.l.bf16 %v5036_v23  ;;  %v5043_v27 = vunpack.i.h.bf16 %v5041_v20 }
 0x39e   : > { %v5042_v35 = vunpack.i.l.bf16 %v5041_v20 }
 0x39f   : > { %4696 = vmatpush3.bf16.xpose.msk.msra.mxu1 %vm7251_vm4, %v4694_v56  ;;  %v4109_v8 = vsel %vm1185_vm5, %v7345_v17, %v5038_v48  ;;  %v4108_v57 = vsel %vm1185_vm5, %v7335_v45, %v5037_v42 }
 0x3a0   : > { %4697 = vmatprep.subr.bf16.mxu1 %v7850_v36  ;;  %v5051_v12 = vpop.permute.xlu1 %5050  ;;  %v5046_v18 = vpop.permute.xlu0 %5045  ;;  %v4124_v5 = vsel %vm1247_vm7, %v4108_v57, %v5042_v35  ;;  %v4125_v32 = vsel %vm1247_vm7, %v4109_v8, %v5043_v27 }
 0x3a1   : > { %v5048_v11 = vunpack.i.h.bf16 %v5046_v18  ;;  %v5047_v41 = vunpack.i.l.bf16 %v5046_v18  ;;  %v5053_v50 = vunpack.i.h.bf16 %v5051_v12  ;;  %v5052_v24 = vunpack.i.l.bf16 %v5051_v12 }
 0x3a3   : > { %v4140_v14 = vsel %vm7885_vm14, %v4124_v5, %v5047_v41  ;;  %v4141_v46 = vsel %vm7886_vm13, %v4125_v32, %v5048_v11 }
 0x3a4   : > { %v5056_v4 = vpop.permute.xlu0 %5055  ;;  %v4156_v45 = vsel %vm7887_vm2, %v4140_v14, %v5052_v24  ;;  %v4157_v22 = vsel %vm7888_vm11, %v4141_v46, %v5053_v50  ;;  %v4228_v14 = vld [vmem:[%s7736_s3] sm:$0xff] }
 0x3a5   : > { %v5058_v29 = vunpack.i.h.bf16 %v5056_v4  ;;  %v5057_v15 = vunpack.i.l.bf16 %v5056_v4 }
 0x3a6   : > { %v5061_v33 = vpop.permute.xlu1 %5060 }
 0x3a7   : > { %v5063_v17 = vunpack.i.h.bf16 %v5061_v33  ;;  %v5062_v25 = vunpack.i.l.bf16 %v5061_v33  ;;  %v4173_v9 = vsel %vm4160_vm12, %v4156_v45, %v5057_v15  ;;  %v4174_v1 = vsel %vm4160_vm12, %v4157_v22, %v5058_v29 }
 0x3a9   : > { %v4190_v53 = vsel %vm4177_vm8, %v4173_v9, %v5062_v25  ;;  %v4191_v39 = vsel %vm4177_vm8, %v4174_v1, %v5063_v17 }
 0x3c2   : > { %v5071_v34 = vpop.permute.xlu1 %5070 }
 0x3c3   : > { %v5073_v37 = vunpack.i.h.bf16 %v5071_v34  ;;  %v5072_v61 = vunpack.i.l.bf16 %v5071_v34 }
 0x3c4   : > { %v5066_v62 = vpop.permute.xlu0 %5065 }
 0x3c5   : > { %v5068_v30 = vunpack.i.h.bf16 %v5066_v62  ;;  %v5067_v58 = vunpack.i.l.bf16 %v5066_v62 }
 0x3c6   : > { %v5081_v43 = vpop.permute.xlu1 %5080 }
 0x3c7   : > { %v4207_v21 = vsel %vm7889_vm3, %v4190_v53, %v5067_v58  ;;  %v4208_v38 = vsel %vm7890_vm6, %v4191_v39, %v5068_v30  ;;  %v5083_v40 = vunpack.i.h.bf16 %v5081_v43  ;;  %v5082_v26 = vunpack.i.l.bf16 %v5081_v43 }
 0x3c8   : > { %v5076_v19 = vpop.permute.xlu0 %5075  ;;  %v4224_v2 = vsel %vm4211_vm10, %v4207_v21, %v5072_v61  ;;  %v4225_v49 = vsel %vm4211_vm10, %v4208_v38, %v5073_v37 }
 0x3c9   : > { %v5078_v59 = vunpack.i.h.bf16 %v5076_v19  ;;  %v5077_v52 = vunpack.i.l.bf16 %v5076_v19  ;;  %v4698_v51 = vpack.c.bf16 %v4225_v49, %v4224_v2 }
 0x3ca   : > { %v5091_v28 = vpop.permute.xlu1 %5090 }
 0x3cb   : > { %4700 = vmatpush3.bf16.xpose.msk.msra.mxu1 %vm7251_vm4, %v4698_v51  ;;  %v4111_v16 = vsel %vm1185_vm5, %v7438_v13, %v5078_v59  ;;  %v4110_v55 = vsel %vm1185_vm5, %v7434_v54, %v5077_v52  ;;  %v5093_v44 = vunpack.i.h.bf16 %v5091_v28  ;;  %v5092_v63 = vunpack.i.l.bf16 %v5091_v28  ;;  %vm7893_vm5 = vmmov %vm7887_vm2 }
 0x3cc   : > { %v5086_v3 = vpop.permute.xlu0 %5085  ;;  %4701 = vmatprep.subr.bf16.mxu1 %v7850_v36  ;;  %v4126_v10 = vsel %vm1247_vm7, %v4110_v55, %v5082_v26  ;;  %v4127_v47 = vsel %vm1247_vm7, %v4111_v16, %v5083_v40  ;;  %vm7895_vm7 = vmmov %vm7884_vm1 }
 0x3cd   : > { %v5088_v0 = vunpack.i.h.bf16 %v5086_v3  ;;  %v5087_v7 = vunpack.i.l.bf16 %v5086_v3 }
 0x3cf   : > { %v4142_v56 = vsel %vm7891_vm9, %v4126_v10, %v5087_v7  ;;  %v4143_v36 = vsel %vm7892_vm15, %v4127_v47, %v5088_v0 }
 0x3d0   : > { %v5096_v60 = vpop.permute.xlu0 %5095  ;;  %v4158_v54 = vsel %vm7893_vm5, %v4142_v56, %v5092_v63  ;;  %v4159_v48 = vsel %vm7894_vm0, %v4143_v36, %v5093_v44 }
 0x3d1   : > { %v5101_v6 = vpop.permute.xlu1 %5100  ;;  %v5098_v20 = vunpack.i.h.bf16 %v5096_v60  ;;  %v5097_v23 = vunpack.i.l.bf16 %v5096_v60 }
 0x3d2   : > { %v5103_v12 = vunpack.i.h.bf16 %v5101_v6  ;;  %v5102_v18 = vunpack.i.l.bf16 %v5101_v6 }
 0x3d3   : > { %v4175_v35 = vsel %vm4160_vm12, %v4158_v54, %v5097_v23  ;;  %v4176_v8 = vsel %vm4160_vm12, %v4159_v48, %v5098_v20  ;;  %vm7896_vm12 = vcmask 588800  }
 0x3d4   : > { %v5106_v42 = vpop.permute.xlu0 %5105  ;;  %v4192_v41 = vsel %vm4177_vm8, %v4175_v35, %v5102_v18  ;;  %v4193_v34 = vsel %vm4177_vm8, %v4176_v8, %v5103_v12 }
 0x3d5   : > { %v5111_v13 = vpop.permute.xlu1 %5110  ;;  %v5108_v57 = vunpack.i.h.bf16 %v5106_v42  ;;  %v5107_v11 = vunpack.i.l.bf16 %v5106_v42 }
 0x3d6   : > { %v5113_v33 = vunpack.i.h.bf16 %v5111_v13  ;;  %v5112_v27 = vunpack.i.l.bf16 %v5111_v13 }
 0x3d7   : > { %v4209_v4 = vsel %vm7895_vm7, %v4192_v41, %v5107_v11  ;;  %v4210_v5 = vsel %vm7884_vm1, %v4193_v34, %v5108_v57 }
 0x3d8   : > { %v4226_v32 = vsel %vm4211_vm10, %v4209_v4, %v5112_v27  ;;  %v4227_v50 = vsel %vm4211_vm10, %v4210_v5, %v5113_v33 }
 0x3d9   : > { %v4702_v24 = vpack.c.bf16 %v4227_v50, %v4226_v32 }
 0x3db   : > { %4704 = vmatpush3.bf16.xpose.msk.msra.mxu1 %vm7251_vm4, %v4702_v24 }
 0x3e2   : > { %4665 = vmatmul.mubr.msk.f32.vlgmr.msra.gmra.mrb[0].mxu1 %vm7896_vm12, %v4228_v14 }
 0x3e5   : > { %v4233_v46 = vpop.permute.xlu0 %4232 }
 0x4b5   : > { %v4353_v29 = vpop.f32.mrb[0].mxu1 }
 0x4b6   : > { %v4354_v15 = vadd.f32 %v4353_v29, %v4233_v46  ;;  %v4666_v17 = vpop.f32.mrb[1].mxu1 }
 0x4b8   : > { %vm4357_vm8 = vcmp.ge.f32.partialorder %v4354_v15, 0.0  ;;  %v4358_v31 = vmul.f32 0.2, %v4354_v15 }
 0x4ba   : > { %v4359_v25 = vsel %vm4357_vm8, %v4354_v15, %v4358_v31 }
 0x4bb   : > { %4360 = vst [vmem:[%s231_s14] sm:$0xff] %v4359_v25 }
 0x4bc   : > { %5159 = shalt.err (!%p5156_p6)
}
 0x4bd   : > { %s5160_s30 = scalar_lea.hbm %s7680_s15, 128  ;;  %s5164_s12 = scalar_lea.hbm %s7738_s5, 512 }
 0x4be   : > { %p5161_p7 = scmp.ne.s32.totalorder %s7680_s15, %s5160_s30  ;;  %p5165_p11 = scmp.lt.u32.totalorder %s7680_s15, %s7738_s5 }
 0x4bf   : > { %p5166_p12 = scmp.lt.u32.totalorder %s5164_s12, %s5160_s30  ;;  %p5168_p0 = scmp.lt.u32.totalorder %s5160_s30, %s7680_s15 }
 0x4c0   : > { %p5162_p9 = pnand %p5161_p7, %p5341_p3 }
 0x4c1   : > { %p5167_p13 = por %p5166_p12, %p5165_p11 }
 0x4c2   : > { %p5163_p10 = pneg %p5162_p9 }
 0x4c3   : > { %p5169_p1 = por %p5168_p0, %p5167_p13 }
 0x4c5   : > { %p5170_p2 = pnand %p5169_p1, %p5163_p10 }
 0x4c7   : > { %5173 = shalt.err (!%p5170_p2)
}
 0x4c8   : > { %4706 = dma.vmem_to_hbm [thread:$0]  (%p5341_p3), %s7682_s26, 128, %s7680_s15, %s4362_s21  }
 0x4c9 PF: > { %p4712_p4 = scmp.ge.s32.totalorder %s5240_s25, 2  ;;  %s4389_s8 = sand.u32 1, %s5212_s18  }
 0x4ca   : > { %s4390_s22 = scalar_lea.sflag [#allocation3], %s4389_s8 }
 0x4cb   : > { %p4709_p5 = pnand %p4712_p4, %p5350_p8 }
 0x4cd   : > { %5207 = dma.done.wait (!%p4709_p5), %s4390_s22, 128  }
 0x4ce   : > { %5209 = vsyncadd (!%p4709_p5), %s4390_s22, 4294967168  ;;  %s18_s25 = sadd.s32 1, %s5240_s25   ;;  %s7897_s18 = smov %s5216_s19 }
 0x4cf   : > { %p15_p6 = scmp.ge.s32.totalorder %s18_s25, 6   ;;  %s7898_s19 = smov %s5220_s20 }
 0x4d0   : > { %s7899_s20 = smov %s5359_s11  ;;  %s7900_s21 = smov %s5232_s23 }
 0x4d1   : > { %s7901_s22 = smov %s5236_s24  ;;  %s7902_s23 = smov %s7905_s28 }
 0x4d2   : > { %s7903_s24 = smov %s7909_s29  ;;  %17 = sbr.rel (!%p15_p6) target bundleno = 5 (0x5), region = 76 }
 0x4d9   :  { %4395 = vsyncpa [#allocation3], 1 }
 0x4da   :  { %4397 = vsyncpa [#allocation3 + $0x1], 1 }

</bundles_post_ra>
